<compile_context>
chip_gen: v7x
topology: tpu7x:2x2x1
jax: 0.10.0
libtpu: 0.0.40
codegen_flags: <defaults>
</compile_context>

<pallas_src>
import numpy as np
import jax
import jax.numpy as jnp
from jax import lax
from jax.experimental import pallas as pl
from jax.experimental.pallas import tpu as pltpu


def encoder_kernel(x_ref, w1_ref, b1_ref, w2_ref, b2_ref, pooled_ref, skip_ref):
    # x_ref:      (1, H, W, Cin)   bf16, one batch element (unpadded)
    # w1_ref:     (9*Cin, F)       bf16, im2col-ordered conv1 weights
    # b1_ref:     (1, F)           f32
    # w2_ref:     (9*F, F)         bf16, im2col-ordered conv2 weights
    # b2_ref:     (1, F)           f32
    # pooled_ref: (1, H//2, W//2, F) f32  maxpooled output
    # skip_ref:   (1, H, W, F)       f32  pre-pool activations (skip connection)
    _, H, W, F = skip_ref.shape
    Cin = x_ref.shape[3]
    Ho, Wo = H // 2, W // 2
    bf16 = jnp.bfloat16

    # ---- load tile and zero-pad it in registers (pad=1) ----
    x = x_ref[0]                                           # (H, W, Cin) bf16
    zr = jnp.zeros((1, W, Cin), bf16)
    xp = jnp.concatenate([zr, x, zr], axis=0)              # (H+2, W, Cin)
    zc = jnp.zeros((H + 2, 1, Cin), bf16)
    xp = jnp.concatenate([zc, xp, zc], axis=1)             # (H+2, W+2, Cin)

    # ---- conv1 (3x3, pad=1): single MXU matmul on the im2col slab ----
    cols = [xp[dh:dh + H, dw:dw + W, :].reshape(H * W, Cin)
            for dh in range(3) for dw in range(3)]
    col1 = jnp.concatenate(cols, axis=1)                   # (H*W, 9*Cin) bf16
    acc1 = jnp.dot(col1, w1_ref[...], preferred_element_type=jnp.float32)
    h1 = jnp.maximum(acc1 + b1_ref[...], 0.0)              # (H*W, F) f32
    h1 = h1.astype(bf16).reshape(H, W, F)

    # ---- zero-pad conv1 activations in registers (no VMEM scratch) ----
    zr = jnp.zeros((1, W, F), bf16)
    h1p = jnp.concatenate([zr, h1, zr], axis=0)            # (H+2, W, F)
    zc = jnp.zeros((H + 2, 1, F), bf16)
    h1p = jnp.concatenate([zc, h1p, zc], axis=1)           # (H+2, W+2, F)

    # ---- conv2 (3x3, pad=1): single MXU matmul, K = 9*F ----
    cols = [h1p[dh:dh + H, dw:dw + W, :].reshape(H * W, F)
            for dh in range(3) for dw in range(3)]
    col2 = jnp.concatenate(cols, axis=1)                   # (H*W, 9*F) bf16
    acc2 = jnp.dot(col2, w2_ref[...], preferred_element_type=jnp.float32)
    h2 = jnp.maximum(acc2 + b2_ref[...], 0.0)              # (H*W, F) f32

    # skip connection = conv2 ReLU activations
    skip_ref[0] = h2.reshape(H, W, F).astype(skip_ref.dtype)

    # ---- 2x2 / stride-2 maxpool computed in registers ----
    h2r = h2.reshape(Ho, 2, Wo, 2, F)
    pooled = jnp.max(jnp.max(h2r, axis=3), axis=1)         # (Ho, Wo, F)
    pooled_ref[0] = pooled.astype(pooled_ref.dtype)


def encoder_forward(x_nchw, w1, b1, w2, b2, *, maxpooling=True):
    """x_nchw: (N, Cin, H, W); w*: torch-style OIHW (F, Cin, 3, 3); b*: (F,)."""
    N, Cin, H, W = x_nchw.shape
    F = w1.shape[0]
    assert H % 2 == 0 and W % 2 == 0, "even spatial dims expected for 2x2 pool"
    Ho, Wo = H // 2, W // 2

    # NCHW -> NHWC at the PyTorch boundary; bf16 operands for the MXU.
    x = jnp.transpose(x_nchw, (0, 2, 3, 1)).astype(jnp.bfloat16)
    # OIHW -> (kh*kw*Cin, F), matching the kernel's im2col tap/channel order.
    w1r = jnp.transpose(w1, (2, 3, 1, 0)).reshape(9 * Cin, F).astype(jnp.bfloat16)
    w2r = jnp.transpose(w2, (2, 3, 1, 0)).reshape(9 * F, F).astype(jnp.bfloat16)
    b1r = b1.reshape(1, F).astype(jnp.float32)
    b2r = b2.reshape(1, F).astype(jnp.float32)

    pooled, skip = pl.pallas_call(
        encoder_kernel,
        out_shape=(jax.ShapeDtypeStruct((N, Ho, Wo, F), jnp.float32),
                   jax.ShapeDtypeStruct((N, H, W, F), jnp.float32)),
        grid_spec=pltpu.PrefetchScalarGridSpec(
            num_scalar_prefetch=0,
            grid=(N,),
            in_specs=[
                pl.BlockSpec((1, H, W, Cin), lambda n: (n, 0, 0, 0)),
                pl.BlockSpec((9 * Cin, F), lambda n: (0, 0)),   # weights stay
                pl.BlockSpec((1, F), lambda n: (0, 0)),         # VMEM-resident
                pl.BlockSpec((9 * F, F), lambda n: (0, 0)),
                pl.BlockSpec((1, F), lambda n: (0, 0)),
            ],
            out_specs=[
                pl.BlockSpec((1, Ho, Wo, F), lambda n: (n, 0, 0, 0)),
                pl.BlockSpec((1, H, W, F), lambda n: (n, 0, 0, 0)),
            ],
        ),
        compiler_params=pltpu.CompilerParams(
            dimension_semantics=("parallel",)),
    )(x, w1r, b1r, w2r, b2r)

    skip_nchw = jnp.transpose(skip, (0, 3, 1, 2))
    out_nchw = jnp.transpose(pooled, (0, 3, 1, 2)) if maxpooling else skip_nchw
    return out_nchw, skip_nchw


if __name__ == "__main__":
    N, Cin, H, W = 2, 4, 16, 16
    F = 32  # n_filters

    key = jax.random.PRNGKey(0)
    k1, k2, k3, k4, kx = jax.random.split(key, 5)
    fan1 = float(Cin * 9)
    fan2 = float(F * 9)
    # deterministic, PyTorch-like uniform(-1/sqrt(fan_in), 1/sqrt(fan_in)) init
    w1 = jax.random.uniform(k1, (F, Cin, 3, 3), jnp.float32, -1.0, 1.0) / np.sqrt(fan1)
    b1 = jax.random.uniform(k2, (F,), jnp.float32, -1.0, 1.0) / np.sqrt(fan1)
    w2 = jax.random.uniform(k3, (F, F, 3, 3), jnp.float32, -1.0, 1.0) / np.sqrt(fan2)
    b2 = jax.random.uniform(k4, (F,), jnp.float32, -1.0, 1.0) / np.sqrt(fan2)
    x = jax.random.normal(kx, (N, Cin, H, W), jnp.float32)

    out, skip = encoder_forward(x, w1, b1, w2, b2, maxpooling=True)
    jax.block_until_ready((out, skip))

    # pure-JAX reference with the same bf16-operand / f32-accumulate recipe
    def conv_bf16(xi, w, b):
        y = lax.conv_general_dilated(
            xi.astype(jnp.bfloat16), w.astype(jnp.bfloat16),
            window_strides=(1, 1), padding="SAME",
            dimension_numbers=("NCHW", "OIHW", "NCHW"),
            preferred_element_type=jnp.float32)
        return y + b[None, :, None, None]

    r1 = jnp.maximum(conv_bf16(x, w1, b1), 0.0)
    r2 = jnp.maximum(conv_bf16(r1, w2, b2), 0.0)
    skip_expect = r2
    pooled_expect = lax.reduce_window(r2, -jnp.inf, lax.max,
                                      (1, 1, 2, 2), (1, 1, 2, 2), "VALID")

    assert out.shape == (N, F, H // 2, W // 2)
    assert skip.shape == (N, F, H, W)
    assert np.allclose(np.asarray(skip), np.asarray(skip_expect),
                       rtol=1e-2, atol=1e-2)
    assert np.allclose(np.asarray(out), np.asarray(pooled_expect),
                       rtol=1e-2, atol=1e-2)
    print("KERNEL_OK")
</pallas_src>

<mosaic_0001>
module attributes {stable_mosaic.version = 11 : i64} {
  func.func @encoder_kernel(%arg0: i32, %arg1: memref<1x16x16x4xbf16, #tpu.memory_space<vmem>>, %arg2: memref<36x32xbf16, #tpu.memory_space<vmem>>, %arg3: memref<1x32xf32, #tpu.memory_space<vmem>>, %arg4: memref<288x32xbf16, #tpu.memory_space<vmem>>, %arg5: memref<1x32xf32, #tpu.memory_space<vmem>>, %arg6: memref<1x8x8x32xf32, #tpu.memory_space<vmem>>, %arg7: memref<1x16x16x32xf32, #tpu.memory_space<vmem>>) attributes {dimension_semantics = [#tpu.dimension_semantics<parallel>], iteration_bounds = array<i64: 2>, scalar_prefetch = 0 : i64, scratch_operands = 0 : i64, tpu.core_type = #tpu.core_type<tc>, window_params = [{transform_indices = @transform_0, window_bounds = array<i64: 1, 16, 16, 4>}, {pipeline_mode = #tpu.pipeline_mode<synchronous>, transform_indices = @transform_1, window_bounds = array<i64: 36, 32>}, {pipeline_mode = #tpu.pipeline_mode<synchronous>, transform_indices = @transform_2, window_bounds = array<i64: 1, 32>}, {pipeline_mode = #tpu.pipeline_mode<synchronous>, transform_indices = @transform_3, window_bounds = array<i64: 288, 32>}, {pipeline_mode = #tpu.pipeline_mode<synchronous>, transform_indices = @transform_4, window_bounds = array<i64: 1, 32>}, {transform_indices = @transform_5, window_bounds = array<i64: 1, 8, 8, 32>}, {transform_indices = @transform_6, window_bounds = array<i64: 1, 16, 16, 32>}]} {
    %c0 = arith.constant 0 : index
    %c0_0 = arith.constant 0 : index
    %c0_1 = arith.constant 0 : index
    %c0_2 = arith.constant 0 : index
    %0 = vector.load %arg1[%c0, %c0_0, %c0_1, %c0_2] : memref<1x16x16x4xbf16, #tpu.memory_space<vmem>>, vector<1x16x16x4xbf16>
    %1 = vector.shape_cast %0 : vector<1x16x16x4xbf16> to vector<16x16x4xbf16>
    %cst = arith.constant 0.000000e+00 : bf16
    %2 = vector.broadcast %cst : bf16 to vector<1x16x4xbf16>
    %3 = tpu.concatenate %2, %1, %2 in 0 : vector<1x16x4xbf16>, vector<16x16x4xbf16>, vector<1x16x4xbf16> -> vector<18x16x4xbf16>
    %cst_3 = arith.constant 0.000000e+00 : bf16
    %4 = vector.broadcast %cst_3 : bf16 to vector<18x1x4xbf16>
    %5 = tpu.concatenate %4, %3, %4 in 1 : vector<18x1x4xbf16>, vector<18x16x4xbf16>, vector<18x1x4xbf16> -> vector<18x18x4xbf16>
    %6 = vector.extract_strided_slice %5 {offsets = [0, 0, 0], sizes = [16, 16, 4], strides = [1, 1, 1]} : vector<18x18x4xbf16> to vector<16x16x4xbf16>
    %7 = vector.shape_cast %6 : vector<16x16x4xbf16> to vector<256x4xbf16>
    %8 = vector.extract_strided_slice %5 {offsets = [0, 1, 0], sizes = [16, 16, 4], strides = [1, 1, 1]} : vector<18x18x4xbf16> to vector<16x16x4xbf16>
    %9 = vector.shape_cast %8 : vector<16x16x4xbf16> to vector<256x4xbf16>
    %10 = vector.extract_strided_slice %5 {offsets = [0, 2, 0], sizes = [16, 16, 4], strides = [1, 1, 1]} : vector<18x18x4xbf16> to vector<16x16x4xbf16>
    %11 = vector.shape_cast %10 : vector<16x16x4xbf16> to vector<256x4xbf16>
    %12 = vector.extract_strided_slice %5 {offsets = [1, 0, 0], sizes = [16, 16, 4], strides = [1, 1, 1]} : vector<18x18x4xbf16> to vector<16x16x4xbf16>
    %13 = vector.shape_cast %12 : vector<16x16x4xbf16> to vector<256x4xbf16>
    %14 = vector.extract_strided_slice %5 {offsets = [1, 1, 0], sizes = [16, 16, 4], strides = [1, 1, 1]} : vector<18x18x4xbf16> to vector<16x16x4xbf16>
    %15 = vector.shape_cast %14 : vector<16x16x4xbf16> to vector<256x4xbf16>
    %16 = vector.extract_strided_slice %5 {offsets = [1, 2, 0], sizes = [16, 16, 4], strides = [1, 1, 1]} : vector<18x18x4xbf16> to vector<16x16x4xbf16>
    %17 = vector.shape_cast %16 : vector<16x16x4xbf16> to vector<256x4xbf16>
    %18 = vector.extract_strided_slice %5 {offsets = [2, 0, 0], sizes = [16, 16, 4], strides = [1, 1, 1]} : vector<18x18x4xbf16> to vector<16x16x4xbf16>
    %19 = vector.shape_cast %18 : vector<16x16x4xbf16> to vector<256x4xbf16>
    %20 = vector.extract_strided_slice %5 {offsets = [2, 1, 0], sizes = [16, 16, 4], strides = [1, 1, 1]} : vector<18x18x4xbf16> to vector<16x16x4xbf16>
    %21 = vector.shape_cast %20 : vector<16x16x4xbf16> to vector<256x4xbf16>
    %22 = vector.extract_strided_slice %5 {offsets = [2, 2, 0], sizes = [16, 16, 4], strides = [1, 1, 1]} : vector<18x18x4xbf16> to vector<16x16x4xbf16>
    %23 = vector.shape_cast %22 : vector<16x16x4xbf16> to vector<256x4xbf16>
    %24 = tpu.concatenate %7, %9, %11, %13, %15, %17, %19, %21, %23 in 1 : vector<256x4xbf16>, vector<256x4xbf16>, vector<256x4xbf16>, vector<256x4xbf16>, vector<256x4xbf16>, vector<256x4xbf16>, vector<256x4xbf16>, vector<256x4xbf16>, vector<256x4xbf16> -> vector<256x36xbf16>
    %c0_4 = arith.constant 0 : index
    %c0_5 = arith.constant 0 : index
    %25 = vector.load %arg2[%c0_4, %c0_5] : memref<36x32xbf16, #tpu.memory_space<vmem>>, vector<36x32xbf16>
    %cst_6 = arith.constant dense<0.000000e+00> : vector<256x32xf32>
    %26 = tpu.matmul %24, %25, %cst_6 {dimension_numbers = #tpu.dot_dimension_numbers<[1], [0], [0], [1], [0, 0, 1, 1], [], []>} : vector<256x36xbf16>, vector<36x32xbf16>, vector<256x32xf32> -> vector<256x32xf32>
    %c0_7 = arith.constant 0 : index
    %c0_8 = arith.constant 0 : index
    %27 = vector.load %arg3[%c0_7, %c0_8] : memref<1x32xf32, #tpu.memory_space<vmem>>, vector<1x32xf32>
    %28 = vector.broadcast %27 : vector<1x32xf32> to vector<256x32xf32>
    %29 = arith.addf %26, %28 : vector<256x32xf32>
    %cst_9 = arith.constant 0.000000e+00 : f32
    %30 = vector.broadcast %cst_9 : f32 to vector<256x32xf32>
    %31 = arith.maximumf %29, %30 : vector<256x32xf32>
    %32 = arith.truncf %31 : vector<256x32xf32> to vector<256x32xbf16>
    %33 = vector.shape_cast %32 : vector<256x32xbf16> to vector<16x16x32xbf16>
    %cst_10 = arith.constant 0.000000e+00 : bf16
    %34 = vector.broadcast %cst_10 : bf16 to vector<1x16x32xbf16>
    %35 = tpu.concatenate %34, %33, %34 in 0 : vector<1x16x32xbf16>, vector<16x16x32xbf16>, vector<1x16x32xbf16> -> vector<18x16x32xbf16>
    %cst_11 = arith.constant 0.000000e+00 : bf16
    %36 = vector.broadcast %cst_11 : bf16 to vector<18x1x32xbf16>
    %37 = tpu.concatenate %36, %35, %36 in 1 : vector<18x1x32xbf16>, vector<18x16x32xbf16>, vector<18x1x32xbf16> -> vector<18x18x32xbf16>
    %38 = vector.extract_strided_slice %37 {offsets = [0, 0, 0], sizes = [16, 16, 32], strides = [1, 1, 1]} : vector<18x18x32xbf16> to vector<16x16x32xbf16>
    %39 = vector.shape_cast %38 : vector<16x16x32xbf16> to vector<256x32xbf16>
    %40 = vector.extract_strided_slice %37 {offsets = [0, 1, 0], sizes = [16, 16, 32], strides = [1, 1, 1]} : vector<18x18x32xbf16> to vector<16x16x32xbf16>
    %41 = vector.shape_cast %40 : vector<16x16x32xbf16> to vector<256x32xbf16>
    %42 = vector.extract_strided_slice %37 {offsets = [0, 2, 0], sizes = [16, 16, 32], strides = [1, 1, 1]} : vector<18x18x32xbf16> to vector<16x16x32xbf16>
    %43 = vector.shape_cast %42 : vector<16x16x32xbf16> to vector<256x32xbf16>
    %44 = vector.extract_strided_slice %37 {offsets = [1, 0, 0], sizes = [16, 16, 32], strides = [1, 1, 1]} : vector<18x18x32xbf16> to vector<16x16x32xbf16>
    %45 = vector.shape_cast %44 : vector<16x16x32xbf16> to vector<256x32xbf16>
    %46 = vector.extract_strided_slice %37 {offsets = [1, 1, 0], sizes = [16, 16, 32], strides = [1, 1, 1]} : vector<18x18x32xbf16> to vector<16x16x32xbf16>
    %47 = vector.shape_cast %46 : vector<16x16x32xbf16> to vector<256x32xbf16>
    %48 = vector.extract_strided_slice %37 {offsets = [1, 2, 0], sizes = [16, 16, 32], strides = [1, 1, 1]} : vector<18x18x32xbf16> to vector<16x16x32xbf16>
    %49 = vector.shape_cast %48 : vector<16x16x32xbf16> to vector<256x32xbf16>
    %50 = vector.extract_strided_slice %37 {offsets = [2, 0, 0], sizes = [16, 16, 32], strides = [1, 1, 1]} : vector<18x18x32xbf16> to vector<16x16x32xbf16>
    %51 = vector.shape_cast %50 : vector<16x16x32xbf16> to vector<256x32xbf16>
    %52 = vector.extract_strided_slice %37 {offsets = [2, 1, 0], sizes = [16, 16, 32], strides = [1, 1, 1]} : vector<18x18x32xbf16> to vector<16x16x32xbf16>
    %53 = vector.shape_cast %52 : vector<16x16x32xbf16> to vector<256x32xbf16>
    %54 = vector.extract_strided_slice %37 {offsets = [2, 2, 0], sizes = [16, 16, 32], strides = [1, 1, 1]} : vector<18x18x32xbf16> to vector<16x16x32xbf16>
    %55 = vector.shape_cast %54 : vector<16x16x32xbf16> to vector<256x32xbf16>
    %56 = tpu.concatenate %39, %41, %43, %45, %47, %49, %51, %53, %55 in 1 : vector<256x32xbf16>, vector<256x32xbf16>, vector<256x32xbf16>, vector<256x32xbf16>, vector<256x32xbf16>, vector<256x32xbf16>, vector<256x32xbf16>, vector<256x32xbf16>, vector<256x32xbf16> -> vector<256x288xbf16>
    %c0_12 = arith.constant 0 : index
    %c0_13 = arith.constant 0 : index
    %57 = vector.load %arg4[%c0_12, %c0_13] : memref<288x32xbf16, #tpu.memory_space<vmem>>, vector<288x32xbf16>
    %cst_14 = arith.constant dense<0.000000e+00> : vector<256x32xf32>
    %58 = tpu.matmul %56, %57, %cst_14 {dimension_numbers = #tpu.dot_dimension_numbers<[1], [0], [0], [1], [0, 0, 1, 1], [], []>} : vector<256x288xbf16>, vector<288x32xbf16>, vector<256x32xf32> -> vector<256x32xf32>
    %c0_15 = arith.constant 0 : index
    %c0_16 = arith.constant 0 : index
    %59 = vector.load %arg5[%c0_15, %c0_16] : memref<1x32xf32, #tpu.memory_space<vmem>>, vector<1x32xf32>
    %60 = vector.broadcast %59 : vector<1x32xf32> to vector<256x32xf32>
    %61 = arith.addf %58, %60 : vector<256x32xf32>
    %cst_17 = arith.constant 0.000000e+00 : f32
    %62 = vector.broadcast %cst_17 : f32 to vector<256x32xf32>
    %63 = arith.maximumf %61, %62 : vector<256x32xf32>
    %64 = vector.shape_cast %63 : vector<256x32xf32> to vector<16x16x32xf32>
    %c0_18 = arith.constant 0 : index
    %c0_19 = arith.constant 0 : index
    %c0_20 = arith.constant 0 : index
    %c0_21 = arith.constant 0 : index
    %65 = vector.load %arg7[%c0_18, %c0_19, %c0_20, %c0_21] : memref<1x16x16x32xf32, #tpu.memory_space<vmem>>, vector<1x16x16x32xf32>
    %66 = vector.shape_cast %65 : vector<1x16x16x32xf32> to vector<16x16x32xf32>
    %67 = vector.shape_cast %64 : vector<16x16x32xf32> to vector<1x16x16x32xf32>
    tpu.vector_store %arg7[%c0_18, %c0_19, %c0_20, %c0_21], %67 {strides = array<i32>} : memref<1x16x16x32xf32, #tpu.memory_space<vmem>>, vector<1x16x16x32xf32>,
    %68 = vector.shape_cast %63 : vector<256x32xf32> to vector<8x2x8x2x32xf32>
    %cst_22 = arith.constant dense<0xFF800000> : vector<8x2x8x32xf32>
    %69 = vector.multi_reduction <maximumf>, %68, %cst_22 [3] : vector<8x2x8x2x32xf32> to vector<8x2x8x32xf32>
    %cst_23 = arith.constant dense<0xFF800000> : vector<8x8x32xf32>
    %70 = vector.multi_reduction <maximumf>, %69, %cst_23 [1] : vector<8x2x8x32xf32> to vector<8x8x32xf32>
    %c0_24 = arith.constant 0 : index
    %c0_25 = arith.constant 0 : index
    %c0_26 = arith.constant 0 : index
    %c0_27 = arith.constant 0 : index
    %71 = vector.load %arg6[%c0_24, %c0_25, %c0_26, %c0_27] : memref<1x8x8x32xf32, #tpu.memory_space<vmem>>, vector<1x8x8x32xf32>
    %72 = vector.shape_cast %71 : vector<1x8x8x32xf32> to vector<8x8x32xf32>
    %73 = vector.shape_cast %70 : vector<8x8x32xf32> to vector<1x8x8x32xf32>
    tpu.vector_store %arg6[%c0_24, %c0_25, %c0_26, %c0_27], %73 {strides = array<i32>} : memref<1x8x8x32xf32, #tpu.memory_space<vmem>>, vector<1x8x8x32xf32>,
    return
  }
  func.func @transform_0(%arg0: i32) -> (i32, i32, i32, i32) {
    %c0_i32 = arith.constant 0 : i32
    %c0_i32_0 = arith.constant 0 : i32
    %c0_i32_1 = arith.constant 0 : i32
    %c0_i32_2 = arith.constant 0 : i32
    return %arg0, %c0_i32, %c0_i32_0, %c0_i32_1 : i32, i32, i32, i32
  }
  func.func @transform_1(%arg0: i32) -> (i32, i32) {
    %c0_i32 = arith.constant 0 : i32
    %c0_i32_0 = arith.constant 0 : i32
    %c0_i32_1 = arith.constant 0 : i32
    return %c0_i32, %c0_i32_0 : i32, i32
  }
  func.func @transform_2(%arg0: i32) -> (i32, i32) {
    %c0_i32 = arith.constant 0 : i32
    %c0_i32_0 = arith.constant 0 : i32
    %c0_i32_1 = arith.constant 0 : i32
    return %c0_i32, %c0_i32_0 : i32, i32
  }
  func.func @transform_3(%arg0: i32) -> (i32, i32) {
    %c0_i32 = arith.constant 0 : i32
    %c0_i32_0 = arith.constant 0 : i32
    %c0_i32_1 = arith.constant 0 : i32
    return %c0_i32, %c0_i32_0 : i32, i32
  }
  func.func @transform_4(%arg0: i32) -> (i32, i32) {
    %c0_i32 = arith.constant 0 : i32
    %c0_i32_0 = arith.constant 0 : i32
    %c0_i32_1 = arith.constant 0 : i32
    return %c0_i32, %c0_i32_0 : i32, i32
  }
  func.func @transform_5(%arg0: i32) -> (i32, i32, i32, i32) {
    %c0_i32 = arith.constant 0 : i32
    %c0_i32_0 = arith.constant 0 : i32
    %c0_i32_1 = arith.constant 0 : i32
    %c0_i32_2 = arith.constant 0 : i32
    return %arg0, %c0_i32, %c0_i32_0, %c0_i32_1 : i32, i32, i32, i32
  }
  func.func @transform_6(%arg0: i32) -> (i32, i32, i32, i32) {
    %c0_i32 = arith.constant 0 : i32
    %c0_i32_0 = arith.constant 0 : i32
    %c0_i32_1 = arith.constant 0 : i32
    %c0_i32_2 = arith.constant 0 : i32
    return %arg0, %c0_i32, %c0_i32_0, %c0_i32_1 : i32, i32, i32, i32
  }
}

</mosaic_0001>

<bundles_post_ra>
// kernel: tpu_custom_call.1
= control target key start
LH: loop header
LB: loop body
LE: loop exit
PB: predicated region body
PF: predicated region fallthrough
CT: control target
= control target key end

     0   :  { %12 = vsyncpa [#allocation3], 0  ;;  %s8174_s0 = inlined_call_operand.vmem [shape: bf16[2,16,16,4], index: 0, kind: input, shape index: {}]   ;;  %s8175_s1 = inlined_call_operand.vmem [shape: bf16[36,32], index: 1, kind: input, shape index: {}]   ;;  %s8176_s2 = inlined_call_operand.vmem [shape: f32[1,32], index: 2, kind: input, shape index: {}]   ;;  %s8177_s3 = inlined_call_operand.vmem [shape: bf16[288,32], index: 3, kind: input, shape index: {}]   ;;  %s8178_s4 = inlined_call_operand.vmem [shape: f32[1,32], index: 4, kind: input, shape index: {}]   ;;  %s8179_s5 = inlined_call_operand.hbm [shape: f32[2,8,8,32], index: 5, kind: output, shape index: {0}]   ;;  %s8180_s6 = inlined_call_operand.hbm [shape: f32[2,16,16,32], index: 6, kind: output, shape index: {1}]  }
   0x1   :  { %14 = vsyncpa [#allocation3 + $0x1], 0 }
   0x2   :  { %15 = vsyncpa [#allocation5], 0 }
   0x3   :  { %17 = vsyncpa [#allocation5 + $0x1], 0  ;;  %s5753_s21 = smov 0   ;;  %s5755_s22 = smov 0  }
   0x4   :  { %s5757_s23 = smov 0   ;;  %s5759_s24 = smov 0  }
   0x5 LB: > { %s5774_s25 = sadd.s32 4294967295, %s5701_s24   ;;  %s5180_s26 = sadd.s32 4294967294, %s5701_s24   ;;  %s5701_s24 = sphi %s5759_s24, %s8194_s24   ;;  %s5697_s23 = sphi %s5757_s23, %s8193_s23   ;;  %s5693_s22 = sphi %s5755_s22, %s8192_s22   ;;  %s5689_s21 = sphi %s5753_s21, %s8191_s21  }
   0x6   : > { %s5778_s27 = sadd.s32 1, %s5701_s24   ;;  %s140_s28 = sadd.s32 1, %s5697_s23 }
   0x7   : > { %s137_s29 = ssub.s32 %s5701_s24, %s5778_s27  ;;  %p150_p0 = scmp.ne.s32.totalorder %s5697_s23, %s5693_s22 }
   0x8   : > { %p138_p1 = scmp.eq.s32.totalorder %s137_s29, 0  ;;  %p151_p2 = scmp.eq.s32.totalorder %s5774_s25, 1 }
   0x9   : > { %p156_p3 = scmp.ne.s32.totalorder %s5693_s22, %s5689_s21  ;;  %p157_p4 = scmp.eq.s32.totalorder %s5180_s26, 1 }
   0xa   : > { %s5789_s30 = scalar_select %p138_p1, %s5697_s23, %s140_s28  }
   0xb   : > { %p5791_p5 = por %p151_p2, %p150_p0  ;;  %p5795_p6 = por %p157_p4, %p156_p3 }
   0xc   : > { %p5183_p7 = scmp.ge.s32.totalorder %s5701_s24, 1  ;;  %p221_p8 = scmp.lt.s32.totalorder %s5701_s24, 3 }
   0xe   : > { %p222_p9 = pnand %p5183_p7, %p221_p8 }
  0x10   : > { %225 = sbr.rel (%p222_p9) target bundleno = 1169 (0x491), region = 40 }
  0x17   : > { %vm527_vm0 = vcmask 1040384   ;;  %vm528_vm1 = vsmask.f32 256  ;;  %v5703_v0 = vmov 0   ;;  %p256_p10 = scmp.lt.s32.totalorder %s5774_s25, 1  ;;  %vm789_vm3 = vcmask 1046528  }
  0x18   : > { %v377_v1 = vrot.slane %v5703_v0, 7  ;;  %vm5801_vm2 = vmand %vm527_vm0, %vm528_vm1  ;;  %vm564_vm4 = vsmask.f32 7424  ;;  %s5704_s14 = smov 8   ;;  %s5705_s15 = smov 4   ;;  %v5576_v42 = vld [vmem:[%s8175_s1] sm:$0xff]  }
  0x19   : > { %s257_s9 = scalar_select %p256_p10, %s5774_s25, 1  ;;  %5419 = vmatprep.subr.bf16.mxu0 %v5576_v42  ;;  %v5578_v54 = vld [vmem:[%s8175_s1 + $0x8] sm:$0xff]   ;;  %vm1435_vm5 = vcmask 1041408   ;;  %vm1111_vm6 = vcmask 31744   ;;  %vm1144_vm7 = vcmask 64512   ;;  %vm1177_vm8 = vcmask 97280  }
  0x1a   : > { %v5808_v3 = vsel %vm5801_vm2, 0, %v377_v1  ;;  %v547_v4 = vsel %vm5801_vm2, %v377_v1, 0  ;;  %s5706_s16 = smov 12   ;;  %s5707_s19 = smov 24   ;;  %5420 = vmatpush3.bf16.msra.mxu0 %v5576_v42  ;;  %vm1210_vm9 = vcmask 130048   ;;  %vm1243_vm10 = vcmask 162816  }
  0x1b   : > { %v790_v5 = vrot.slane %v5808_v3, 1  ;;  %v791_v6 = vrot.slane %v547_v4, 1  ;;  %v566_v7 = vshrl.u32 %v5808_v3, 16  ;;  %v568_v8 = vshll.u32 %v5808_v3, 16  ;;  %s5267_s10 = sshll.u32 %s257_s9, 7  ;;  %s5708_s28 = smov 20   ;;  %5421 = vmatprep.subr.bf16.mxu0 %v5578_v54 }
  0x1c   : > { %v573_v9 = vshll.u32 %v547_v4, 16  ;;  %s5822_s13 = scalar_lea.vmem %s8174_s0, %s5267_s10  ;;  %s5709_s29 = smov 16   ;;  %vm1276_vm11 = vcmask 195584   ;;  %vm1309_vm12 = vcmask 228352   ;;  %vm1342_vm13 = vcmask 261120  }
  0x1d   : > { %v5817_v10 = vsel %vm789_vm3, %v790_v5, %v791_v6  ;;  %v570_v11 = vrot.slane %v568_v8, 1  ;;  %v5567_v13 = vld [vmem:[%s5822_s13 + $0x8] sm:$0xff]   ;;  %v5568_v15 = vld [vmem:[%s5822_s13] sm:$0xff]   ;;  %v5569_v21 = vld [vmem:[%s5822_s13 + $0x10] sm:$0xff]   ;;  %s5710_s9 = smov 28   ;;  %s5711_s10 = smov 32  }
  0x1e   : > { %887 = vrot.lane.b32.xlu1 %v5817_v10, %s5704_s14  ;;  %v575_v12 = vrot.slane %v573_v9, 1  ;;  %v389_v16 = vshrl.u32 %v5567_v13, 16  ;;  %v392_v17 = vshll.u32 %v5567_v13, 16  ;;  %v382_v19 = vshrl.u32 %v5568_v15, 16  ;;  %v5570_v53 = vld [vmem:[%s5822_s13 + $0x18] sm:$0xff]   ;;  %5422 = vmatpush3.bf16.msra.mxu0 %v5578_v54  ;;  %v5571_v8 = vld [vmem:[%s5822_s13 + $0x20] sm:$0xff]  }
  0x1f   : > { %v571_v14 = vor.u32 %v570_v11, %v566_v7  ;;  %v385_v20 = vshll.u32 %v5568_v15, 16  ;;  %v396_v24 = vshrl.u32 %v5569_v21, 16  ;;  %v399_v25 = vshll.u32 %v5569_v21, 16  ;;  %s5713_s11 = smov 96   ;;  %s5269_s17 = sshll.u32 %s5774_s25, 12 }
  0x20   : > { %v391_v22 = vrot.slane %v389_v16, 7  ;;  %v384_v23 = vrot.slane %v382_v19, 7  ;;  %v403_v62 = vshrl.u32 %v5570_v53, 16  ;;  %v406_v5 = vshll.u32 %v5570_v53, 16  ;;  %s8041_s20 = scalar_lea.hbm %s8180_s6, %s5269_s17 }
  0x21   : > { %v5829_v18 = vsel %vm564_vm4, %v571_v14, %v575_v12  ;;  %v398_v28 = vrot.slane %v396_v24, 7  ;;  %v410_v13 = vshrl.u32 %v5571_v8, 16  ;;  %v5579_v16 = vld [vmem:[%s8175_s1 + $0x10] ss:$0 sps:$4 sm:$0x33]   ;;  %vm1402_vm14 = vcmask 293888  }
  0x22   : > { %855 = vrot.lane.b32.xlu0 %v5829_v18, %s5705_s15  ;;  %v394_v26 = vor.u32 %v392_v17, %v391_v22  ;;  %v387_v27 = vor.u32 %v385_v20, %v384_v23  ;;  %v548_v29 = vsel %vm5801_vm2, %v384_v23, 0  ;;  %v549_v35 = vsel %vm5801_vm2, %v391_v22, 0  ;;  %5509 = vmatprep.subr.msk.bf16.mxu0 %vm1435_vm5, %v5579_v16 }
  0x23   : > { %v401_v32 = vor.u32 %v399_v25, %v398_v28  ;;  %v794_v34 = vrot.slane %v548_v29, 1  ;;  %v585_v39 = vshll.u32 %v548_v29, 16  ;;  %v797_v44 = vrot.slane %v549_v35, 1 }
  0x24   : > { %v5838_v30 = vsel %vm5801_vm2, 0, %v394_v26  ;;  %v5844_v31 = vsel %vm5801_vm2, 0, %v387_v27  ;;  %v597_v45 = vshll.u32 %v549_v35, 16  ;;  %v550_v52 = vsel %vm5801_vm2, %v398_v28, 0 }
  0x25   : > { %921 = vrot.lane.b32.xlu1 %v5838_v30, %s5706_s16  ;;  %v793_v33 = vrot.slane %v5844_v31, 1  ;;  %v580_v36 = vshll.u32 %v5844_v31, 16  ;;  %v5854_v37 = vsel %vm5801_vm2, 0, %v401_v32  ;;  %v578_v38 = vshrl.u32 %v5844_v31, 16 }
  0x26   : > { %919 = vrot.lane.b32.xlu0 %v5844_v31, %s5706_s16  ;;  %v592_v40 = vshll.u32 %v5838_v30, 16  ;;  %v796_v43 = vrot.slane %v5838_v30, 1  ;;  %v590_v47 = vshrl.u32 %v5838_v30, 16  ;;  %v604_v49 = vshll.u32 %v5854_v37, 16 }
  0x27   : > { %v582_v41 = vrot.slane %v580_v36, 1  ;;  %v795_v46 = vsel %vm789_vm3, %v793_v33, %v794_v34  ;;  %v587_v51 = vrot.slane %v585_v39, 1  ;;  %v599_v56 = vrot.slane %v597_v45, 1  ;;  %v5572_v36 = vld [vmem:[%s5822_s13 + $0x28] sm:$0xff]  }
  0x28   : > { %v594_v48 = vrot.slane %v592_v40, 1  ;;  %v798_v55 = vsel %vm789_vm3, %v796_v43, %v797_v44  ;;  %v602_v58 = vshrl.u32 %v5854_v37, 16  ;;  %v606_v59 = vrot.slane %v604_v49, 1 }
  0x29   : > { %1017 = vrot.lane.b32.xlu1 %v5854_v37, %s5707_s19  ;;  %v583_v50 = vor.u32 %v582_v41, %v578_v38  ;;  %v609_v60 = vshll.u32 %v550_v52, 16  ;;  %v405_v4 = vrot.slane %v403_v62, 7  ;;  %v799_v9 = vrot.slane %v5854_v37, 1 }
  0x2a   : > { %1015 = vrot.lane.b32.xlu0 %v5838_v30, %s5707_s19  ;;  %v595_v57 = vor.u32 %v594_v48, %v590_v47  ;;  %v607_v0 = vor.u32 %v606_v59, %v602_v58  ;;  %v800_v11 = vrot.slane %v550_v52, 1  ;;  %v412_v19 = vrot.slane %v410_v13, 7 }
  0x2b   : > { %v588_v61 = vsel %vm564_vm4, %v583_v50, %v587_v51  ;;  %v611_v1 = vrot.slane %v609_v60, 1  ;;  %v408_v7 = vor.u32 %v406_v5, %v405_v4  ;;  %v551_v14 = vsel %vm5801_vm2, %v405_v4, 0  ;;  %v5573_v51 = vld [vmem:[%s5822_s13 + $0x30] sm:$0xff]  }
  0x2c   : > { %v600_v63 = vsel %vm564_vm4, %v595_v57, %v599_v56  ;;  %v801_v17 = vsel %vm789_vm3, %v799_v9, %v800_v11  ;;  %v413_v20 = vshll.u32 %v5571_v8, 16  ;;  %v621_v21 = vshll.u32 %v551_v14, 16  ;;  %v5574_v9 = vld [vmem:[%s5822_s13 + $0x38] sm:$0xff]  }
  0x2d   : > { %889 = vrot.lane.b32.xlu1 %v795_v46, %s5704_s14  ;;  %v612_v6 = vsel %vm564_vm4, %v607_v0, %v611_v1  ;;  %v5892_v12 = vsel %vm5801_vm2, 0, %v408_v7  ;;  %v1437_v25 = vsel %vm1435_vm5, %v5579_v16, 0  ;;  %v803_v29 = vrot.slane %v551_v14, 1 }
  0x2e   : > { %983 = vrot.lane.b32.xlu0 %v795_v46, %s5708_s28  ;;  %v616_v15 = vshll.u32 %v5892_v12, 16  ;;  %v614_v22 = vshrl.u32 %v5892_v12, 16  ;;  %v415_v24 = vor.u32 %v413_v20, %v412_v19  ;;  %5424 = vmatpush3.bf16.msra.mxu0 %v1437_v25  ;;  %v623_v27 = vrot.slane %v621_v21, 1 }
  0x2f   : > { %v802_v33 = vrot.slane %v5892_v12, 1  ;;  %v552_v35 = vsel %vm5801_vm2, %v412_v19, 0  ;;  %v417_v42 = vshrl.u32 %v5572_v36, 16  ;;  %v420_v46 = vshll.u32 %v5572_v36, 16 }
  0x30   : > { %v618_v23 = vrot.slane %v616_v15, 1  ;;  %v5910_v28 = vsel %vm5801_vm2, 0, %v415_v24  ;;  %v633_v41 = vshll.u32 %v552_v35, 16  ;;  %v806_v49 = vrot.slane %v552_v35, 1 }
  0x31   : > { %985 = vrot.lane.b32.xlu1 %v798_v55, %s5708_s28  ;;  %v628_v34 = vshll.u32 %v5910_v28, 16  ;;  %v804_v38 = vsel %vm789_vm3, %v802_v33, %v803_v29  ;;  %v626_v39 = vshrl.u32 %v5910_v28, 16  ;;  %v419_v45 = vrot.slane %v417_v42, 7 }
  0x32   : > { %857 = vrot.lane.b32.xlu0 %v588_v61, %s5705_s15  ;;  %v619_v26 = vor.u32 %v618_v23, %v614_v22  ;;  %v635_v44 = vrot.slane %v633_v41, 1  ;;  %v805_v48 = vrot.slane %v5910_v28, 1  ;;  %v424_v54 = vshrl.u32 %v5573_v51, 16 }
  0x33   : > { %v630_v40 = vrot.slane %v628_v34, 1  ;;  %v422_v50 = vor.u32 %v420_v46, %v419_v45  ;;  %v553_v56 = vsel %vm5801_vm2, %v419_v45, 0  ;;  %v427_v58 = vshll.u32 %v5573_v51, 16 }
  0x34   : > { %v624_v32 = vsel %vm564_vm4, %v619_v26, %v623_v27  ;;  %v807_v52 = vsel %vm789_vm3, %v805_v48, %v806_v49  ;;  %v426_v57 = vrot.slane %v424_v54, 7  ;;  %v431_v16 = vshrl.u32 %v5574_v9, 16  ;;  %v5575_v26 = vld [vmem:[%s5822_s13 + $0x40] sm:$0xff]  }
  0x35   : > { %953 = vrot.lane.b32.xlu1 %v600_v63, %s5709_s29  ;;  %v631_v43 = vor.u32 %v630_v40, %v626_v39  ;;  %v5940_v53 = vsel %vm5801_vm2, 0, %v422_v50  ;;  %v434_v21 = vshll.u32 %v5574_v9, 16  ;;  %v441_v36 = vshll.u32 %v5575_v26, 16  ;;  %v5577_v50 = vld [vmem:[%s5822_s13 + $0x48] sm:$0xff]  }
  0x36   : > { %951 = vrot.lane.b32.xlu0 %v588_v61, %s5709_s29  ;;  %v638_v59 = vshrl.u32 %v5940_v53, 16  ;;  %v645_v61 = vshll.u32 %v553_v56, 16  ;;  %v429_v62 = vor.u32 %v427_v58, %v426_v57  ;;  %v808_v5 = vrot.slane %v5940_v53, 1 }
  0x37   : > { %v636_v47 = vsel %vm564_vm4, %v631_v43, %v635_v44  ;;  %v554_v8 = vsel %vm5801_vm2, %v426_v57, 0  ;;  %v433_v20 = vrot.slane %v431_v16, 7  ;;  %vm2320_vm15 = vcmask 523264  }
  0x38   : > { %v647_v0 = vrot.slane %v645_v61, 1  ;;  %v5954_v1 = vsel %vm5801_vm2, 0, %v429_v62  ;;  %v657_v15 = vshll.u32 %v554_v8, 16  ;;  %v812_v24 = vrot.slane %v554_v8, 1 }
  0x39   : > { %1049 = vrot.lane.b32.xlu1 %v612_v6, %s5710_s9  ;;  %v652_v7 = vshll.u32 %v5954_v1, 16  ;;  %v650_v13 = vshrl.u32 %v5954_v1, 16  ;;  %v811_v23 = vrot.slane %v5954_v1, 1  ;;  %v436_v25 = vor.u32 %v434_v21, %v433_v20 }
  0x3a   : > { %1047 = vrot.lane.b32.xlu0 %v600_v63, %s5710_s9  ;;  %v659_v19 = vrot.slane %v657_v15, 1  ;;  %v555_v34 = vsel %vm5801_vm2, %v433_v20, 0  ;;  %v448_v62 = vshll.u32 %v5577_v50, 16  ;;  %vm2353_vm0 = vcmask 785408  }
  0x3b   : > { %v654_v14 = vrot.slane %v652_v7, 1  ;;  %v813_v27 = vsel %vm789_vm3, %v811_v23, %v812_v24  ;;  %v5984_v29 = vsel %vm5801_vm2, 0, %v436_v25  ;;  %v669_v40 = vshll.u32 %v555_v34, 16  ;;  %v5580_v7 = vld [vmem:[%s5822_s13 + $0x50] sm:$0xff]  }
  0x3c   : > { %v664_v33 = vshll.u32 %v5984_v29, 16  ;;  %v814_v46 = vrot.slane %v5984_v29, 1  ;;  %v455_v21 = vshll.u32 %v5580_v7, 16  ;;  %vm3819_vm1 = vcmask 254976  }
  0x3d   : > { %859 = vrot.lane.b32.xlu1 %v600_v63, %s5705_s15  ;;  %v671_v43 = vrot.slane %v669_v40, 1  ;;  %vm4978_vm5 = vcmask 1044484  }
  0x3e   : > { %1079 = vrot.lane.b32.xlu0 %v798_v55, %s5711_s10  ;;  %v666_v39 = vrot.slane %v664_v33, 1 }
  0x41   : > { %861 = vrot.lane.b32.xlu1 %v612_v6, %s5705_s15 }
  0x42   : > { %1081 = vrot.lane.b32.xlu0 %v801_v17, %s5711_s10 }
  0x45   : > { %893 = vrot.lane.b32.xlu1 %v801_v17, %s5704_s14 }
  0x46   : > { %891 = vrot.lane.b32.xlu0 %v798_v55, %s5704_s14  ;;  %v640_v55 = vshll.u32 %v5940_v53, 16 }
  0x48   : > { %v642_v60 = vrot.slane %v640_v55, 1 }
  0x49   : > { %925 = vrot.lane.b32.xlu1 %v5892_v12, %s5706_s16 }
  0x4a   : > { %923 = vrot.lane.b32.xlu0 %v5854_v37, %s5706_s16  ;;  %v643_v63 = vor.u32 %v642_v60, %v638_v59 }
  0x4c   : > { %v648_v4 = vsel %vm564_vm4, %v643_v63, %v647_v0 }
  0x4d   : > { %957 = vrot.lane.b32.xlu1 %v624_v32, %s5709_s29 }
  0x4e   : > { %955 = vrot.lane.b32.xlu0 %v612_v6, %s5709_s29  ;;  %v809_v6 = vrot.slane %v553_v56, 1  ;;  %v445_v56 = vshrl.u32 %v5577_v50, 16 }
  0x50   : > { %v810_v11 = vsel %vm789_vm3, %v808_v5, %v809_v6  ;;  %v447_v61 = vrot.slane %v445_v56, 7 }
  0x51   : > { %989 = vrot.lane.b32.xlu1 %v804_v38, %s5708_s28 }
  0x52   : > { %987 = vrot.lane.b32.xlu0 %v801_v17, %s5708_s28  ;;  %v655_v17 = vor.u32 %v654_v14, %v650_v13  ;;  %v450_v6 = vor.u32 %v448_v62, %v447_v61  ;;  %v452_v14 = vshrl.u32 %v5580_v7, 16 }
  0x54   : > { %v660_v22 = vsel %vm564_vm4, %v655_v17, %v659_v19  ;;  %v6035_v13 = vsel %vm5801_vm2, 0, %v450_v6  ;;  %v557_v19 = vsel %vm5801_vm2, %v447_v61, 0  ;;  %v454_v20 = vrot.slane %v452_v14, 7 }
  0x55   : > { %1021 = vrot.lane.b32.xlu1 %v5910_v28, %s5707_s19  ;;  %v688_v16 = vshll.u32 %v6035_v13, 16  ;;  %v686_v23 = vshrl.u32 %v6035_v13, 16  ;;  %v693_v25 = vshll.u32 %v557_v19, 16 }
  0x56   : > { %1019 = vrot.lane.b32.xlu0 %v5892_v12, %s5707_s19 }
  0x57   : > { %v690_v24 = vrot.slane %v688_v16, 1 }
  0x59   : > { %1053 = vrot.lane.b32.xlu1 %v636_v47, %s5710_s9 }
  0x5a   : > { %1051 = vrot.lane.b32.xlu0 %v624_v32, %s5710_s9 }
  0x5d   : > { %1085 = vrot.lane.b32.xlu1 %v807_v52, %s5711_s10 }
  0x5e   : > { %1083 = vrot.lane.b32.xlu0 %v804_v38, %s5711_s10 }
  0x61   : > { %865 = vrot.lane.b32.xlu1 %v636_v47, %s5705_s15 }
  0x62   : > { %863 = vrot.lane.b32.xlu0 %v624_v32, %s5705_s15  ;;  %v438_v32 = vshrl.u32 %v5575_v26, 16 }
  0x64   : > { %v440_v35 = vrot.slane %v438_v32, 7 }
  0x65   : > { %897 = vrot.lane.b32.xlu1 %v807_v52, %s5704_s14 }
  0x66   : > { %895 = vrot.lane.b32.xlu0 %v804_v38, %s5704_s14  ;;  %v662_v38 = vshrl.u32 %v5984_v29, 16  ;;  %v443_v41 = vor.u32 %v441_v36, %v440_v35  ;;  %v556_v49 = vsel %vm5801_vm2, %v440_v35, 0  ;;  %v691_v36 = vor.u32 %v690_v24, %v686_v23 }
  0x67   : > { %v681_v55 = vshll.u32 %v556_v49, 16 }
  0x68   : > { %v667_v42 = vor.u32 %v666_v39, %v662_v38  ;;  %v5998_v44 = vsel %vm5801_vm2, 0, %v443_v41  ;;  %v695_v38 = vrot.slane %v693_v25, 1  ;;  %v5582_v25 = vld [vmem:[%s5822_s13 + $0x60] sm:$0xff]  }
  0x69   : > { %929 = vrot.lane.b32.xlu1 %v5940_v53, %s5706_s16  ;;  %v676_v48 = vshll.u32 %v5998_v44, 16  ;;  %v683_v60 = vrot.slane %v681_v55, 1  ;;  %v817_v0 = vrot.slane %v5998_v44, 1  ;;  %v5581_v55 = vld [vmem:[%s5822_s13 + $0x58] sm:$0xff]  }
  0x6a   : > { %927 = vrot.lane.b32.xlu0 %v5910_v28, %s5706_s16  ;;  %v672_v45 = vsel %vm564_vm4, %v667_v42, %v671_v43 }
  0x6b   : > { %v678_v54 = vrot.slane %v676_v48, 1 }
  0x6d   : > { %961 = vrot.lane.b32.xlu1 %v648_v4, %s5709_s29 }
  0x6e   : > { %959 = vrot.lane.b32.xlu0 %v636_v47, %s5709_s29  ;;  %v815_v47 = vrot.slane %v555_v34, 1 }
  0x70   : > { %v816_v51 = vsel %vm789_vm3, %v814_v46, %v815_v47  ;;  %v820_v46 = vrot.slane %v6035_v13, 1  ;;  %v821_v47 = vrot.slane %v557_v19, 1 }
  0x71   : > { %993 = vrot.lane.b32.xlu1 %v810_v11, %s5708_s28 }
  0x72   : > { %991 = vrot.lane.b32.xlu0 %v807_v52, %s5708_s28  ;;  %v674_v52 = vshrl.u32 %v5998_v44, 16 }
  0x74   : > { %v679_v59 = vor.u32 %v678_v54, %v674_v52  ;;  %v558_v54 = vsel %vm5801_vm2, %v454_v20, 0 }
  0x75   : > { %1025 = vrot.lane.b32.xlu1 %v5954_v1, %s5707_s19  ;;  %v705_v62 = vshll.u32 %v558_v54, 16 }
  0x76   : > { %1023 = vrot.lane.b32.xlu0 %v5940_v53, %s5707_s19  ;;  %v6021_v63 = vsel %vm564_vm4, %v679_v59, %v683_v60 }
  0x77   : > { %v707_v14 = vrot.slane %v705_v62, 1 }
  0x79   : > { %1057 = vrot.lane.b32.xlu1 %v660_v22, %s5710_s9 }
  0x7a   : > { %1055 = vrot.lane.b32.xlu0 %v648_v4, %s5710_s9 }
  0x7d   : > { %1089 = vrot.lane.b32.xlu1 %v813_v27, %s5711_s10 }
  0x7e   : > { %1087 = vrot.lane.b32.xlu0 %v810_v11, %s5711_s10 }
  0x81   : > { %869 = vrot.lane.b32.xlu1 %v660_v22, %s5705_s15 }
  0x82   : > { %867 = vrot.lane.b32.xlu0 %v648_v4, %s5705_s15  ;;  %v818_v4 = vrot.slane %v556_v49, 1  ;;  %v696_v49 = vsel %vm564_vm4, %v691_v36, %v695_v38 }
  0x84   : > { %v6029_v9 = vsel %vm789_vm3, %v817_v0, %v818_v4  ;;  %v459_v4 = vshrl.u32 %v5581_v55, 16 }
  0x85   : > { %901 = vrot.lane.b32.xlu1 %v813_v27, %s5704_s14 }
  0x86   : > { %899 = vrot.lane.b32.xlu0 %v810_v11, %s5704_s14  ;;  %v461_v16 = vrot.slane %v459_v4, 7 }
  0x89   : > { %933 = vrot.lane.b32.xlu1 %v5984_v29, %s5706_s16 }
  0x8a   : > { %931 = vrot.lane.b32.xlu0 %v5954_v1, %s5706_s16 }
  0x8d   : > { %965 = vrot.lane.b32.xlu1 %v672_v45, %s5709_s29 }
  0x8e   : > { %963 = vrot.lane.b32.xlu0 %v660_v22, %s5709_s29 }
  0x90   : > { %v888_v57 = vpop.permute.xlu1 %887 }
  0x91   : > { %997 = vrot.lane.b32.xlu1 %v816_v51, %s5708_s28 }
  0x92   : > { %995 = vrot.lane.b32.xlu0 %v813_v27, %s5708_s28  ;;  %v457_v27 = vor.u32 %v455_v21, %v454_v20 }
  0x94   : > { %v856_v58 = vpop.permute.xlu0 %855  ;;  %v6058_v41 = vsel %vm5801_vm2, 0, %v457_v27 }
  0x95   : > { %1029 = vrot.lane.b32.xlu1 %v5998_v44, %s5707_s19  ;;  %v1113_v32 = vsel %vm1111_vm6, %v5808_v3, %v856_v58  ;;  %v700_v50 = vshll.u32 %v6058_v41, 16  ;;  %v822_v58 = vsel %vm789_vm3, %v820_v46, %v821_v47  ;;  %v698_v60 = vshrl.u32 %v6058_v41, 16 }
  0x96   : > { %1027 = vrot.lane.b32.xlu0 %v5984_v29, %s5707_s19  ;;  %v1146_v39 = vsel %vm1144_vm7, %v1113_v32, %v888_v57  ;;  %v823_v21 = vrot.slane %v6058_v41, 1 }
  0x97   : > { %v922_v5 = vpop.permute.xlu1 %921  ;;  %v702_v61 = vrot.slane %v700_v50, 1 }
  0x98   : > { %v920_v8 = vpop.permute.xlu0 %919 }
  0x99   : > { %1061 = vrot.lane.b32.xlu1 %v6021_v63, %s5710_s9 }
  0x9a   : > { %1059 = vrot.lane.b32.xlu0 %v672_v45, %s5710_s9 }
  0x9b   : > { %v6031_v11 = vpop.permute.xlu1 %1017 }
  0x9c   : > { %v1016_v15 = vpop.permute.xlu0 %1015 }
  0x9d   : > { %1093 = vrot.lane.b32.xlu1 %v6029_v9, %s5711_s10 }
  0x9e   : > { %1091 = vrot.lane.b32.xlu0 %v816_v51, %s5711_s10 }
  0x9f   : > { %v890_v17 = vpop.permute.xlu1 %889 }
  0xa0   : > { %v984_v22 = vpop.permute.xlu0 %983 }
  0xa1   : > { %873 = vrot.lane.b32.xlu1 %v6021_v63, %s5705_s15 }
  0xa2   : > { %871 = vrot.lane.b32.xlu0 %v672_v45, %s5705_s15 }
  0xa3   : > { %v986_v26 = vpop.permute.xlu1 %985 }
  0xa4   : > { %v858_v33 = vpop.permute.xlu0 %857 }
  0xa5   : > { %v1115_v34 = vsel %vm1111_vm6, %v5844_v31, %v858_v33  ;;  %905 = vrot.lane.b32.xlu1 %v6029_v9, %s5704_s14  ;;  %v1179_v31 = vsel %vm1177_vm8, %v1146_v39, %v920_v8  ;;  %v559_v39 = vsel %vm5801_vm2, %v461_v16, 0 }
  0xa6   : > { %v1148_v35 = vsel %vm1144_vm7, %v1115_v34, %v890_v17  ;;  %903 = vrot.lane.b32.xlu0 %v816_v51, %s5704_s14  ;;  %v462_v17 = vshll.u32 %v5581_v55, 16  ;;  %v466_v34 = vshrl.u32 %v5582_v25, 16  ;;  %v717_v46 = vshll.u32 %v559_v39, 16 }
  0xa7   : > { %v954_v40 = vpop.permute.xlu1 %953  ;;  %v1181_v42 = vsel %vm1177_vm8, %v1148_v35, %v922_v5 }
  0xa8   : > { %v952_v43 = vpop.permute.xlu0 %951  ;;  %v1214_v51 = vsel %vm1210_vm9, %v1181_v42, %v954_v40  ;;  %v464_v24 = vor.u32 %v462_v17, %v461_v16  ;;  %v468_v40 = vrot.slane %v466_v34, 7 }
  0xa9   : > { %v1212_v45 = vsel %vm1210_vm9, %v1179_v31, %v952_v43  ;;  %937 = vrot.lane.b32.xlu1 %v6035_v13, %s5706_s16  ;;  %v1247_v59 = vsel %vm1243_vm10, %v1214_v51, %v986_v26  ;;  %v469_v31 = vshll.u32 %v5582_v25, 16 }
  0xaa   : > { %v1245_v48 = vsel %vm1243_vm10, %v1212_v45, %v984_v22  ;;  %935 = vrot.lane.b32.xlu0 %v5998_v44, %s5706_s16  ;;  %v1280_v7 = vsel %vm1276_vm11, %v1247_v59, %v6031_v11  ;;  %v824_v22 = vrot.slane %v558_v54, 1  ;;  %v6109_v33 = vsel %vm5801_vm2, 0, %v464_v24 }
  0xab   : > { %v1050_v52 = vpop.permute.xlu1 %1049  ;;  %v1278_v57 = vsel %vm1276_vm11, %v1245_v48, %v1016_v15  ;;  %v712_v36 = vshll.u32 %v6109_v33, 16  ;;  %v710_v43 = vshrl.u32 %v6109_v33, 16  ;;  %v471_v48 = vor.u32 %v469_v31, %v468_v40 }
  0xac   : > { %v1048_v56 = vpop.permute.xlu0 %1047  ;;  %v1313_v19 = vsel %vm1309_vm12, %v1280_v7, %v1050_v52  ;;  %v6105_v27 = vsel %vm789_vm3, %v823_v21, %v824_v22  ;;  %v719_v52 = vrot.slane %v717_v46, 1  ;;  %v827_v59 = vrot.slane %v559_v39, 1  ;;  %v5583_v7 = vld [vmem:[%s5822_s13 + $0x68] sm:$0xff]  }
  0xad   : > { %969 = vrot.lane.b32.xlu1 %v696_v49, %s5709_s29  ;;  %v1311_v5 = vsel %vm1309_vm12, %v1278_v57, %v1048_v56  ;;  %v714_v45 = vrot.slane %v712_v36, 1  ;;  %v6125_v55 = vsel %vm5801_vm2, 0, %v471_v48  ;;  %v826_v57 = vrot.slane %v6109_v33, 1 }
  0xae   : > { %967 = vrot.lane.b32.xlu0 %v6021_v63, %s5709_s29  ;;  %v703_v63 = vor.u32 %v702_v61, %v698_v60  ;;  %v724_v62 = vshll.u32 %v6125_v55, 16  ;;  %v722_v16 = vshrl.u32 %v6125_v55, 16  ;;  %v473_v24 = vshrl.u32 %v5583_v7, 16 }
  0xaf   : > { %v6082_v0 = vpop.permute.xlu1 %859  ;;  %v715_v51 = vor.u32 %v714_v45, %v710_v43  ;;  %v476_v39 = vshll.u32 %v5583_v7, 16  ;;  %v5584_v43 = vld [vmem:[%s5822_s13 + $0x70] sm:$0xff]  }
  0xb0   : > { %v1080_v6 = vpop.permute.xlu0 %1079 }
  0xb1   : > { %1001 = vrot.lane.b32.xlu1 %v822_v58, %s5708_s28  ;;  %v1344_v8 = vsel %vm1342_vm13, %v1311_v5, %v1080_v6  ;;  %v720_v61 = vsel %vm564_vm4, %v715_v51, %v719_v52  ;;  %v560_v6 = vsel %vm5801_vm2, %v468_v40, 0 }
  0xb2   : > { %999 = vrot.lane.b32.xlu0 %v6029_v9, %s5708_s28  ;;  %5425 = vmatprep.mubr.msk.bf16.mxu0 %vm1402_vm14, %v1344_v8  ;;  %v708_v9 = vsel %vm564_vm4, %v703_v63, %v707_v14 }
  0xb3   : > { %v862_v15 = vpop.permute.xlu1 %861 }
  0xb4   : > { %v1082_v20 = vpop.permute.xlu0 %1081  ;;  %v1119_v56 = vsel %vm1111_vm6, %v5854_v37, %v862_v15  ;;  %v828_v15 = vsel %vm789_vm3, %v826_v57, %v827_v59  ;;  %v483_v57 = vshll.u32 %v5584_v43, 16 }
  0xb5   : > { %v1346_v11 = vsel %vm1342_vm13, %v1313_v19, %v1082_v20  ;;  %1033 = vrot.lane.b32.xlu1 %v6058_v41, %s5707_s19  ;;  %v726_v20 = vrot.slane %v724_v62, 1 }
  0xb6   : > { %1031 = vrot.lane.b32.xlu0 %v6035_v13, %s5707_s19  ;;  %5426 = vmatmul.mubr.msk.bf16.vlgmr.msra.gmra.mrb[0].mxu0 %vm1402_vm14, %v1346_v11  ;;  %v729_v11 = vshll.u32 %v560_v6, 16 }
  0xb7   : > { %v894_v23 = vpop.permute.xlu1 %893 }
  0xb8   : > { %v892_v26 = vpop.permute.xlu0 %891  ;;  %v1152_v60 = vsel %vm1144_vm7, %v1119_v56, %v894_v23 }
  0xb9   : > { %1065 = vrot.lane.b32.xlu1 %v708_v9, %s5710_s9 }
  0xba   : > { %1063 = vrot.lane.b32.xlu0 %v696_v49, %s5710_s9 }
  0xbb   : > { %v926_v32 = vpop.permute.xlu1 %925 }
  0xbc   : > { %v924_v35 = vpop.permute.xlu0 %923  ;;  %v1185_v4 = vsel %vm1177_vm8, %v1152_v60, %v926_v32 }
  0xbd   : > { %1097 = vrot.lane.b32.xlu1 %v6105_v27, %s5711_s10 }
  0xbe   : > { %1095 = vrot.lane.b32.xlu0 %v822_v58, %s5711_s10 }
  0xbf   : > { %v958_v38 = vpop.permute.xlu1 %957 }
  0xc0   : > { %v956_v42 = vpop.permute.xlu0 %955 }
  0xc1   : > { %877 = vrot.lane.b32.xlu1 %v708_v9, %s5705_s15 }
  0xc2   : > { %875 = vrot.lane.b32.xlu0 %v696_v49, %s5705_s15 }
  0xc3   : > { %v990_v47 = vpop.permute.xlu1 %989 }
  0xc4   : > { %v988_v50 = vpop.permute.xlu0 %987 }
  0xc5   : > { %909 = vrot.lane.b32.xlu1 %v6105_v27, %s5704_s14 }
  0xc6   : > { %907 = vrot.lane.b32.xlu0 %v822_v58, %s5704_s14  ;;  %v1117_v58 = vsel %vm1111_vm6, %v5838_v30, %v6082_v0  ;;  %v1218_v0 = vsel %vm1210_vm9, %v1185_v4, %v958_v38  ;;  %v475_v38 = vrot.slane %v473_v24, 7 }
  0xc7   : > { %v1022_v54 = vpop.permute.xlu1 %1021  ;;  %v1150_v37 = vsel %vm1144_vm7, %v1117_v58, %v892_v26  ;;  %v1251_v14 = vsel %vm1243_vm10, %v1218_v0, %v990_v47 }
  0xc8   : > { %v1020_v49 = vpop.permute.xlu0 %1019  ;;  %v1183_v30 = vsel %vm1177_vm8, %v1150_v37, %v924_v35  ;;  %v1284_v19 = vsel %vm1276_vm11, %v1251_v14, %v1022_v54  ;;  %v731_v35 = vrot.slane %v729_v11, 1  ;;  %v478_v46 = vor.u32 %v476_v39, %v475_v38 }
  0xc9   : > { %941 = vrot.lane.b32.xlu1 %v6109_v33, %s5706_s16  ;;  %v1216_v63 = vsel %vm1210_vm9, %v1183_v30, %v956_v42  ;;  %v830_v42 = vrot.slane %v560_v6, 1  ;;  %v561_v58 = vsel %vm5801_vm2, %v475_v38, 0 }
  0xca   : > { %939 = vrot.lane.b32.xlu0 %v6058_v41, %s5706_s16  ;;  %v1249_v17 = vsel %vm1243_vm10, %v1216_v63, %v988_v50  ;;  %v480_v50 = vshrl.u32 %v5584_v43, 16  ;;  %v6182_v52 = vsel %vm5801_vm2, 0, %v478_v46  ;;  %v741_v4 = vshll.u32 %v561_v58, 16 }
  0xcb   : > { %v1054_v5 = vpop.permute.xlu1 %1053  ;;  %v1282_v21 = vsel %vm1276_vm11, %v1249_v17, %v1020_v49  ;;  %v736_v49 = vshll.u32 %v6182_v52, 16  ;;  %v734_v62 = vshrl.u32 %v6182_v52, 16  ;;  %v832_v14 = vrot.slane %v6182_v52, 1 }
  0xcc   : > { %v1052_v8 = vpop.permute.xlu0 %1051  ;;  %v1317_v22 = vsel %vm1309_vm12, %v1284_v19, %v1054_v5  ;;  %v482_v56 = vrot.slane %v480_v50, 7  ;;  %v743_v0 = vrot.slane %v741_v4, 1 }
  0xcd   : > { %973 = vrot.lane.b32.xlu1 %v720_v61, %s5709_s29  ;;  %v1315_v25 = vsel %vm1309_vm12, %v1282_v21, %v1052_v8  ;;  %v738_v37 = vrot.slane %v736_v49, 1  ;;  %v5585_v21 = vld [vmem:[%s5822_s13 + $0x78] sm:$0xff]   ;;  %s5712_s13 = smov 64  }
  0xce   : > { %971 = vrot.lane.b32.xlu0 %v708_v9, %s5709_s29  ;;  %v727_v9 = vor.u32 %v726_v20, %v722_v16  ;;  %v485_v5 = vor.u32 %v483_v57, %v482_v56  ;;  %v833_v16 = vrot.slane %v561_v58, 1  ;;  %v562_v24 = vsel %vm5801_vm2, %v482_v56, 0 }
  0xcf   : > { %v1086_v23 = vpop.permute.xlu1 %1085  ;;  %v739_v30 = vor.u32 %v738_v37, %v734_v62  ;;  %v490_v56 = vshll.u32 %v5585_v21, 16 }
  0xd0   : > { %v1350_v26 = vsel %vm1342_vm13, %v1317_v22, %v1086_v23  ;;  %v1084_v32 = vpop.permute.xlu0 %1083  ;;  %v6170_v31 = vsel %vm564_vm4, %v727_v9, %v731_v35  ;;  %v6199_v8 = vsel %vm5801_vm2, 0, %v485_v5 }
  0xd1   : > { %v1348_v34 = vsel %vm1342_vm13, %v1315_v25, %v1084_v32  ;;  %1005 = vrot.lane.b32.xlu1 %v828_v15, %s5708_s28  ;;  %v748_v19 = vshll.u32 %v6199_v8, 16  ;;  %v744_v11 = vsel %vm564_vm4, %v739_v30, %v743_v0  ;;  %v834_v32 = vsel %vm789_vm3, %v832_v14, %v833_v16 }
  0xd2   : > { %1003 = vrot.lane.b32.xlu0 %v6105_v27, %s5708_s28  ;;  %5429 = vmatprep.mubr.msk.bf16.mxu0 %vm1402_vm14, %v1348_v34  ;;  %v829_v27 = vrot.slane %v6125_v55, 1  ;;  %v746_v35 = vshrl.u32 %v6199_v8, 16 }
  0xd3   : > { %5430 = vmatmul.mubr.msk.bf16.gmra.mrb[4].mxu0 %vm1402_vm14, %v1350_v26  ;;  %v866_v36 = vpop.permute.xlu1 %865 }
  0xd4   : > { %v864_v40 = vpop.permute.xlu0 %863  ;;  %v6178_v48 = vsel %vm789_vm3, %v829_v27, %v830_v42  ;;  %v1123_v17 = vsel %vm1111_vm6, %v5910_v28, %v866_v36  ;;  %v750_v36 = vrot.slane %v748_v19, 1  ;;  %v487_v27 = vshrl.u32 %v5585_v21, 16 }
  0xd5   : > { %1037 = vrot.lane.b32.xlu1 %v6125_v55, %s5707_s19 }
  0xd6   : > { %1035 = vrot.lane.b32.xlu0 %v6109_v33, %s5707_s19  ;;  %v489_v49 = vrot.slane %v487_v27, 7 }
  0xd7   : > { %v898_v45 = vpop.permute.xlu1 %897 }
  0xd8   : > { %v896_v47 = vpop.permute.xlu0 %895  ;;  %v1156_v20 = vsel %vm1144_vm7, %v1123_v17, %v898_v45  ;;  %v492_v62 = vor.u32 %v490_v56, %v489_v49 }
  0xd9   : > { %1069 = vrot.lane.b32.xlu1 %v6170_v31, %s5710_s9 }
  0xda   : > { %1067 = vrot.lane.b32.xlu0 %v720_v61, %s5710_s9 }
  0xdb   : > { %v930_v51 = vpop.permute.xlu1 %929 }
  0xdc   : > { %v928_v54 = vpop.permute.xlu0 %927  ;;  %v1189_v28 = vsel %vm1177_vm8, %v1156_v20, %v930_v51 }
  0xdd   : > { %1101 = vrot.lane.b32.xlu1 %v6178_v48, %s5711_s10 }
  0xde   : > { %1099 = vrot.lane.b32.xlu0 %v828_v15, %s5711_s10 }
  0xdf   : > { %v962_v59 = vpop.permute.xlu1 %961 }
  0xe0   : > { %v960_v60 = vpop.permute.xlu0 %959 }
  0xe1   : > { %881 = vrot.lane.b32.xlu1 %v6170_v31, %s5705_s15 }
  0xe2   : > { %879 = vrot.lane.b32.xlu0 %v720_v61, %s5705_s15 }
  0xe3   : > { %v994_v6 = vpop.permute.xlu1 %993 }
  0xe4   : > { %v992_v7 = vpop.permute.xlu0 %991 }
  0xe5   : > { %913 = vrot.lane.b32.xlu1 %v6178_v48, %s5704_s14 }
  0xe6   : > { %911 = vrot.lane.b32.xlu0 %v828_v15, %s5704_s14  ;;  %v1121_v15 = vsel %vm1111_vm6, %v5892_v12, %v864_v40  ;;  %v1222_v12 = vsel %vm1210_vm9, %v1189_v28, %v962_v59  ;;  %v753_v40 = vshll.u32 %v562_v24, 16 }
  0xe7   : > { %v1026_v61 = vpop.permute.xlu1 %1025  ;;  %v1154_v22 = vsel %vm1144_vm7, %v1121_v15, %v896_v47  ;;  %v1255_v9 = vsel %vm1243_vm10, %v1222_v12, %v994_v6  ;;  %v546_v6 = vsel %vm5801_vm2, 0, %v492_v62 }
  0xe8   : > { %v1024_v63 = vpop.permute.xlu0 %1023  ;;  %v1187_v25 = vsel %vm1177_vm8, %v1154_v22, %v928_v54  ;;  %v1288_v39 = vsel %vm1276_vm11, %v1255_v9, %v1026_v61  ;;  %v755_v54 = vrot.slane %v753_v40, 1  ;;  %v841_v0 = vshll.u32 %v546_v6, 16 }
  0xe9   : > { %945 = vrot.lane.b32.xlu1 %v6182_v52, %s5706_s16  ;;  %v1220_v34 = vsel %vm1210_vm9, %v1187_v25, %v960_v60  ;;  %v836_v60 = vrot.slane %v562_v24, 1  ;;  %v563_v61 = vsel %vm5801_vm2, %v489_v49, 0  ;;  %v839_v16 = vshrl.u32 %v546_v6, 16 }
  0xea   : > { %943 = vrot.lane.b32.xlu0 %v6125_v55, %s5706_s16  ;;  %v1253_v38 = vsel %vm1243_vm10, %v1220_v34, %v992_v7  ;;  %v843_v17 = vrot.slane %v841_v0, 1  ;;  %v846_v19 = vshll.u32 %v563_v61, 16  ;;  %v853_v34 = vrot.slane %v563_v61, 1 }
  0xeb   : > { %v1058_v23 = vpop.permute.xlu1 %1057  ;;  %v1286_v42 = vsel %vm1276_vm11, %v1253_v38, %v1024_v63 }
  0xec   : > { %v1056_v26 = vpop.permute.xlu0 %1055  ;;  %v1321_v43 = vsel %vm1309_vm12, %v1288_v39, %v1058_v23  ;;  %v844_v21 = vor.u32 %v843_v17, %v839_v16  ;;  %v848_v22 = vrot.slane %v846_v19, 1 }
  0xed   : > { %977 = vrot.lane.b32.xlu1 %v744_v11, %s5709_s29  ;;  %v1319_v46 = vsel %vm1309_vm12, %v1286_v42, %v1056_v26  ;;  %v852_v26 = vrot.slane %v546_v6, 1 }
  0xee   : > { %975 = vrot.lane.b32.xlu0 %v6170_v31, %s5709_s29  ;;  %v751_v31 = vor.u32 %v750_v36, %v746_v35  ;;  %v849_v25 = vsel %vm564_vm4, %v844_v21, %v848_v22 }
  0xef   : > { %v1090_v45 = vpop.permute.xlu1 %1089  ;;  %v854_v42 = vsel %vm789_vm3, %v852_v26, %v853_v34 }
  0xf0   : > { %v1354_v47 = vsel %vm1342_vm13, %v1321_v43, %v1090_v45  ;;  %v1088_v50 = vpop.permute.xlu0 %1087  ;;  %v756_v58 = vsel %vm564_vm4, %v751_v31, %v755_v54 }
  0xf1   : > { %v1352_v51 = vsel %vm1342_vm13, %v1319_v46, %v1088_v50  ;;  %1009 = vrot.lane.b32.xlu1 %v834_v32, %s5708_s28 }
  0xf2   : > { %1007 = vrot.lane.b32.xlu0 %v6178_v48, %s5708_s28  ;;  %5433 = vmatprep.mubr.msk.bf16.mxu0 %vm1402_vm14, %v1352_v51  ;;  %v835_v48 = vrot.slane %v6199_v8, 1 }
  0xf3   : > { %5434 = vmatmul.mubr.msk.bf16.gmra.mrb[8].mxu0 %vm1402_vm14, %v1354_v47  ;;  %v870_v57 = vpop.permute.xlu1 %869 }
  0xf4   : > { %v868_v59 = vpop.permute.xlu0 %867  ;;  %v837_v5 = vsel %vm789_vm3, %v835_v48, %v836_v60  ;;  %v1127_v24 = vsel %vm1111_vm6, %v5954_v1, %v870_v57 }
  0xf5   : > { %1041 = vrot.lane.b32.xlu1 %v6199_v8, %s5707_s19 }
  0xf6   : > { %1039 = vrot.lane.b32.xlu0 %v6182_v52, %s5707_s19 }
  0xf7   : > { %v902_v37 = vpop.permute.xlu1 %901 }
  0xf8   : > { %v900_v4 = vpop.permute.xlu0 %899  ;;  %v1160_v12 = vsel %vm1144_vm7, %v1127_v24, %v902_v37 }
  0xf9   : > { %1073 = vrot.lane.b32.xlu1 %v756_v58, %s5710_s9 }
  0xfa   : > { %1071 = vrot.lane.b32.xlu0 %v744_v11, %s5710_s9 }
  0xfb   : > { %v934_v7 = vpop.permute.xlu1 %933 }
  0xfc   : > { %v932_v30 = vpop.permute.xlu0 %931  ;;  %v1193_v9 = vsel %vm1177_vm8, %v1160_v12, %v934_v7 }
  0xfd   : > { %1105 = vrot.lane.b32.xlu1 %v837_v5, %s5711_s10 }
  0xfe   : > { %1103 = vrot.lane.b32.xlu0 %v834_v32, %s5711_s10 }
  0xff   : > { %v966_v63 = vpop.permute.xlu1 %965 }
 0x100   : > { %v964_v14 = vpop.permute.xlu0 %963  ;;  %v1226_v36 = vsel %vm1210_vm9, %v1193_v9, %v966_v63 }
 0x101   : > { %885 = vrot.lane.b32.xlu1 %v756_v58, %s5705_s15 }
 0x102   : > { %883 = vrot.lane.b32.xlu0 %v744_v11, %s5705_s15  ;;  %v1125_v11 = vsel %vm1111_vm6, %v5940_v53, %v868_v59 }
 0x103   : > { %v998_v15 = vpop.permute.xlu1 %997 }
 0x104   : > { %v996_v20 = vpop.permute.xlu0 %995  ;;  %v1259_v53 = vsel %vm1243_vm10, %v1226_v36, %v998_v15 }
 0x105   : > { %917 = vrot.lane.b32.xlu1 %v837_v5, %s5704_s14 }
 0x106   : > { %915 = vrot.lane.b32.xlu0 %v834_v32, %s5704_s14  ;;  %v1158_v32 = vsel %vm1144_vm7, %v1125_v11, %v900_v4 }
 0x107   : > { %v1030_v28 = vpop.permute.xlu1 %1029  ;;  %v1191_v1 = vsel %vm1177_vm8, %v1158_v32, %v932_v30 }
 0x108   : > { %v1028_v23 = vpop.permute.xlu0 %1027  ;;  %v1224_v39 = vsel %vm1210_vm9, %v1191_v1, %v964_v14  ;;  %v1292_v27 = vsel %vm1276_vm11, %v1259_v53, %v1030_v28 }
 0x109   : > { %949 = vrot.lane.b32.xlu1 %v546_v6, %s5706_s16  ;;  %v1257_v40 = vsel %vm1243_vm10, %v1224_v39, %v996_v20 }
 0x10a   : > { %947 = vrot.lane.b32.xlu0 %v6199_v8, %s5706_s16  ;;  %v1290_v43 = vsel %vm1276_vm11, %v1257_v40, %v1028_v23 }
 0x10b   : > { %v1062_v35 = vpop.permute.xlu1 %1061 }
 0x10c   : > { %v1060_v38 = vpop.permute.xlu0 %1059  ;;  %v1325_v45 = vsel %vm1309_vm12, %v1292_v27, %v1062_v35 }
 0x10d   : > { %981 = vrot.lane.b32.xlu1 %v849_v25, %s5709_s29  ;;  %v1323_v47 = vsel %vm1309_vm12, %v1290_v43, %v1060_v38 }
 0x10e   : > { %979 = vrot.lane.b32.xlu0 %v756_v58, %s5709_s29 }
 0x10f   : > { %v1094_v46 = vpop.permute.xlu1 %1093 }
 0x110   : > { %v1358_v50 = vsel %vm1342_vm13, %v1325_v45, %v1094_v46  ;;  %v1092_v51 = vpop.permute.xlu0 %1091 }
 0x111   : > { %v1356_v31 = vsel %vm1342_vm13, %v1323_v47, %v1092_v51  ;;  %1013 = vrot.lane.b32.xlu1 %v854_v42, %s5708_s28 }
 0x112   : > { %1011 = vrot.lane.b32.xlu0 %v837_v5, %s5708_s28  ;;  %5437 = vmatprep.mubr.msk.bf16.mxu0 %vm1402_vm14, %v1356_v31 }
 0x113   : > { %5438 = vmatmul.mubr.msk.bf16.gmra.mrb[12].mxu0 %vm1402_vm14, %v1358_v50  ;;  %v874_v54 = vpop.permute.xlu1 %873 }
 0x114   : > { %v872_v49 = vpop.permute.xlu0 %871 }
 0x115   : > { %1045 = vrot.lane.b32.xlu1 %v5808_v3, %s5707_s19  ;;  %v1129_v7 = vsel %vm1111_vm6, %v5984_v29, %v872_v49 }
 0x116   : > { %1043 = vrot.lane.b32.xlu0 %v546_v6, %s5707_s19  ;;  %v1131_v6 = vsel %vm1111_vm6, %v5998_v44, %v874_v54 }
 0x117   : > { %v906_v56 = vpop.permute.xlu1 %905 }
 0x118   : > { %v904_v57 = vpop.permute.xlu0 %903  ;;  %v1164_v30 = vsel %vm1144_vm7, %v1131_v6, %v906_v56 }
 0x119   : > { %1077 = vrot.lane.b32.xlu1 %v5829_v18, %s5710_s9  ;;  %v1162_v0 = vsel %vm1144_vm7, %v1129_v7, %v904_v57 }
 0x11a   : > { %1075 = vrot.lane.b32.xlu0 %v849_v25, %s5710_s9 }
 0x11b   : > { %v938_v59 = vpop.permute.xlu1 %937 }
 0x11c   : > { %v936_v58 = vpop.permute.xlu0 %935  ;;  %v1197_v61 = vsel %vm1177_vm8, %v1164_v30, %v938_v59 }
 0x11d   : > { %1109 = vrot.lane.b32.xlu1 %v5817_v10, %s5711_s10  ;;  %v1195_v14 = vsel %vm1177_vm8, %v1162_v0, %v936_v58 }
 0x11e   : > { %1107 = vrot.lane.b32.xlu0 %v854_v42, %s5711_s10 }
 0x11f   : > { %v970_v48 = vpop.permute.xlu1 %969 }
 0x120   : > { %v968_v60 = vpop.permute.xlu0 %967  ;;  %v1230_v16 = vsel %vm1210_vm9, %v1197_v61, %v970_v48 }
 0x121   : > { %2096 = vrot.lane.b32.xlu1 %v5829_v18, %s5711_s10  ;;  %v1228_v19 = vsel %vm1210_vm9, %v1195_v14, %v968_v60 }
 0x123   : > { %v1002_v62 = vpop.permute.xlu1 %1001 }
 0x124   : > { %v1000_v37 = vpop.permute.xlu0 %999  ;;  %v1263_v15 = vsel %vm1243_vm10, %v1230_v16, %v1002_v62 }
 0x125   : > { %2128 = vrot.lane.b32.xlu1 %v5817_v10, %s5712_s13  ;;  %v1261_v44 = vsel %vm1243_vm10, %v1228_v19, %v1000_v37 }
 0x127   : > { %v1034_v4 = vpop.permute.xlu1 %1033 }
 0x128   : > { %v1032_v5 = vpop.permute.xlu0 %1031  ;;  %v1296_v29 = vsel %vm1276_vm11, %v1263_v15, %v1034_v4 }
 0x129   : > { %v1294_v20 = vsel %vm1276_vm11, %v1261_v44, %v1032_v5 }
 0x12b   : > { %v1066_v63 = vpop.permute.xlu1 %1065 }
 0x12c   : > { %v1064_v17 = vpop.permute.xlu0 %1063  ;;  %v1329_v21 = vsel %vm1309_vm12, %v1296_v29, %v1066_v63 }
 0x12d   : > { %v1327_v28 = vsel %vm1309_vm12, %v1294_v20, %v1064_v17 }
 0x12f   : > { %v1098_v22 = vpop.permute.xlu1 %1097 }
 0x130   : > { %v1362_v23 = vsel %vm1342_vm13, %v1329_v21, %v1098_v22  ;;  %v1096_v24 = vpop.permute.xlu0 %1095 }
 0x131   : > { %v1360_v25 = vsel %vm1342_vm13, %v1327_v28, %v1096_v24 }
 0x132   : > { %5441 = vmatprep.mubr.msk.bf16.mxu0 %vm1402_vm14, %v1360_v25 }
 0x133   : > { %5442 = vmatmul.mubr.msk.bf16.gmra.mrb[16].mxu0 %vm1402_vm14, %v1362_v23  ;;  %v878_v11 = vpop.permute.xlu1 %877 }
 0x134   : > { %v876_v12 = vpop.permute.xlu0 %875  ;;  %v1135_v40 = vsel %vm1111_vm6, %v6058_v41, %v878_v11 }
 0x135   : > { %v1133_v27 = vsel %vm1111_vm6, %v6035_v13, %v876_v12 }
 0x137   : > { %v910_v26 = vpop.permute.xlu1 %909 }
 0x138   : > { %v908_v34 = vpop.permute.xlu0 %907  ;;  %v1168_v42 = vsel %vm1144_vm7, %v1135_v40, %v910_v26  ;;  %v5588_v40 = vld [vmem:[%s8177_s3 + $0x48] sm:$0xff]  }
 0x139   : > { %v1166_v43 = vsel %vm1144_vm7, %v1133_v27, %v908_v34 }
 0x13b   : > { %v942_v32 = vpop.permute.xlu1 %941 }
 0x13c   : > { %v940_v9 = vpop.permute.xlu0 %939  ;;  %v1201_v45 = vsel %vm1177_vm8, %v1168_v42, %v942_v32 }
 0x13d   : > { %v1199_v47 = vsel %vm1177_vm8, %v1166_v43, %v940_v9  ;;  %v5589_v43 = vld [vmem:[%s8177_s3 + $0x8] sm:$0xff]  }
 0x13f   : > { %v974_v35 = vpop.permute.xlu1 %973 }
 0x140   : > { %v972_v1 = vpop.permute.xlu0 %971  ;;  %v1234_v50 = vsel %vm1210_vm9, %v1201_v45, %v974_v35  ;;  %v5590_v45 = vld [vmem:[%s8177_s3 + $0x50] sm:$0xff]  }
 0x141   : > { %v1232_v31 = vsel %vm1210_vm9, %v1199_v47, %v972_v1 }
 0x143   : > { %v1006_v36 = vpop.permute.xlu1 %1005 }
 0x144   : > { %v1004_v38 = vpop.permute.xlu0 %1003  ;;  %v1267_v54 = vsel %vm1243_vm10, %v1234_v50, %v1006_v36  ;;  %v5586_v36 = vld [vmem:[%s8177_s3 + $0x40] sm:$0xff]   ;;  %v5591_v50 = vld [vmem:[%s8177_s3 + $0x10] sm:$0xff]  }
 0x145   : > { %v1265_v41 = vsel %vm1243_vm10, %v1232_v31, %v1004_v38  ;;  %5289 = vmatprep.subr.bf16.mxu0 %v5586_v36  ;;  %5493 = vmatprep.subr.bf16.mxu1 %v5586_v36 }
 0x147   : > { %v1038_v39 = vpop.permute.xlu1 %1037 }
 0x148   : > { %v1036_v53 = vpop.permute.xlu0 %1035  ;;  %v1300_v13 = vsel %vm1276_vm11, %v1267_v54, %v1038_v39 }
 0x149   : > { %v1298_v49 = vsel %vm1276_vm11, %v1265_v41, %v1036_v53  ;;  %v5587_v53 = vld [vmem:[%s8177_s3] sm:$0xff]   ;;  %v5593_v41 = vld [vmem:[%s8177_s3 + $0x18] sm:$0xff]  }
 0x14a   : > { %5290 = vmatpush3.bf16.msra.mxu0 %v5587_v53  ;;  %5501 = vmatpush3.bf16.msra.mxu1 %v5587_v53  ;;  %v5600_v53 = vld [vmem:[%s8177_s3 + $0x78] sm:$0xff]  }
 0x14b   : > { %v1070_v46 = vpop.permute.xlu1 %1069  ;;  %5291 = vmatprep.subr.bf16.mxu0 %v5588_v40  ;;  %5494 = vmatprep.subr.bf16.mxu1 %v5588_v40 }
 0x14c   : > { %v1068_v51 = vpop.permute.xlu0 %1067  ;;  %v1333_v56 = vsel %vm1309_vm12, %v1300_v13, %v1070_v46 }
 0x14d   : > { %v1331_v59 = vsel %vm1309_vm12, %v1298_v49, %v1068_v51  ;;  %v5592_v51 = vld [vmem:[%s8177_s3 + $0x58] sm:$0xff]   ;;  %v6387_v49 = vld [vmem:[%s8176_s2] ss:$0 sm:$0xff] }
 0x14e   : > { %5292 = vmatpush3.bf16.msra.mxu0 %v5589_v43  ;;  %5502 = vmatpush3.bf16.msra.mxu1 %v5589_v43 }
 0x14f   : > { %v1102_v57 = vpop.permute.xlu1 %1101  ;;  %5293 = vmatprep.subr.bf16.mxu0 %v5590_v45  ;;  %5495 = vmatprep.subr.bf16.mxu1 %v5590_v45  ;;  %v5601_v45 = vld [vmem:[%s8177_s3 + $0x38] sm:$0xff]  }
 0x150   : > { %v1366_v58 = vsel %vm1342_vm13, %v1333_v56, %v1102_v57  ;;  %v1100_v48 = vpop.permute.xlu0 %1099 }
 0x151   : > { %v1364_v60 = vsel %vm1342_vm13, %v1331_v59, %v1100_v48 }
 0x152   : > { %5445 = vmatprep.mubr.msk.bf16.mxu0 %vm1402_vm14, %v1364_v60  ;;  %5294 = vmatpush3.bf16.msra.mxu0 %v5591_v50 }
 0x153   : > { %5446 = vmatmul.mubr.msk.bf16.gmra.mrb[20].mxu0 %vm1402_vm14, %v1366_v58  ;;  %v882_v62 = vpop.permute.xlu1 %881  ;;  %5503 = vmatpush3.bf16.msra.mxu1 %v5591_v50  ;;  %v5594_v58 = vld [vmem:[%s8177_s3 + $0x60] sm:$0xff]  }
 0x154   : > { %v880_v37 = vpop.permute.xlu0 %879  ;;  %v1139_v17 = vsel %vm1111_vm6, %v6125_v55, %v882_v62  ;;  %5295 = vmatprep.subr.bf16.mxu0 %v5592_v51  ;;  %5496 = vmatprep.subr.bf16.mxu1 %v5592_v51 }
 0x155   : > { %v1137_v19 = vsel %vm1111_vm6, %v6109_v33, %v880_v37 }
 0x156   : > { %5296 = vmatpush3.bf16.msra.mxu0 %v5593_v41 }
 0x157   : > { %v914_v4 = vpop.permute.xlu1 %913  ;;  %5504 = vmatpush3.bf16.msra.mxu1 %v5593_v41  ;;  %5297 = vmatprep.subr.bf16.mxu0 %v5594_v58  ;;  %v6456_v41 = vld [vmem:[%s8177_s3 + $0x80] sm:$0xff]  }
 0x158   : > { %v912_v5 = vpop.permute.xlu0 %911  ;;  %v1172_v15 = vsel %vm1144_vm7, %v1139_v17, %v914_v4  ;;  %v5595_v4 = vld [vmem:[%s8177_s3 + $0x20] sm:$0xff]   ;;  %5497 = vmatprep.subr.bf16.mxu1 %v5594_v58 }
 0x159   : > { %v1170_v44 = vsel %vm1144_vm7, %v1137_v19, %v912_v5 }
 0x15a   : > { %5298 = vmatpush3.bf16.msra.mxu0 %v5595_v4 }
 0x15b   : > { %v946_v6 = vpop.permute.xlu1 %945  ;;  %5505 = vmatpush3.bf16.msra.mxu1 %v5595_v4 }
 0x15c   : > { %v944_v7 = vpop.permute.xlu0 %943  ;;  %v1205_v29 = vsel %vm1177_vm8, %v1172_v15, %v946_v6  ;;  %v5596_v15 = vld [vmem:[%s8177_s3 + $0x68] sm:$0xff]  }
 0x15d   : > { %v1203_v21 = vsel %vm1177_vm8, %v1170_v44, %v944_v7  ;;  %5299 = vmatprep.subr.bf16.mxu0 %v5596_v15  ;;  %5498 = vmatprep.subr.bf16.mxu1 %v5596_v15 }
 0x15f   : > { %v978_v30 = vpop.permute.xlu1 %977 }
 0x160   : > { %v976_v0 = vpop.permute.xlu0 %975  ;;  %v1238_v22 = vsel %vm1210_vm9, %v1205_v29, %v978_v30 }
 0x161   : > { %v1236_v23 = vsel %vm1210_vm9, %v1203_v21, %v976_v0 }
 0x163   : > { %v1010_v61 = vpop.permute.xlu1 %1009 }
 0x164   : > { %v1008_v63 = vpop.permute.xlu0 %1007  ;;  %v1271_v24 = vsel %vm1243_vm10, %v1238_v22, %v1010_v61  ;;  %v5597_v22 = vld [vmem:[%s8177_s3 + $0x28] sm:$0xff]  }
 0x165   : > { %v1269_v55 = vsel %vm1243_vm10, %v1236_v23, %v1008_v63  ;;  %5300 = vmatpush3.bf16.msra.mxu0 %v5597_v22  ;;  %5506 = vmatpush3.bf16.msra.mxu1 %v5597_v22 }
 0x167   : > { %v1042_v14 = vpop.permute.xlu1 %1041 }
 0x168   : > { %v1040_v16 = vpop.permute.xlu0 %1039  ;;  %v1304_v33 = vsel %vm1276_vm11, %v1271_v24, %v1042_v14 }
 0x169   : > { %v1302_v25 = vsel %vm1276_vm11, %v1269_v55, %v1040_v16 }
 0x16b   : > { %v1074_v20 = vpop.permute.xlu1 %1073 }
 0x16c   : > { %v1072_v28 = vpop.permute.xlu0 %1071  ;;  %v1337_v11 = vsel %vm1309_vm12, %v1304_v33, %v1074_v20 }
 0x16d   : > { %v1335_v26 = vsel %vm1309_vm12, %v1302_v25, %v1072_v28 }
 0x16f   : > { %v1106_v12 = vpop.permute.xlu1 %1105 }
 0x170   : > { %v1370_v34 = vsel %vm1342_vm13, %v1337_v11, %v1106_v12  ;;  %v1104_v32 = vpop.permute.xlu0 %1103 }
 0x171   : > { %v1368_v9 = vsel %vm1342_vm13, %v1335_v26, %v1104_v32 }
 0x172   : > { %5449 = vmatprep.mubr.msk.bf16.mxu0 %vm1402_vm14, %v1368_v9  ;;  %v5598_v9 = vld [vmem:[%s8177_s3 + $0x70] sm:$0xff]  }
 0x173   : > { %5450 = vmatmul.mubr.msk.bf16.gmra.mrb[24].mxu0 %vm1402_vm14, %v1370_v34  ;;  %v886_v35 = vpop.permute.xlu1 %885  ;;  %5301 = vmatprep.subr.bf16.mxu0 %v5598_v9 }
 0x174   : > { %v884_v1 = vpop.permute.xlu0 %883  ;;  %v1143_v57 = vsel %vm1111_vm6, %v6199_v8, %v886_v35  ;;  %5499 = vmatprep.subr.bf16.mxu1 %v5598_v9 }
 0x175   : > { %v1141_v48 = vsel %vm1111_vm6, %v6182_v52, %v884_v1  ;;  %v5599_v1 = vld [vmem:[%s8177_s3 + $0x30] sm:$0xff]   ;;  %vm4980_vm6 = vcmask 1045509  }
 0x176   : > { %5302 = vmatpush3.bf16.msra.mxu0 %v5599_v1  ;;  %5507 = vmatpush3.bf16.msra.mxu1 %v5599_v1 }
 0x177   : > { %v918_v38 = vpop.permute.xlu1 %917  ;;  %5303 = vmatprep.subr.bf16.mxu0 %v5600_v53  ;;  %5500 = vmatprep.subr.bf16.mxu1 %v5600_v53 }
 0x178   : > { %v916_v39 = vpop.permute.xlu0 %915  ;;  %v1176_v60 = vsel %vm1144_vm7, %v1143_v57, %v918_v38 }
 0x179   : > { %v1174_v5 = vsel %vm1144_vm7, %v1141_v48, %v916_v39  ;;  %vm4982_vm7 = vcmask 1046534  }
 0x17a   : > { %5304 = vmatpush3.bf16.msra.mxu0 %v5601_v45  ;;  %5508 = vmatpush3.bf16.msra.mxu1 %v5601_v45 }
 0x17b   : > { %v950_v27 = vpop.permute.xlu1 %949  ;;  %5457 = vmatprep.subr.bf16.mxu0 %v6456_v41 }
 0x17c   : > { %v948_v42 = vpop.permute.xlu0 %947  ;;  %v1209_v8 = vsel %vm1177_vm8, %v1176_v60, %v950_v27 }
 0x17d   : > { %v1207_v52 = vsel %vm1177_vm8, %v1174_v5, %v948_v42  ;;  %vm4984_vm8 = vcmask 1047559  }
 0x17f   : > { %v982_v46 = vpop.permute.xlu1 %981 }
 0x180   : > { %v980_v47 = vpop.permute.xlu0 %979  ;;  %v1242_v0 = vsel %vm1210_vm9, %v1209_v8, %v982_v46 }
 0x181   : > { %v1240_v16 = vsel %vm1210_vm9, %v1207_v52, %v980_v47 }
 0x183   : > { %v1014_v31 = vpop.permute.xlu1 %1013 }
 0x184   : > { %v1012_v54 = vpop.permute.xlu0 %1011  ;;  %v1275_v17 = vsel %vm1243_vm10, %v1242_v0, %v1014_v31 }
 0x185   : > { %v1273_v44 = vsel %vm1243_vm10, %v1240_v16, %v1012_v54 }
 0x187   : > { %v1046_v13 = vpop.permute.xlu1 %1045 }
 0x188   : > { %v1044_v56 = vpop.permute.xlu0 %1043  ;;  %v1308_v29 = vsel %vm1276_vm11, %v1275_v17, %v1046_v13 }
 0x189   : > { %v5427_v59 = vpop.f32.mrb[0].mxu0  ;;  %v1306_v28 = vsel %vm1276_vm11, %v1273_v44, %v1044_v56 }
 0x18a   : > { %v1482_v62 = vadd.f32 %v5427_v59, %v6387_v49  ;;  %v1473_v37 = vpop.f32.mrb[1].mxu0 }
 0x18b   : > { %v1474_v6 = vadd.f32 %v6387_v49, %v1473_v37  ;;  %v5428_v7 = vpop.f32.mrb[2].mxu0  ;;  %v1078_v30 = vpop.permute.xlu1 %1077 }
 0x18c   : > { %v1485_v61 = vadd.f32 %v5428_v7, %v6387_v49  ;;  %v1476_v63 = vpop.f32.mrb[3].mxu0  ;;  %v1076_v14 = vpop.permute.xlu0 %1075  ;;  %v1602_v20 = vmax.f32 %v1482_v62, 0.0  ;;  %v1341_v24 = vsel %vm1309_vm12, %v1308_v29, %v1078_v30 }
 0x18d   : > { %v1477_v19 = vadd.f32 %v6387_v49, %v1476_v63  ;;  %v1600_v23 = vmax.f32 %v1474_v6, 0.0  ;;  %v1339_v11 = vsel %vm1309_vm12, %v1306_v28, %v1076_v14 }
 0x18e   : > { %v1603_v21 = vmax.f32 %v1485_v61, 0.0 }
 0x18f   : > { %v1601_v55 = vmax.f32 %v1477_v19, 0.0  ;;  %v1110_v33 = vpop.permute.xlu1 %1109 }
 0x190   : > { %v1633_v25 = vpack.c.bf16 %v1603_v21, %v1602_v20  ;;  %v1374_v12 = vsel %vm1342_vm13, %v1341_v24, %v1110_v33  ;;  %v1108_v26 = vpop.permute.xlu0 %1107 }
 0x191   : > { %v1632_v34 = vpack.c.bf16 %v1601_v55, %v1600_v23  ;;  %v1372_v32 = vsel %vm1342_vm13, %v1339_v11, %v1108_v26 }
 0x192   : > { %v1656_v35 = vshrl.u32 %v1633_v25, 16  ;;  %5453 = vmatprep.mubr.msk.bf16.mxu0 %vm1402_vm14, %v1372_v32  ;;  %v1659_v39 = vshll.u32 %v1633_v25, 16 }
 0x193   : > { %v1649_v36 = vshrl.u32 %v1632_v34, 16  ;;  %5454 = vmatmul.mubr.msk.bf16.gmra.mrb[28].mxu0 %vm1402_vm14, %v1374_v12  ;;  %v1652_v27 = vshll.u32 %v1632_v34, 16 }
 0x194   : > { %v1658_v38 = vrot.slane %v1656_v35, 7 }
 0x195   : > { %v1651_v40 = vrot.slane %v1649_v36, 7 }
 0x196   : > { %v1661_v42 = vor.u32 %v1659_v39, %v1658_v38  ;;  %v1809_v43 = vsel %vm5801_vm2, %v1658_v38, 0 }
 0x197   : > { %v1654_v46 = vor.u32 %v1652_v27, %v1651_v40  ;;  %v2038_v31 = vrot.slane %v1809_v43, 1  ;;  %v1808_v13 = vsel %vm5801_vm2, %v1651_v40, 0  ;;  %v1844_v60 = vshll.u32 %v1809_v43, 16 }
 0x198   : > { %v6441_v47 = vsel %vm5801_vm2, 0, %v1661_v42  ;;  %v2035_v58 = vrot.slane %v1808_v13, 1  ;;  %v1832_v52 = vshll.u32 %v1808_v13, 16 }
 0x199   : > { %2162 = vrot.lane.b32.xlu1 %v6441_v47, %s5713_s11  ;;  %2224 = vrot.lane.b32.xlu0 %v6441_v47, %s5712_s13  ;;  %v6449_v50 = vsel %vm5801_vm2, 0, %v1654_v46  ;;  %v2037_v51 = vrot.slane %v6441_v47, 1  ;;  %v1839_v54 = vshll.u32 %v6441_v47, 16  ;;  %v1837_v48 = vshrl.u32 %v6441_v47, 16 }
 0x19a   : > { %v2034_v57 = vrot.slane %v6449_v50, 1  ;;  %v1827_v4 = vshll.u32 %v6449_v50, 16  ;;  %v1846_v5 = vrot.slane %v1844_v60, 1  ;;  %v1825_v30 = vshrl.u32 %v6449_v50, 16 }
 0x19b   : > { %v6461_v56 = vsel %vm789_vm3, %v2037_v51, %v2038_v31  ;;  %v1841_v59 = vrot.slane %v1839_v54, 1  ;;  %v1834_v44 = vrot.slane %v1832_v52, 1 }
 0x19c   : > { %v2036_v62 = vsel %vm789_vm3, %v2034_v57, %v2035_v58  ;;  %v1829_v6 = vrot.slane %v1827_v4, 1 }
 0x19d   : > { %2160 = vrot.lane.b32.xlu1 %v6449_v50, %s5713_s11  ;;  %2194 = vrot.lane.b32.xlu0 %v6461_v56, %s5711_s10  ;;  %v1842_v37 = vor.u32 %v1841_v59, %v1837_v48 }
 0x19e   : > { %v1830_v16 = vor.u32 %v1829_v6, %v1825_v30 }
 0x19f   : > { %v6476_v8 = vsel %vm564_vm4, %v1842_v37, %v1846_v5 }
 0x1a0   : > { %v6489_v28 = vsel %vm564_vm4, %v1830_v16, %v1834_v44 }
 0x1a1   : > { %2132 = vrot.lane.b32.xlu1 %v6461_v56, %s5712_s13  ;;  %2192 = vrot.lane.b32.xlu0 %v2036_v62, %s5711_s10 }
 0x1a5   : > { %2130 = vrot.lane.b32.xlu1 %v2036_v62, %s5712_s13  ;;  %2256 = vrot.lane.b32.xlu0 %v6476_v8, %s5713_s11 }
 0x1a6   : > { %v5431_v7 = vpop.f32.mrb[4].mxu0 }
 0x1a7   : > { %v1498_v0 = vadd.f32 %v5431_v7, %v6387_v49  ;;  %v1489_v61 = vpop.f32.mrb[5].mxu0 }
 0x1a8   : > { %v1490_v63 = vadd.f32 %v6387_v49, %v1489_v61  ;;  %v5432_v14 = vpop.f32.mrb[6].mxu0 }
 0x1a9   : > { %v1501_v17 = vadd.f32 %v5432_v14, %v6387_v49  ;;  %2100 = vrot.lane.b32.xlu1 %v6476_v8, %s5711_s10  ;;  %v1492_v19 = vpop.f32.mrb[7].mxu0  ;;  %v1606_v29 = vmax.f32 %v1498_v0, 0.0 }
 0x1aa   : > { %v1493_v15 = vadd.f32 %v6387_v49, %v1492_v19  ;;  %v1604_v21 = vmax.f32 %v1490_v63, 0.0 }
 0x1ab   : > { %v1607_v20 = vmax.f32 %v1501_v17, 0.0 }
 0x1ac   : > { %v1605_v22 = vmax.f32 %v1493_v15, 0.0 }
 0x1ad   : > { %v1635_v23 = vpack.c.bf16 %v1607_v20, %v1606_v29  ;;  %2098 = vrot.lane.b32.xlu1 %v6489_v28, %s5711_s10 }
 0x1ae   : > { %v1634_v24 = vpack.c.bf16 %v1605_v22, %v1604_v21 }
 0x1af   : > { %v1670_v55 = vshrl.u32 %v1635_v23, 16  ;;  %v1673_v11 = vshll.u32 %v1635_v23, 16 }
 0x1b0   : > { %v1663_v33 = vshrl.u32 %v1634_v24, 16  ;;  %v1666_v34 = vshll.u32 %v1634_v24, 16 }
 0x1b1   : > { %v1672_v25 = vrot.slane %v1670_v55, 7 }
 0x1b2   : > { %v1665_v12 = vrot.slane %v1663_v33, 7 }
 0x1b3   : > { %v1675_v26 = vor.u32 %v1673_v11, %v1672_v25  ;;  %v1811_v35 = vsel %vm5801_vm2, %v1672_v25, 0 }
 0x1b4   : > { %v1668_v32 = vor.u32 %v1666_v34, %v1665_v12  ;;  %v2044_v39 = vrot.slane %v1811_v35, 1  ;;  %v1810_v53 = vsel %vm5801_vm2, %v1665_v12, 0  ;;  %v1868_v51 = vshll.u32 %v1811_v35, 16 }
 0x1b5   : > { %v6495_v9 = vsel %vm5801_vm2, 0, %v1675_v26  ;;  %v2041_v45 = vrot.slane %v1810_v53, 1  ;;  %v1856_v58 = vshll.u32 %v1810_v53, 16 }
 0x1b6   : > { %2166 = vrot.lane.b32.xlu1 %v6495_v9, %s5713_s11  ;;  %2228 = vrot.lane.b32.xlu0 %v6495_v9, %s5712_s13  ;;  %v6505_v1 = vsel %vm5801_vm2, 0, %v1668_v32  ;;  %v2043_v36 = vrot.slane %v6495_v9, 1  ;;  %v1863_v38 = vshll.u32 %v6495_v9, 16  ;;  %v1861_v46 = vshrl.u32 %v6495_v9, 16 }
 0x1b7   : > { %v2040_v27 = vrot.slane %v6505_v1, 1  ;;  %v1851_v43 = vshll.u32 %v6505_v1, 16  ;;  %v1870_v57 = vrot.slane %v1868_v51, 1  ;;  %v1849_v59 = vshrl.u32 %v6505_v1, 16 }
 0x1b8   : > { %v6516_v40 = vsel %vm789_vm3, %v2043_v36, %v2044_v39  ;;  %v1865_v42 = vrot.slane %v1863_v38, 1  ;;  %v1858_v5 = vrot.slane %v1856_v58, 1 }
 0x1b9   : > { %v6526_v31 = vsel %vm789_vm3, %v2040_v27, %v2041_v45  ;;  %v1853_v13 = vrot.slane %v1851_v43, 1 }
 0x1ba   : > { %2164 = vrot.lane.b32.xlu1 %v6505_v1, %s5713_s11  ;;  %2226 = vrot.lane.b32.xlu0 %v6505_v1, %s5712_s13  ;;  %v1866_v54 = vor.u32 %v1865_v42, %v1861_v46 }
 0x1bb   : > { %v1854_v60 = vor.u32 %v1853_v13, %v1849_v59 }
 0x1bc   : > { %v6534_v48 = vsel %vm564_vm4, %v1866_v54, %v1870_v57 }
 0x1bd   : > { %v6544_v0 = vsel %vm564_vm4, %v1854_v60, %v1858_v5 }
 0x1be   : > { %2136 = vrot.lane.b32.xlu1 %v6516_v40, %s5712_s13  ;;  %2198 = vrot.lane.b32.xlu0 %v6516_v40, %s5711_s10 }
 0x1c2   : > { %2134 = vrot.lane.b32.xlu1 %v6526_v31, %s5712_s13  ;;  %2196 = vrot.lane.b32.xlu0 %v6526_v31, %s5711_s10 }
 0x1c6   : > { %2104 = vrot.lane.b32.xlu1 %v6534_v48, %s5711_s10  ;;  %v5435_v62 = vpop.f32.mrb[8].mxu0  ;;  %2260 = vrot.lane.b32.xlu0 %v6534_v48, %s5713_s11 }
 0x1c7   : > { %v1514_v37 = vadd.f32 %v5435_v62, %v6387_v49  ;;  %v1505_v4 = vpop.f32.mrb[9].mxu0 }
 0x1c8   : > { %v1506_v6 = vadd.f32 %v6387_v49, %v1505_v4  ;;  %v5436_v7 = vpop.f32.mrb[10].mxu0 }
 0x1c9   : > { %v1517_v30 = vadd.f32 %v5436_v7, %v6387_v49  ;;  %v1508_v52 = vpop.f32.mrb[11].mxu0  ;;  %v1610_v63 = vmax.f32 %v1514_v37, 0.0 }
 0x1ca   : > { %v1509_v61 = vadd.f32 %v6387_v49, %v1508_v52  ;;  %2102 = vrot.lane.b32.xlu1 %v6544_v0, %s5711_s10  ;;  %2258 = vrot.lane.b32.xlu0 %v6544_v0, %s5713_s11  ;;  %v1608_v16 = vmax.f32 %v1506_v6, 0.0 }
 0x1cb   : > { %v1611_v14 = vmax.f32 %v1517_v30, 0.0 }
 0x1cc   : > { %v1609_v17 = vmax.f32 %v1509_v61, 0.0 }
 0x1cd   : > { %v1637_v19 = vpack.c.bf16 %v1611_v14, %v1610_v63 }
 0x1ce   : > { %v1636_v15 = vpack.c.bf16 %v1609_v17, %v1608_v16 }
 0x1cf   : > { %v1684_v44 = vshrl.u32 %v1637_v19, 16  ;;  %v1687_v21 = vshll.u32 %v1637_v19, 16 }
 0x1d0   : > { %v1677_v29 = vshrl.u32 %v1636_v15, 16  ;;  %v1680_v24 = vshll.u32 %v1636_v15, 16 }
 0x1d1   : > { %v1686_v20 = vrot.slane %v1684_v44, 7 }
 0x1d2   : > { %v1679_v22 = vrot.slane %v1677_v29, 7 }
 0x1d3   : > { %v1689_v23 = vor.u32 %v1687_v21, %v1686_v20  ;;  %v1813_v25 = vsel %vm5801_vm2, %v1686_v20, 0 }
 0x1d4   : > { %v1682_v55 = vor.u32 %v1680_v24, %v1679_v22  ;;  %v2050_v34 = vrot.slane %v1813_v25, 1  ;;  %v1812_v32 = vsel %vm5801_vm2, %v1679_v22, 0  ;;  %v1892_v42 = vshll.u32 %v1813_v25, 16 }
 0x1d5   : > { %v6553_v33 = vsel %vm5801_vm2, 0, %v1689_v23  ;;  %v2047_v53 = vrot.slane %v1812_v32, 1  ;;  %v1880_v13 = vshll.u32 %v1812_v32, 16 }
 0x1d6   : > { %2170 = vrot.lane.b32.xlu1 %v6553_v33, %s5713_s11  ;;  %2232 = vrot.lane.b32.xlu0 %v6553_v33, %s5712_s13  ;;  %v6563_v11 = vsel %vm5801_vm2, 0, %v1682_v55  ;;  %v2049_v12 = vrot.slane %v6553_v33, 1  ;;  %v1887_v26 = vshll.u32 %v6553_v33, 16  ;;  %v1885_v27 = vshrl.u32 %v6553_v33, 16 }
 0x1d7   : > { %v2046_v36 = vrot.slane %v6563_v11, 1  ;;  %v1875_v39 = vshll.u32 %v6563_v11, 16  ;;  %v1894_v51 = vrot.slane %v1892_v42, 1  ;;  %v1873_v54 = vshrl.u32 %v6563_v11, 16 }
 0x1d8   : > { %v6574_v35 = vsel %vm789_vm3, %v2049_v12, %v2050_v34  ;;  %v1889_v38 = vrot.slane %v1887_v26, 1  ;;  %v1882_v37 = vrot.slane %v1880_v13, 1 }
 0x1d9   : > { %v6584_v43 = vsel %vm789_vm3, %v2046_v36, %v2047_v53  ;;  %v1877_v46 = vrot.slane %v1875_v39, 1 }
 0x1da   : > { %2168 = vrot.lane.b32.xlu1 %v6563_v11, %s5713_s11  ;;  %2230 = vrot.lane.b32.xlu0 %v6563_v11, %s5712_s13  ;;  %v1890_v45 = vor.u32 %v1889_v38, %v1885_v27 }
 0x1db   : > { %v1878_v59 = vor.u32 %v1877_v46, %v1873_v54 }
 0x1dc   : > { %v6592_v57 = vsel %vm564_vm4, %v1890_v45, %v1894_v51  ;;  %v2097_v45 = vpop.permute.xlu1 %2096 }
 0x1dd   : > { %v6602_v30 = vsel %vm564_vm4, %v1878_v59, %v1882_v37 }
 0x1de   : > { %2140 = vrot.lane.b32.xlu1 %v6574_v35, %s5712_s13  ;;  %2202 = vrot.lane.b32.xlu0 %v6574_v35, %s5711_s10 }
 0x1e2   : > { %2138 = vrot.lane.b32.xlu1 %v6584_v43, %s5712_s13  ;;  %2200 = vrot.lane.b32.xlu0 %v6584_v43, %s5711_s10 }
 0x1e6   : > { %2108 = vrot.lane.b32.xlu1 %v6592_v57, %s5711_s10  ;;  %2264 = vrot.lane.b32.xlu0 %v6592_v57, %s5713_s11  ;;  %v5439_v58 = vpop.f32.mrb[12].mxu0 }
 0x1e7   : > { %v1530_v60 = vadd.f32 %v5439_v58, %v6387_v49  ;;  %v1521_v62 = vpop.f32.mrb[13].mxu0 }
 0x1e8   : > { %v1522_v4 = vadd.f32 %v6387_v49, %v1521_v62  ;;  %v5440_v5 = vpop.f32.mrb[14].mxu0 }
 0x1e9   : > { %v1533_v6 = vadd.f32 %v5440_v5, %v6387_v49  ;;  %v1524_v7 = vpop.f32.mrb[15].mxu0  ;;  %v1614_v61 = vmax.f32 %v1530_v60, 0.0 }
 0x1ea   : > { %v1525_v52 = vadd.f32 %v6387_v49, %v1524_v7  ;;  %2106 = vrot.lane.b32.xlu1 %v6602_v30, %s5711_s10  ;;  %2262 = vrot.lane.b32.xlu0 %v6602_v30, %s5713_s11  ;;  %v1612_v14 = vmax.f32 %v1522_v4, 0.0  ;;  %v2129_v4 = vpop.permute.xlu1 %2128 }
 0x1eb   : > { %v1615_v63 = vmax.f32 %v1533_v6, 0.0 }
 0x1ec   : > { %v1613_v16 = vmax.f32 %v1525_v52, 0.0 }
 0x1ed   : > { %v1639_v17 = vpack.c.bf16 %v1615_v63, %v1614_v61 }
 0x1ee   : > { %v1638_v19 = vpack.c.bf16 %v1613_v16, %v1612_v14 }
 0x1ef   : > { %v1698_v15 = vshrl.u32 %v1639_v17, 16  ;;  %v1701_v20 = vshll.u32 %v1639_v17, 16 }
 0x1f0   : > { %v1691_v44 = vshrl.u32 %v1638_v19, 16  ;;  %v1694_v23 = vshll.u32 %v1638_v19, 16 }
 0x1f1   : > { %v1700_v29 = vrot.slane %v1698_v15, 7 }
 0x1f2   : > { %v1693_v21 = vrot.slane %v1691_v44, 7 }
 0x1f3   : > { %v1703_v22 = vor.u32 %v1701_v20, %v1700_v29  ;;  %v1815_v25 = vsel %vm5801_vm2, %v1700_v29, 0 }
 0x1f4   : > { %v1696_v24 = vor.u32 %v1694_v23, %v1693_v21  ;;  %v2056_v32 = vrot.slane %v1815_v25, 1  ;;  %v1814_v36 = vsel %vm5801_vm2, %v1693_v21, 0  ;;  %v1916_v51 = vshll.u32 %v1815_v25, 16 }
 0x1f5   : > { %v6611_v55 = vsel %vm5801_vm2, 0, %v1703_v22  ;;  %v2053_v42 = vrot.slane %v1814_v36, 1  ;;  %v1904_v62 = vshll.u32 %v1814_v36, 16 }
 0x1f6   : > { %2174 = vrot.lane.b32.xlu1 %v6611_v55, %s5713_s11  ;;  %2236 = vrot.lane.b32.xlu0 %v6611_v55, %s5712_s13  ;;  %v6621_v12 = vsel %vm5801_vm2, 0, %v1696_v24  ;;  %v2055_v26 = vrot.slane %v6611_v55, 1  ;;  %v1911_v34 = vshll.u32 %v6611_v55, 16  ;;  %v1909_v46 = vshrl.u32 %v6611_v55, 16 }
 0x1f7   : > { %v2052_v39 = vrot.slane %v6621_v12, 1  ;;  %v1899_v27 = vshll.u32 %v6621_v12, 16  ;;  %v1918_v58 = vrot.slane %v1916_v51, 1  ;;  %v1897_v60 = vshrl.u32 %v6621_v12, 16 }
 0x1f8   : > { %v6632_v38 = vsel %vm789_vm3, %v2055_v26, %v2056_v32  ;;  %v1913_v53 = vrot.slane %v1911_v34, 1  ;;  %v1906_v61 = vrot.slane %v1904_v62, 1 }
 0x1f9   : > { %v6642_v54 = vsel %vm789_vm3, %v2052_v39, %v2053_v42  ;;  %v1901_v59 = vrot.slane %v1899_v27, 1 }
 0x1fa   : > { %2172 = vrot.lane.b32.xlu1 %v6621_v12, %s5713_s11  ;;  %2234 = vrot.lane.b32.xlu0 %v6621_v12, %s5712_s13  ;;  %v1914_v13 = vor.u32 %v1913_v53, %v1909_v46 }
 0x1fb   : > { %v1902_v5 = vor.u32 %v1901_v59, %v1897_v60 }
 0x1fc   : > { %v6650_v37 = vsel %vm564_vm4, %v1914_v13, %v1918_v58  ;;  %v2289_v13 = vsel %vm1342_vm13, %v5808_v3, %v2097_v45 }
 0x1fd   : > { %v6660_v19 = vsel %vm564_vm4, %v1902_v5, %v1906_v61  ;;  %v2322_v5 = vsel %vm2320_vm15, %v2289_v13, %v2129_v4  ;;  %v5603_v4 = vld [vmem:[%s8177_s3 + $0x88] sm:$0xff]  }
 0x1fe   : > { %2144 = vrot.lane.b32.xlu1 %v6632_v38, %s5712_s13  ;;  %2206 = vrot.lane.b32.xlu0 %v6632_v38, %s5711_s10 }
 0x202   : > { %2142 = vrot.lane.b32.xlu1 %v6642_v54, %s5712_s13  ;;  %2204 = vrot.lane.b32.xlu0 %v6642_v54, %s5711_s10 }
 0x206   : > { %2112 = vrot.lane.b32.xlu1 %v6650_v37, %s5711_s10  ;;  %2268 = vrot.lane.b32.xlu0 %v6650_v37, %s5713_s11  ;;  %v5443_v6 = vpop.f32.mrb[16].mxu0 }
 0x207   : > { %v1546_v7 = vadd.f32 %v5443_v6, %v6387_v49  ;;  %v1537_v52 = vpop.f32.mrb[17].mxu0 }
 0x208   : > { %v1538_v63 = vadd.f32 %v6387_v49, %v1537_v52  ;;  %v5444_v14 = vpop.f32.mrb[18].mxu0 }
 0x209   : > { %v1549_v16 = vadd.f32 %v5444_v14, %v6387_v49  ;;  %v1540_v17 = vpop.f32.mrb[19].mxu0  ;;  %v1618_v44 = vmax.f32 %v1546_v7, 0.0 }
 0x20a   : > { %v1541_v15 = vadd.f32 %v6387_v49, %v1540_v17  ;;  %2110 = vrot.lane.b32.xlu1 %v6660_v19, %s5711_s10  ;;  %2266 = vrot.lane.b32.xlu0 %v6660_v19, %s5713_s11  ;;  %v1616_v22 = vmax.f32 %v1538_v63, 0.0 }
 0x20b   : > { %v1619_v29 = vmax.f32 %v1549_v16, 0.0  ;;  %v6667_v20 = vpop.permute.xlu1 %2162  ;;  %v2225_v21 = vpop.permute.xlu0 %2224 }
 0x20c   : > { %v1617_v23 = vmax.f32 %v1541_v15, 0.0 }
 0x20d   : > { %v1641_v24 = vpack.c.bf16 %v1619_v29, %v1618_v44 }
 0x20e   : > { %v1640_v25 = vpack.c.bf16 %v1617_v23, %v1616_v22 }
 0x20f   : > { %v1712_v26 = vshrl.u32 %v1641_v24, 16  ;;  %v6669_v34 = vpop.permute.xlu0 %2194  ;;  %v2161_v36 = vpop.permute.xlu1 %2160  ;;  %v1715_v53 = vshll.u32 %v1641_v24, 16 }
 0x210   : > { %v1705_v32 = vshrl.u32 %v1640_v25, 16  ;;  %v1708_v46 = vshll.u32 %v1640_v25, 16  ;;  %v2355_v14 = vsel %vm2353_vm0, %v2322_v5, %v2161_v36 }
 0x211   : > { %v1714_v39 = vrot.slane %v1712_v26, 7 }
 0x212   : > { %v1707_v27 = vrot.slane %v1705_v32, 7 }
 0x213   : > { %v1717_v42 = vor.u32 %v1715_v53, %v1714_v39  ;;  %v2193_v51 = vpop.permute.xlu0 %2192  ;;  %v6679_v62 = vpop.permute.xlu1 %2132 }
 0x214   : > { %v2404_v59 = vsel %vm1342_vm13, %v6489_v28, %v2193_v51  ;;  %v1710_v58 = vor.u32 %v1708_v46, %v1707_v27  ;;  %v1817_v28 = vsel %vm5801_vm2, %v1714_v39, 0  ;;  %v1816_v17 = vsel %vm5801_vm2, %v1707_v27, 0 }
 0x215   : > { %v6677_v60 = vsel %vm5801_vm2, 0, %v1717_v42  ;;  %v2451_v6 = vsel %vm2320_vm15, %v2404_v59, %v2225_v21  ;;  %v2062_v16 = vrot.slane %v1817_v28, 1  ;;  %v2059_v23 = vrot.slane %v1816_v17, 1 }
 0x216   : > { %2178 = vrot.lane.b32.xlu1 %v6677_v60, %s5713_s11  ;;  %2240 = vrot.lane.b32.xlu0 %v6677_v60, %s5712_s13  ;;  %v6692_v52 = vsel %vm5801_vm2, 0, %v1710_v58  ;;  %v2061_v61 = vrot.slane %v6677_v60, 1  ;;  %v1935_v63 = vshll.u32 %v6677_v60, 16  ;;  %v1940_v24 = vshll.u32 %v1817_v28, 16 }
 0x217   : > { %v2257_v45 = vpop.permute.xlu0 %2256  ;;  %v6706_v15 = vpop.permute.xlu1 %2130  ;;  %v2058_v29 = vrot.slane %v6692_v52, 1  ;;  %v1923_v22 = vshll.u32 %v6692_v52, 16  ;;  %v1921_v39 = vshrl.u32 %v6692_v52, 16  ;;  %v1928_v53 = vshll.u32 %v1816_v17, 16 }
 0x218   : > { %v2483_v7 = vsel %vm2353_vm0, %v2451_v6, %v2257_v45  ;;  %v6712_v44 = vsel %vm789_vm3, %v2061_v61, %v2062_v16  ;;  %v1937_v21 = vrot.slane %v1935_v63, 1  ;;  %v1942_v36 = vrot.slane %v1940_v24, 1 }
 0x219   : > { %2761 = vmatprep.mubr.bf16.mxu0 %v2483_v7  ;;  %v1925_v26 = vrot.slane %v1923_v22, 1  ;;  %v1930_v13 = vrot.slane %v1928_v53, 1 }
 0x21a   : > { %2176 = vrot.lane.b32.xlu1 %v6692_v52, %s5713_s11  ;;  %2238 = vrot.lane.b32.xlu0 %v6692_v52, %s5712_s13 }
 0x21b   : > { %2762 = vmatmul.mubr.bf16.vlgmr.msra.gmra.mrb[32].mxu0 %v2355_v14  ;;  %v6724_v32 = vpop.permute.xlu1 %2100  ;;  %v1926_v42 = vor.u32 %v1925_v26, %v1921_v39 }
 0x21c   : > { %5458 = vmatpush3.bf16.msra.mxu0 %v6456_v41  ;;  %5461 = vmatprep.mubr.msk.bf16.mxu0 %vm1342_vm13, %v6461_v56  ;;  %v1933_v41 = vshrl.u32 %v6677_v60, 16  ;;  %v6722_v56 = vsel %vm789_vm3, %v2058_v29, %v2059_v23 }
 0x21d   : > { %5459 = vmatprep.subr.bf16.mxu0 %v5603_v4  ;;  %v6746_v28 = vsel %vm564_vm4, %v1926_v42, %v1930_v13 }
 0x21e   : > { %2148 = vrot.lane.b32.xlu1 %v6712_v44, %s5712_s13  ;;  %2210 = vrot.lane.b32.xlu0 %v6712_v44, %s5711_s10  ;;  %v1938_v25 = vor.u32 %v1937_v21, %v1933_v41 }
 0x21f   : > { %v2099_v59 = vpop.permute.xlu1 %2098 }
 0x220   : > { %5460 = vmatpush3.bf16.msra.mxu0 %v5603_v4  ;;  %v6736_v27 = vsel %vm564_vm4, %v1938_v25, %v1942_v36 }
 0x222   : > { %2146 = vrot.lane.b32.xlu1 %v6722_v56, %s5712_s13  ;;  %2208 = vrot.lane.b32.xlu0 %v6722_v56, %s5711_s10 }
 0x223   : > { %5462 = vmatmul.mubr.msk.bf16.vlgmr.msra.gmra.mrb[36].mxu0 %vm1342_vm13, %v6526_v31 }
 0x224   : > { %5465 = vmatprep.mubr.msk.bf16.mxu0 %vm1342_vm13, %v6516_v40 }
 0x226   : > { %2116 = vrot.lane.b32.xlu1 %v6736_v27, %s5711_s10  ;;  %2272 = vrot.lane.b32.xlu0 %v6736_v27, %s5713_s11  ;;  %v5447_v46 = vpop.f32.mrb[20].mxu0 }
 0x227   : > { %v1562_v31 = vadd.f32 %v5447_v46, %v6387_v49  ;;  %v1553_v51 = vpop.f32.mrb[21].mxu0  ;;  %v2291_v46 = vsel %vm1342_vm13, %v6449_v50, %v2099_v59  ;;  %v2407_v50 = vsel %vm1342_vm13, %v6476_v8, %v6669_v34 }
 0x228   : > { %v1554_v58 = vadd.f32 %v6387_v49, %v1553_v51  ;;  %v5448_v5 = vpop.f32.mrb[22].mxu0  ;;  %v2229_v45 = vpop.permute.xlu0 %2228 }
 0x229   : > { %v1565_v40 = vadd.f32 %v5448_v5, %v6387_v49  ;;  %v1556_v6 = vpop.f32.mrb[23].mxu0  ;;  %v1622_v61 = vmax.f32 %v1562_v31, 0.0  ;;  %v6755_v14 = vpop.permute.xlu1 %2166  ;;  %v2324_v5 = vsel %vm2320_vm15, %v2291_v46, %v6706_v15 }
 0x22a   : > { %v1557_v7 = vadd.f32 %v6387_v49, %v1556_v6  ;;  %2114 = vrot.lane.b32.xlu1 %v6746_v28, %s5711_s10  ;;  %2270 = vrot.lane.b32.xlu0 %v6746_v28, %s5713_s11  ;;  %v1620_v63 = vmax.f32 %v1554_v58, 0.0 }
 0x22b   : > { %v1623_v4 = vmax.f32 %v1565_v40, 0.0  ;;  %5466 = vmatmul.mubr.msk.bf16.gmra.mrb[40].mxu0 %vm1342_vm13, %v6584_v43 }
 0x22c   : > { %v1621_v16 = vmax.f32 %v1557_v7, 0.0  ;;  %5469 = vmatprep.mubr.msk.bf16.mxu0 %vm1342_vm13, %v6574_v35  ;;  %v2227_v29 = vpop.permute.xlu0 %2226 }
 0x22d   : > { %v1643_v17 = vpack.c.bf16 %v1623_v4, %v1622_v61  ;;  %v6761_v36 = vpop.permute.xlu1 %2164  ;;  %v2453_v6 = vsel %vm2320_vm15, %v2407_v50, %v2227_v29 }
 0x22e   : > { %v1642_v21 = vpack.c.bf16 %v1621_v16, %v1620_v63 }
 0x22f   : > { %v1726_v22 = vshrl.u32 %v1643_v17, 16  ;;  %v1729_v24 = vshll.u32 %v1643_v17, 16 }
 0x230   : > { %v1719_v23 = vshrl.u32 %v1642_v21, 16  ;;  %v6759_v25 = vpop.permute.xlu0 %2198  ;;  %v1722_v39 = vshll.u32 %v1642_v21, 16 }
 0x231   : > { %v1728_v41 = vrot.slane %v1726_v22, 7  ;;  %v6779_v31 = vpop.permute.xlu1 %2136 }
 0x232   : > { %v1721_v26 = vrot.slane %v1719_v23, 7 }
 0x233   : > { %v1731_v43 = vor.u32 %v1729_v24, %v1728_v41  ;;  %5470 = vmatmul.mubr.msk.bf16.gmra.mrb[44].mxu0 %vm1342_vm13, %v6642_v54  ;;  %v1819_v54 = vsel %vm5801_vm2, %v1728_v41, 0 }
 0x234   : > { %5473 = vmatprep.mubr.msk.bf16.mxu0 %vm1342_vm13, %v6632_v38  ;;  %v1724_v35 = vor.u32 %v1722_v39, %v1721_v26  ;;  %v2197_v53 = vpop.permute.xlu0 %2196  ;;  %v2068_v59 = vrot.slane %v1819_v54, 1  ;;  %v1818_v40 = vsel %vm5801_vm2, %v1721_v26, 0  ;;  %v1964_v29 = vshll.u32 %v1819_v54, 16 }
 0x235   : > { %v6769_v42 = vsel %vm5801_vm2, 0, %v1731_v43  ;;  %v2410_v7 = vsel %vm1342_vm13, %v6544_v0, %v2197_v53  ;;  %v6808_v15 = vpop.permute.xlu1 %2134  ;;  %v2358_v0 = vsel %vm2353_vm0, %v2324_v5, %v6667_v20  ;;  %v2065_v16 = vrot.slane %v1818_v40, 1 }
 0x236   : > { %2182 = vrot.lane.b32.xlu1 %v6769_v42, %s5713_s11  ;;  %2244 = vrot.lane.b32.xlu0 %v6769_v42, %s5712_s13  ;;  %v6783_v51 = vsel %vm5801_vm2, 0, %v1724_v35  ;;  %v2067_v13 = vrot.slane %v6769_v42, 1  ;;  %v1959_v58 = vshll.u32 %v6769_v42, 16  ;;  %v1957_v17 = vshrl.u32 %v6769_v42, 16 }
 0x237   : > { %v2064_v34 = vrot.slane %v6783_v51, 1  ;;  %v1947_v4 = vshll.u32 %v6783_v51, 16  ;;  %v2293_v20 = vsel %vm1342_vm13, %v6441_v47, %v6724_v32  ;;  %v1945_v24 = vshrl.u32 %v6783_v51, 16 }
 0x238   : > { %v2261_v38 = vpop.permute.xlu0 %2260  ;;  %v2069_v8 = vsel %vm789_vm3, %v2067_v13, %v2068_v59  ;;  %v1952_v26 = vshll.u32 %v1818_v40, 16  ;;  %v2326_v32 = vsel %vm2320_vm15, %v2293_v20, %v6679_v62 }
 0x239   : > { %v2066_v22 = vsel %vm789_vm3, %v2064_v34, %v2065_v16  ;;  %v1949_v41 = vrot.slane %v1947_v4, 1  ;;  %v6826_v43 = vpop.permute.xlu1 %2104  ;;  %v2361_v54 = vsel %vm2353_vm0, %v2326_v32, %v6761_v36 }
 0x23a   : > { %2180 = vrot.lane.b32.xlu1 %v6783_v51, %s5713_s11  ;;  %2242 = vrot.lane.b32.xlu0 %v6783_v51, %s5712_s13 }
 0x23b   : > { %5474 = vmatmul.mubr.msk.bf16.gmra.mrb[48].mxu0 %vm1342_vm13, %v6722_v56  ;;  %v1961_v56 = vrot.slane %v1959_v58, 1  ;;  %v1950_v35 = vor.u32 %v1949_v41, %v1945_v24 }
 0x23c   : > { %5477 = vmatprep.mubr.msk.bf16.mxu0 %vm1342_vm13, %v6712_v44  ;;  %v2259_v61 = vpop.permute.xlu0 %2258  ;;  %v2455_v44 = vsel %vm2320_vm15, %v2410_v7, %v2229_v45  ;;  %v1966_v45 = vrot.slane %v1964_v29, 1 }
 0x23d   : > { %v2486_v63 = vsel %vm2353_vm0, %v2453_v6, %v2259_v61  ;;  %v2489_v21 = vsel %vm2353_vm0, %v2455_v44, %v2261_v38  ;;  %v1962_v23 = vor.u32 %v1961_v56, %v1957_v17  ;;  %v1954_v38 = vrot.slane %v1952_v26, 1  ;;  %v2103_v62 = vpop.permute.xlu1 %2102 }
 0x23e   : > { %2152 = vrot.lane.b32.xlu1 %v2069_v8, %s5712_s13  ;;  %2214 = vrot.lane.b32.xlu0 %v2069_v8, %s5711_s10 }
 0x23f   : > { %2769 = vmatprep.mubr.bf16.mxu1 %v2486_v63  ;;  %v6830_v39 = vsel %vm564_vm4, %v1962_v23, %v1966_v45  ;;  %v6846_v40 = vsel %vm564_vm4, %v1950_v35, %v1954_v38 }
 0x240   : > { %2770 = vmatmul.mubr.bf16.vlgmr.msra.gmra.mrb[0].mxu1 %v2358_v0 }
 0x241   : > { %2777 = vmatprep.mubr.bf16.mxu1 %v2489_v21 }
 0x242   : > { %2150 = vrot.lane.b32.xlu1 %v2066_v22, %s5712_s13  ;;  %2212 = vrot.lane.b32.xlu0 %v2066_v22, %s5711_s10 }
 0x243   : > { %5478 = vmatmul.mubr.msk.bf16.gmra.mrb[52].mxu0 %vm1342_vm13, %v2066_v22 }
 0x244   : > { %5481 = vmatprep.mubr.msk.bf16.mxu0 %vm1342_vm13, %v2069_v8 }
 0x246   : > { %2120 = vrot.lane.b32.xlu1 %v6830_v39, %s5711_s10  ;;  %2276 = vrot.lane.b32.xlu0 %v6830_v39, %s5713_s11  ;;  %v5451_v47 = vpop.f32.mrb[24].mxu0 }
 0x247   : > { %v1578_v53 = vadd.f32 %v5451_v47, %v6387_v49  ;;  %v1569_v46 = vpop.f32.mrb[25].mxu0 }
 0x248   : > { %v1570_v13 = vadd.f32 %v6387_v49, %v1569_v46  ;;  %2778 = vmatmul.mubr.bf16.gmra.mrb[4].mxu1 %v2361_v54  ;;  %v5452_v58 = vpop.f32.mrb[26].mxu0  ;;  %v6843_v59 = vpop.permute.xlu0 %2232  ;;  %v2295_v54 = vsel %vm1342_vm13, %v6505_v1, %v2103_v62 }
 0x249   : > { %v1581_v50 = vadd.f32 %v5452_v58, %v6387_v49  ;;  %v1572_v5 = vpop.f32.mrb[27].mxu0  ;;  %v1626_v36 = vmax.f32 %v1578_v53, 0.0  ;;  %v6853_v4 = vpop.permute.xlu1 %2170  ;;  %v2328_v1 = vsel %vm2320_vm15, %v2295_v54, %v6808_v15 }
 0x24a   : > { %v1573_v6 = vadd.f32 %v6387_v49, %v1572_v5  ;;  %2118 = vrot.lane.b32.xlu1 %v6846_v40, %s5711_s10  ;;  %2274 = vrot.lane.b32.xlu0 %v6846_v40, %s5713_s11  ;;  %v1624_v61 = vmax.f32 %v1570_v13, 0.0 }
 0x24b   : > { %v1627_v7 = vmax.f32 %v1581_v50, 0.0 }
 0x24c   : > { %v1625_v8 = vmax.f32 %v1573_v6, 0.0  ;;  %v2231_v56 = vpop.permute.xlu0 %2230 }
 0x24d   : > { %v1645_v34 = vpack.c.bf16 %v1627_v7, %v1626_v36  ;;  %v2169_v20 = vpop.permute.xlu1 %2168 }
 0x24e   : > { %v1644_v63 = vpack.c.bf16 %v1625_v8, %v1624_v61  ;;  %v2413_v61 = vsel %vm1342_vm13, %v6534_v48, %v6759_v25 }
 0x24f   : > { %v1740_v0 = vshrl.u32 %v1645_v34, 16  ;;  %v1743_v17 = vshll.u32 %v1645_v34, 16  ;;  %v2457_v34 = vsel %vm2320_vm15, %v2413_v61, %v2231_v56 }
 0x250   : > { %v1733_v44 = vshrl.u32 %v1644_v63, 16  ;;  %v6855_v49 = vpop.permute.xlu0 %2202  ;;  %v1736_v21 = vshll.u32 %v1644_v63, 16 }
 0x251   : > { %v1742_v16 = vrot.slane %v1740_v0, 7  ;;  %v6880_v6 = vpop.permute.xlu1 %2140 }
 0x252   : > { %v1735_v29 = vrot.slane %v1733_v44, 7 }
 0x253   : > { %v1745_v22 = vor.u32 %v1743_v17, %v1742_v16  ;;  %v1821_v26 = vsel %vm5801_vm2, %v1742_v16, 0  ;;  %v2364_v16 = vsel %vm2353_vm0, %v2328_v1, %v6755_v14  ;;  %v2297_v14 = vsel %vm1342_vm13, %v6495_v9, %v6826_v43  ;;  %v5604_v9 = vld [vmem:[%s8176_s2] ss:$0 sm:$0xff] }
 0x254   : > { %v1738_v23 = vor.u32 %v1736_v21, %v1735_v29  ;;  %v1820_v41 = vsel %vm5801_vm2, %v1735_v29, 0  ;;  %v2201_v45 = vpop.permute.xlu0 %2200  ;;  %v2074_v58 = vrot.slane %v1821_v26, 1  ;;  %v1988_v7 = vshll.u32 %v1821_v26, 16 }
 0x255   : > { %v6861_v24 = vsel %vm5801_vm2, 0, %v1745_v22  ;;  %v2071_v32 = vrot.slane %v1820_v41, 1  ;;  %v2416_v8 = vsel %vm1342_vm13, %v6602_v30, %v2201_v45  ;;  %v1976_v56 = vshll.u32 %v1820_v41, 16  ;;  %v6906_v17 = vpop.permute.xlu1 %2138 }
 0x256   : > { %2186 = vrot.lane.b32.xlu1 %v6861_v24, %s5713_s11  ;;  %2248 = vrot.lane.b32.xlu0 %v6861_v24, %s5712_s13  ;;  %v6871_v35 = vsel %vm5801_vm2, 0, %v1738_v23  ;;  %v2073_v53 = vrot.slane %v6861_v24, 1  ;;  %v1983_v46 = vshll.u32 %v6861_v24, 16  ;;  %v1981_v62 = vshrl.u32 %v6861_v24, 16 }
 0x257   : > { %v2070_v47 = vrot.slane %v6871_v35, 1  ;;  %v1971_v5 = vshll.u32 %v6871_v35, 16  ;;  %v2459_v48 = vsel %vm2320_vm15, %v2416_v8, %v6843_v59  ;;  %v1990_v30 = vrot.slane %v1988_v7, 1 }
 0x258   : > { %v2265_v38 = vpop.permute.xlu0 %2264  ;;  %v1985_v50 = vrot.slane %v1983_v46, 1  ;;  %v2075_v36 = vsel %vm789_vm3, %v2073_v53, %v2074_v58  ;;  %v1969_v25 = vshrl.u32 %v6871_v35, 16  ;;  %v1978_v59 = vrot.slane %v1976_v56, 1 }
 0x259   : > { %v2072_v13 = vsel %vm789_vm3, %v2070_v47, %v2071_v32  ;;  %v1973_v44 = vrot.slane %v1971_v5, 1  ;;  %v2495_v29 = vsel %vm2353_vm0, %v2459_v48, %v2265_v38  ;;  %v6921_v41 = vpop.permute.xlu1 %2108  ;;  %v2330_v26 = vsel %vm2320_vm15, %v2297_v14, %v6779_v31 }
 0x25a   : > { %2184 = vrot.lane.b32.xlu1 %v6871_v35, %s5713_s11  ;;  %2246 = vrot.lane.b32.xlu0 %v6871_v35, %s5712_s13  ;;  %v1986_v0 = vor.u32 %v1985_v50, %v1981_v62  ;;  %v2367_v32 = vsel %vm2353_vm0, %v2330_v26, %v2169_v20 }
 0x25b   : > { %5482 = vmatmul.mubr.msk.bf16.gmra.mrb[56].mxu0 %vm1342_vm13, %v2072_v13  ;;  %v1974_v22 = vor.u32 %v1973_v44, %v1969_v25 }
 0x25c   : > { %5485 = vmatprep.mubr.msk.bf16.mxu0 %vm1342_vm13, %v2075_v36  ;;  %v2263_v63 = vpop.permute.xlu0 %2262  ;;  %v6910_v21 = vsel %vm564_vm4, %v1986_v0, %v1990_v30 }
 0x25d   : > { %v2492_v15 = vsel %vm2353_vm0, %v2457_v34, %v2263_v63  ;;  %v6919_v23 = vsel %vm564_vm4, %v1974_v22, %v1978_v59  ;;  %v2107_v5 = vpop.permute.xlu1 %2106 }
 0x25e   : > { %2218 = vrot.lane.b32.xlu0 %v2075_v36, %s5711_s10  ;;  %2154 = vrot.lane.b32.xlu1 %v2072_v13, %s5712_s13 }
 0x25f   : > { %2785 = vmatprep.mubr.bf16.mxu1 %v2492_v15 }
 0x260   : > { %2786 = vmatmul.mubr.bf16.gmra.mrb[8].mxu1 %v2364_v16 }
 0x261   : > { %2793 = vmatprep.mubr.bf16.mxu1 %v2495_v29 }
 0x262   : > { %2124 = vrot.lane.b32.xlu1 %v6910_v21, %s5711_s10  ;;  %2216 = vrot.lane.b32.xlu0 %v2072_v13, %s5711_s10 }
 0x266   : > { %2280 = vrot.lane.b32.xlu0 %v6910_v21, %s5713_s11  ;;  %2122 = vrot.lane.b32.xlu1 %v6919_v23, %s5711_s10  ;;  %v5455_v45 = vpop.f32.mrb[28].mxu0 }
 0x267   : > { %v1594_v43 = vadd.f32 %v5604_v9, %v5455_v45  ;;  %v1585_v47 = vpop.f32.mrb[29].mxu0 }
 0x268   : > { %v1586_v53 = vadd.f32 %v5604_v9, %v1585_v47  ;;  %2794 = vmatmul.mubr.bf16.gmra.mrb[12].mxu1 %v2367_v32  ;;  %v5456_v46 = vpop.f32.mrb[30].mxu0  ;;  %v6933_v38 = vpop.permute.xlu0 %2236  ;;  %v2299_v32 = vsel %vm1342_vm13, %v6563_v11, %v2107_v5  ;;  %v2419_v11 = vsel %vm1342_vm13, %v6592_v57, %v6855_v49 }
 0x269   : > { %v1597_v54 = vadd.f32 %v5604_v9, %v5456_v46  ;;  %v1588_v13 = vpop.f32.mrb[31].mxu0  ;;  %v1630_v31 = vmax.f32 %v1594_v43, 0.0  ;;  %v6938_v34 = vpop.permute.xlu1 %2174 }
 0x26a   : > { %v1589_v58 = vadd.f32 %v5604_v9, %v1588_v13  ;;  %2156 = vrot.lane.b32.xlu1 %v2075_v36, %s5712_s13  ;;  %2278 = vrot.lane.b32.xlu0 %v6919_v23, %s5713_s11  ;;  %v1628_v1 = vmax.f32 %v1586_v53, 0.0 }
 0x26b   : > { %v1631_v50 = vmax.f32 %v1597_v54, 0.0 }
 0x26c   : > { %v1629_v62 = vmax.f32 %v1589_v58, 0.0  ;;  %v2235_v20 = vpop.permute.xlu0 %2234 }
 0x26d   : > { %v1647_v7 = vpack.c.bf16 %v1631_v50, %v1630_v31  ;;  %v2173_v14 = vpop.permute.xlu1 %2172 }
 0x26e   : > { %v1646_v61 = vpack.c.bf16 %v1629_v62, %v1628_v1 }
 0x26f   : > { %v1754_v8 = vshrl.u32 %v1647_v7, 16  ;;  %v1757_v44 = vshll.u32 %v1647_v7, 16  ;;  %v2332_v7 = vsel %vm2320_vm15, %v2299_v32, %v6906_v17 }
 0x270   : > { %v1747_v63 = vshrl.u32 %v1646_v61, 16  ;;  %v6940_v15 = vpop.permute.xlu0 %2206  ;;  %v1750_v16 = vshll.u32 %v1646_v61, 16  ;;  %v2461_v61 = vsel %vm2320_vm15, %v2419_v11, %v2235_v20 }
 0x271   : > { %v1756_v0 = vrot.slane %v1754_v8, 7  ;;  %v2145_v5 = vpop.permute.xlu1 %2144 }
 0x272   : > { %v1749_v36 = vrot.slane %v1747_v63, 7 }
 0x273   : > { %v1759_v48 = vor.u32 %v1757_v44, %v1756_v0  ;;  %v1823_v56 = vsel %vm5801_vm2, %v1756_v0, 0 }
 0x274   : > { %v1752_v30 = vor.u32 %v1750_v16, %v1749_v36  ;;  %v1822_v25 = vsel %vm5801_vm2, %v1749_v36, 0  ;;  %v2205_v29 = vpop.permute.xlu0 %2204  ;;  %v2094_v53 = vrot.slane %v1823_v56, 1  ;;  %v2087_v20 = vshll.u32 %v1823_v56, 16 }
 0x275   : > { %v1807_v22 = vsel %vm5801_vm2, 0, %v1759_v48  ;;  %v2077_v9 = vrot.slane %v1822_v25, 1  ;;  %v2000_v47 = vshll.u32 %v1822_v25, 16  ;;  %v2422_v62 = vsel %vm1342_vm13, %v6660_v19, %v2205_v29  ;;  %v2143_v16 = vpop.permute.xlu1 %2142 }
 0x276   : > { %2252 = vrot.lane.b32.xlu0 %v1807_v22, %s5712_s13  ;;  %v6951_v59 = vsel %vm5801_vm2, 0, %v1752_v30  ;;  %v2093_v45 = vrot.slane %v1807_v22, 1  ;;  %v2082_v58 = vshll.u32 %v1807_v22, 16  ;;  %v2370_v19 = vsel %vm2353_vm0, %v2332_v7, %v6853_v4 }
 0x277   : > { %2188 = vrot.lane.b32.xlu1 %v6951_v59, %s5713_s11  ;;  %v2076_v26 = vrot.slane %v6951_v59, 1  ;;  %v1995_v43 = vshll.u32 %v6951_v59, 16  ;;  %v1993_v2 = vshrl.u32 %v6951_v59, 16  ;;  %v2002_v1 = vrot.slane %v2000_v47, 1 }
 0x278   : > { %v2269_v46 = vpop.permute.xlu0 %2268  ;;  %v2095_v31 = vsel %vm789_vm3, %v2093_v45, %v2094_v53  ;;  %v2084_v0 = vrot.slane %v2082_v58, 1  ;;  %v2463_v49 = vsel %vm2320_vm15, %v2422_v62, %v6933_v38  ;;  %v2080_v17 = vshrl.u32 %v1807_v22, 16 }
 0x279   : > { %v2078_v54 = vsel %vm789_vm3, %v2076_v26, %v2077_v9  ;;  %v1997_v13 = vrot.slane %v1995_v43, 1  ;;  %v2501_v44 = vsel %vm2353_vm0, %v2463_v49, %v2269_v46  ;;  %v2301_v4 = vsel %vm1342_vm13, %v6553_v33, %v6921_v41  ;;  %v2113_v56 = vpop.permute.xlu1 %2112 }
 0x27a   : > { %2250 = vrot.lane.b32.xlu0 %v6951_v59, %s5712_s13  ;;  %5486 = vmatmul.mubr.msk.bf16.gmra.mrb[60].mxu0 %vm1342_vm13, %v2078_v54  ;;  %v2085_v36 = vor.u32 %v2084_v0, %v2080_v17  ;;  %v2089_v48 = vrot.slane %v2087_v20, 1  ;;  %v2334_v30 = vsel %vm2320_vm15, %v2301_v4, %v6880_v6  ;;  %v2425_v9 = vsel %vm1342_vm13, %v6650_v37, %v6940_v15 }
 0x27b   : > { %5489 = vmatprep.mubr.msk.bf16.mxu0 %vm1342_vm13, %v2095_v31  ;;  %v1998_v50 = vor.u32 %v1997_v13, %v1993_v2  ;;  %v2373_v25 = vsel %vm2353_vm0, %v2334_v30, %v2173_v14  ;;  %vm4972_vm2 = vcmask 1041409   ;;  %vm4974_vm3 = vcmask 1042434  }
 0x27c   : > { %v2267_v8 = vpop.permute.xlu0 %2266  ;;  %v6995_v38 = vsel %vm564_vm4, %v2085_v36, %v2089_v48 }
 0x27d   : > { %v6975_v63 = vsel %vm564_vm4, %v1998_v50, %v2002_v1  ;;  %v2498_v57 = vsel %vm2353_vm0, %v2461_v61, %v2267_v8  ;;  %vm4976_vm4 = vcmask 1043459  }
 0x27e   : > { %2220 = vrot.lane.b32.xlu0 %v2078_v54, %s5711_s10  ;;  %2126 = vrot.lane.b32.xlu1 %v6975_v63, %s5711_s10 }
 0x27f   : > { %2801 = vmatprep.mubr.bf16.mxu1 %v2498_v57 }
 0x280   : > { %2802 = vmatmul.mubr.bf16.gmra.mrb[16].mxu1 %v2370_v19 }
 0x281   : > { %2809 = vmatprep.mubr.bf16.mxu1 %v2501_v44 }
 0x282   : > { %2158 = vrot.lane.b32.xlu1 %v2078_v54, %s5712_s13  ;;  %2282 = vrot.lane.b32.xlu0 %v6975_v63, %s5713_s11 }
 0x283   : > { %5490 = vmatmul.mubr.msk.bf16.gmra.mrb[64].mxu0 %vm1342_vm13, %v5817_v10  ;;  %v2111_v10 = vpop.permute.xlu1 %2110 }
 0x284   : > { %v2303_v6 = vsel %vm1342_vm13, %v6621_v12, %v2111_v10 }
 0x286   : > { %2190 = vrot.lane.b32.xlu1 %v1807_v22, %s5713_s11  ;;  %2284 = vrot.lane.b32.xlu0 %v6995_v38, %s5713_s11 }
 0x288   : > { %2810 = vmatmul.mubr.bf16.gmra.mrb[20].mxu1 %v2373_v25  ;;  %v2241_v33 = vpop.permute.xlu0 %2240  ;;  %v2179_v22 = vpop.permute.xlu1 %2178 }
 0x28a   : > { %2222 = vrot.lane.b32.xlu0 %v2095_v31, %s5711_s10  ;;  %s7061_s10 = sand.u32 1, %s5693_s22  }
 0x28b   : > { %s5185_s26 = sshll.u32 %s7061_s10, 8  ;;  %s5184_s29 = sshll.u32 %s7061_s10, 6 }
 0x28c   : > { %v2239_v41 = vpop.permute.xlu0 %2238  ;;  %v2177_v14 = vpop.permute.xlu1 %2176  ;;  %s7087_s28 = scalar_lea.vmem [#allocation4], %s5185_s26  ;;  %s7241_s9 = scalar_lea.vmem [#allocation2], %s5184_s29 }
 0x28d   : > { %v2465_v47 = vsel %vm2320_vm15, %v2425_v9, %v2239_v41  ;;  %s5086_s18 = sshll.u32 %s7087_s28, 4  ;;  %s5057_s26 = scalar_lea.sflag [#allocation5], %s7061_s10  ;;  %s8043_s18 = int_to_ptr.vmem [resolvable:$true] %s5086_s18 }
 0x28e   : > { %2254 = vrot.lane.b32.xlu0 %v5808_v3, %s5712_s13  ;;  %v2336_v3 = vsel %vm2320_vm15, %v2303_v6, %v2143_v16  ;;  %s5607_s29 = scalar_lea.vmem %s8043_s18, 4096 }
 0x28f   : > { %v2376_v12 = vsel %vm2353_vm0, %v2336_v3, %v6938_v34  ;;  %p5608_p11 = scmp.ne.s32.totalorder %s8043_s18, %s5607_s29 }
 0x290   : > { %v2211_v29 = vpop.permute.xlu0 %2210  ;;  %v2149_v53 = vpop.permute.xlu1 %2148 }
 0x291   : > { %p5609_p12 = pnand %p5608_p11, %p5791_p5 }
 0x292   : > { %2286 = vrot.lane.b32.xlu0 %v5829_v18, %s5713_s11  ;;  %s5715_s11 = smov [#allocation4]  }
 0x293   : > { %p5610_p13 = pneg %p5609_p12  ;;  %s5611_s12 = sshll.u32 %s5715_s11, 4  ;;  %s5612_s12 = int_to_ptr.vmem [resolvable:$false] %s5611_s12 }
 0x294   : > { %v2209_v45 = vpop.permute.xlu0 %2208  ;;  %v2147_v15 = vpop.permute.xlu1 %2146  ;;  %p5614_p0 = scmp.lt.s32.totalorder %s8043_s18, %s5612_s12 }
 0x295   : > { %v2428_v43 = vsel %vm1342_vm13, %v6746_v28, %v2209_v45  ;;  %v2305_v28 = vsel %vm1342_vm13, %v6611_v55, %v2113_v56  ;;  %v2431_v55 = vsel %vm1342_vm13, %v6736_v27, %v2211_v29 }
 0x296   : > { %v2467_v46 = vsel %vm2320_vm15, %v2428_v43, %v2241_v33  ;;  %v2338_v54 = vsel %vm2320_vm15, %v2305_v28, %v2145_v5 }
 0x297   : > { %v2379_v2 = vsel %vm2353_vm0, %v2338_v54, %v2177_v14  ;;  %v5714_v54 = vmov 1983009808  }
 0x298   : > { %v2273_v26 = vpop.permute.xlu0 %2272  ;;  %v2117_v58 = vpop.permute.xlu1 %2116 }
 0x299   : > { %v2507_v37 = vsel %vm2353_vm0, %v2467_v46, %v2273_v26  ;;  %v2309_v27 = vsel %vm1342_vm13, %v6677_v60, %v2117_v58 }
 0x29c   : > { %v2271_v32 = vpop.permute.xlu0 %2270  ;;  %v2115_v50 = vpop.permute.xlu1 %2114 }
 0x29d   : > { %v2504_v18 = vsel %vm2353_vm0, %v2465_v47, %v2271_v32  ;;  %v2307_v62 = vsel %vm1342_vm13, %v6692_v52, %v2115_v50 }
 0x29e   : > { %2817 = vmatprep.mubr.bf16.mxu1 %v2504_v18  ;;  %v2340_v8 = vsel %vm2320_vm15, %v2307_v62, %v2147_v15 }
 0x29f   : > { %2818 = vmatmul.mubr.bf16.gmra.mrb[24].mxu1 %v2376_v12  ;;  %v2382_v49 = vsel %vm2353_vm0, %v2340_v8, %v2179_v22 }
 0x2a0   : > { %2825 = vmatprep.mubr.bf16.mxu1 %v2507_v37 }
 0x2a7   : > { %2826 = vmatmul.mubr.bf16.gmra.mrb[28].mxu1 %v2379_v2  ;;  %v3149_v2 = vunpack.c.l.s4 %v5714_v54 }
 0x2a8   : > { %v2245_v13 = vpop.permute.xlu0 %2244  ;;  %v2183_v1 = vpop.permute.xlu1 %2182 }
 0x2ac   : > { %v2243_v31 = vpop.permute.xlu0 %2242  ;;  %v2181_v61 = vpop.permute.xlu1 %2180 }
 0x2ad   : > { %v2469_v0 = vsel %vm2320_vm15, %v2431_v55, %v2243_v31 }
 0x2b0   : > { %v2215_v34 = vpop.permute.xlu0 %2214  ;;  %v2153_v20 = vpop.permute.xlu1 %2152 }
 0x2b1   : > { %v2437_v60 = vsel %vm1342_vm13, %v6830_v39, %v2215_v34  ;;  %v7066_v34 = vld [vmem:[%s8178_s4] ss:$0 sm:$0xff] }
 0x2b4   : > { %v2213_v11 = vpop.permute.xlu0 %2212  ;;  %v2151_v44 = vpop.permute.xlu1 %2150 }
 0x2b5   : > { %v2434_v5 = vsel %vm1342_vm13, %v6846_v40, %v2213_v11  ;;  %v2342_v40 = vsel %vm2320_vm15, %v2309_v27, %v2149_v53  ;;  %v3150_v11 = vunpack.c.0.s8 %v3149_v2 }
 0x2b6   : > { %v2471_v52 = vsel %vm2320_vm15, %v2434_v5, %v2245_v13  ;;  %v2385_v36 = vsel %vm2353_vm0, %v2342_v40, %v2181_v61  ;;  %v3151_v13 = vlaneseq }
 0x2b8   : > { %v2277_v7 = vpop.permute.xlu0 %2276  ;;  %v2121_v4 = vpop.permute.xlu1 %2120  ;;  %v3152_v62 = vshrl.u32 %v3151_v13, 7 }
 0x2b9   : > { %v2513_v17 = vsel %vm2353_vm0, %v2471_v52, %v2277_v7  ;;  %v2313_v39 = vsel %vm1342_vm13, %v6769_v42, %v2121_v4 }
 0x2ba   : > { %v2346_v3 = vsel %vm2320_vm15, %v2313_v39, %v2153_v20  ;;  %v7080_v52 = vsub.s32 %v3150_v11, %v3152_v62 }
 0x2bc   : > { %v2275_v57 = vpop.permute.xlu0 %2274  ;;  %v2119_v25 = vpop.permute.xlu1 %2118 }
 0x2bd   : > { %v2510_v19 = vsel %vm2353_vm0, %v2469_v0, %v2275_v57  ;;  %v2311_v41 = vsel %vm1342_vm13, %v6783_v51, %v2119_v25 }
 0x2be   : > { %2833 = vmatprep.mubr.bf16.mxu1 %v2510_v19  ;;  %v2344_v22 = vsel %vm2320_vm15, %v2311_v41, %v2151_v44 }
 0x2bf   : > { %2834 = vmatmul.mubr.bf16.gmra.mrb[32].mxu1 %v2382_v49  ;;  %v2388_v9 = vsel %vm2353_vm0, %v2344_v22, %v2183_v1 }
 0x2c0   : > { %2841 = vmatprep.mubr.bf16.mxu1 %v2513_v17 }
 0x2c7   : > { %2842 = vmatmul.mubr.bf16.gmra.mrb[36].mxu1 %v2385_v36 }
 0x2c8   : > { %v2249_v16 = vpop.permute.xlu0 %2248  ;;  %v2187_v33 = vpop.permute.xlu1 %2186 }
 0x2cc   : > { %v2247_v48 = vpop.permute.xlu0 %2246  ;;  %v2185_v45 = vpop.permute.xlu1 %2184 }
 0x2cd   : > { %v2473_v6 = vsel %vm2320_vm15, %v2437_v60, %v2247_v48  ;;  %v2391_v47 = vsel %vm2353_vm0, %v2346_v3, %v2185_v45 }
 0x2d0   : > { %v2219_v30 = vpop.permute.xlu0 %2218 }
 0x2d1   : > { %v2443_v1 = vsel %vm1342_vm13, %v6910_v21, %v2219_v30 }
 0x2d4   : > { %v2217_v56 = vpop.permute.xlu0 %2216 }
 0x2d5   : > { %v2440_v29 = vsel %vm1342_vm13, %v6919_v23, %v2217_v56  ;;  %v2155_v23 = vpop.permute.xlu1 %2154 }
 0x2d6   : > { %v2475_v51 = vsel %vm2320_vm15, %v2440_v29, %v2249_v16 }
 0x2d8   : > { %v2281_v10 = vpop.permute.xlu0 %2280 }
 0x2d9   : > { %v2519_v43 = vsel %vm2353_vm0, %v2475_v51, %v2281_v10  ;;  %v2125_v32 = vpop.permute.xlu1 %2124 }
 0x2da   : > { %v2317_v56 = vsel %vm1342_vm13, %v6861_v24, %v2125_v32 }
 0x2dc   : > { %v2279_v14 = vpop.permute.xlu0 %2278 }
 0x2dd   : > { %v2516_v26 = vsel %vm2353_vm0, %v2473_v6, %v2279_v14  ;;  %v2123_v12 = vpop.permute.xlu1 %2122 }
 0x2de   : > { %2849 = vmatprep.mubr.bf16.mxu1 %v2516_v26  ;;  %v2315_v42 = vsel %vm1342_vm13, %v6871_v35, %v2123_v12 }
 0x2df   : > { %2850 = vmatmul.mubr.bf16.gmra.mrb[40].mxu1 %v2388_v9  ;;  %v2348_v7 = vsel %vm2320_vm15, %v2315_v42, %v2155_v23 }
 0x2e0   : > { %2857 = vmatprep.mubr.bf16.mxu1 %v2519_v43  ;;  %v2394_v19 = vsel %vm2353_vm0, %v2348_v7, %v2187_v33 }
 0x2e1   : > { %v2157_v57 = vpop.permute.xlu1 %2156 }
 0x2e2   : > { %v2350_v33 = vsel %vm2320_vm15, %v2317_v56, %v2157_v57 }
 0x2e7   : > { %2858 = vmatmul.mubr.bf16.gmra.mrb[44].mxu1 %v2391_v47 }
 0x2e8   : > { %v2253_v18 = vpop.permute.xlu0 %2252 }
 0x2e9   : > { %v2189_v4 = vpop.permute.xlu1 %2188 }
 0x2ea   : > { %v2397_v14 = vsel %vm2353_vm0, %v2350_v33, %v2189_v4 }
 0x2ec   : > { %v2251_v53 = vpop.permute.xlu0 %2250 }
 0x2ed   : > { %v2477_v35 = vsel %vm2320_vm15, %v2443_v1, %v2251_v53 }
 0x2ee   : > { %v5305_v46 = vpop.f32.mrb[32].mxu0 }
 0x2ef   : > { %v5306_v37 = vpop.f32.mrb[33].mxu0 }
 0x2f0   : > { %v5307_v28 = vadd.f32 %v5306_v37, %v5305_v46  ;;  %v5308_v15 = vpop.f32.mrb[34].mxu0  ;;  %v2221_v31 = vpop.permute.xlu0 %2220 }
 0x2f1   : > { %v5309_v58 = vpop.f32.mrb[35].mxu0  ;;  %v2446_v55 = vsel %vm1342_vm13, %v6975_v63, %v2221_v31  ;;  %v2127_v22 = vpop.permute.xlu1 %2126 }
 0x2f2   : > { %v5310_v50 = vadd.f32 %v5309_v58, %v5308_v15  ;;  %v2764_v0 = vadd.f32 %v5307_v28, %v7066_v34  ;;  %v2479_v40 = vsel %vm2320_vm15, %v2446_v55, %v2253_v18 }
 0x2f4   : > { %v2283_v61 = vpop.permute.xlu0 %2282  ;;  %v2767_v63 = vadd.f32 %v5310_v50, %v7066_v34 }
 0x2f5   : > { %v2522_v8 = vsel %vm2353_vm0, %v2477_v35, %v2283_v61  ;;  %v2159_v13 = vpop.permute.xlu1 %2158 }
 0x2f6   : > { %v7074_v5 = vpop.f32.mrb[36].mxu0  ;;  %2865 = vmatprep.mubr.bf16.mxu1 %v2522_v8 }
 0x2f7   : > { %v2924_v21 = vpop.f32.mrb[37].mxu0  ;;  %2866 = vmatmul.mubr.bf16.gmra.mrb[48].mxu1 %v2394_v19 }
 0x2f8   : > { %v2925_v49 = vadd.f32 %v2924_v21, %v2764_v0  ;;  %v7082_v17 = vpop.f32.mrb[38].mxu0  ;;  %v2285_v27 = vpop.permute.xlu0 %2284 }
 0x2f9   : > { %v2927_v20 = vpop.f32.mrb[39].mxu0  ;;  %v2525_v16 = vsel %vm2353_vm0, %v2479_v40, %v2285_v27 }
 0x2fa   : > { %v3051_v44 = vmax.f32 %v2925_v49, 0.0  ;;  %v2928_v36 = vadd.f32 %v2927_v20, %v2767_v63  ;;  %2873 = vmatprep.mubr.bf16.mxu1 %v2525_v16  ;;  %v2319_v63 = vsel %vm1342_vm13, %v6951_v59, %v2127_v22 }
 0x2fb   : > { %v2352_v4 = vsel %vm2320_vm15, %v2319_v63, %v2159_v13 }
 0x2fc   : > { %3083 = vst.msk [vmem:[%s7087_s28] sm:$0xff] %vm1342_vm13, %v3051_v44  ;;  %v3147_v48 = vcombine.high %v3051_v44, %v3051_v44  ;;  %v3154_v30 = vrot.slane %v3051_v44, %v7080_v52  ;;  %v3052_v25 = vmax.f32 %v2928_v36, 0.0  ;;  %v2223_v43 = vpop.permute.xlu0 %2222  ;;  %v2191_v36 = vpop.permute.xlu1 %2190 }
 0x2fe   : > { %v3161_v41 = vrot.slane %v3147_v48, %v7080_v52  ;;  %v3162_v10 = vcombine.high %v3154_v30, %v3154_v30  ;;  %3084 = vst.msk [vmem:[%s7087_s28 + $0x8] sm:$0xff] %vm1342_vm13, %v3052_v25  ;;  %v3164_v60 = vcombine.high %v3052_v25, %v3052_v25  ;;  %v7098_v29 = vpop.f32.mrb[40].mxu0  ;;  %v3171_v45 = vrot.slane %v3052_v25, %v7080_v52 }
 0x2ff   : > { %v7101_v6 = vpop.f32.mrb[41].mxu0  ;;  %v3820_v24 = vsel %vm3819_vm1, %v3154_v30, -inf  ;;  %2874 = vmatmul.mubr.bf16.gmra.mrb[52].mxu1 %v2397_v14  ;;  %v2449_v30 = vsel %vm1342_vm13, %v6995_v38, %v2223_v43 }
 0x300   : > { %v3163_v26 = vcombine.high %v3161_v41, %v3161_v41  ;;  %v3827_v9 = vsel %vm3819_vm1, %v3162_v10, -inf  ;;  %v3178_v51 = vrot.slane %v3164_v60, %v7080_v52  ;;  %v7107_v39 = vpop.f32.mrb[42].mxu0  ;;  %v3834_v23 = vsel %vm3819_vm1, %v3161_v41, -inf  ;;  %v2255_v1 = vpop.permute.xlu0 %2254 }
 0x301   : > { %v3179_v3 = vcombine.high %v3171_v45, %v3171_v45  ;;  %v7110_v47 = vpop.f32.mrb[43].mxu0  ;;  %v3848_v53 = vsel %vm3819_vm1, %v3171_v45, -inf  ;;  %v3821_v12 = vrot.slane %v3820_v24, 4  ;;  %v3828_v46 = vrot.slane %v3827_v9, 4 }
 0x302   : > { %v3841_v32 = vsel %vm3819_vm1, %v3163_v26, -inf  ;;  %v3180_v18 = vcombine.high %v3178_v51, %v3178_v51  ;;  %v3862_v37 = vsel %vm3819_vm1, %v3178_v51, -inf  ;;  %v3835_v28 = vrot.slane %v3834_v23, 4 }
 0x303   : > { %v3842_v15 = vrot.slane %v3841_v32, 4  ;;  %v3855_v54 = vsel %vm3819_vm1, %v3179_v3, -inf  ;;  %v3849_v42 = vrot.slane %v3848_v53, 4  ;;  %v3863_v31 = vrot.slane %v3862_v37, 4 }
 0x304   : > { %v3869_v2 = vsel %vm3819_vm1, %v3180_v18, -inf  ;;  %v3856_v58 = vrot.slane %v3855_v54, 4  ;;  %v3822_v7 = vmax.f32 %v3820_v24, %v3821_v12  ;;  %v3829_v35 = vmax.f32 %v3827_v9, %v3828_v46  ;;  %v2287_v16 = vpop.permute.xlu0 %2286 }
 0x305   : > { %v3870_v50 = vrot.slane %v3869_v2, 4  ;;  %v3836_v61 = vmax.f32 %v3834_v23, %v3835_v28  ;;  %v3843_v55 = vmax.f32 %v3841_v32, %v3842_v15  ;;  %v3850_v0 = vmax.f32 %v3848_v53, %v3849_v42 }
 0x306   : > { %v7117_v11 = vpop.f32.mrb[44].mxu0  ;;  %v3857_v21 = vmax.f32 %v3855_v54, %v3856_v58  ;;  %v3864_v19 = vmax.f32 %v3862_v37, %v3863_v31  ;;  %v3823_v20 = vrot.slane %v3822_v7, 2  ;;  %v3830_v27 = vrot.slane %v3829_v35, 2 }
 0x307   : > { %v7119_v62 = vpop.f32.mrb[45].mxu0  ;;  %v3871_v49 = vmax.f32 %v3869_v2, %v3870_v50  ;;  %v3837_v40 = vrot.slane %v3836_v61, 2  ;;  %v3844_v44 = vrot.slane %v3843_v55, 2  ;;  %v3851_v48 = vrot.slane %v3850_v0, 2 }
 0x308   : > { %v7121_v8 = vpop.f32.mrb[46].mxu0  ;;  %v3858_v25 = vrot.slane %v3857_v21, 2  ;;  %v3865_v56 = vrot.slane %v3864_v19, 2  ;;  %v2481_v41 = vsel %vm2320_vm15, %v2449_v30, %v2255_v1  ;;  %v2400_v60 = vsel %vm2353_vm0, %v2352_v4, %v2191_v36 }
 0x309   : > { %v7123_v57 = vpop.f32.mrb[47].mxu0  ;;  %v3872_v33 = vrot.slane %v3871_v49, 2  ;;  %v2528_v59 = vsel %vm2353_vm0, %v2481_v41, %v2287_v16  ;;  %v3824_v45 = vmax.f32 %v3822_v7, %v3823_v20  ;;  %v3831_v14 = vmax.f32 %v3829_v35, %v3830_v27 }
 0x30a   : > { %v3838_v26 = vmax.f32 %v3836_v61, %v3837_v40  ;;  %v3845_v24 = vmax.f32 %v3843_v55, %v3844_v44  ;;  %2881 = vmatprep.mubr.bf16.mxu1 %v2528_v59  ;;  %v3852_v51 = vmax.f32 %v3850_v0, %v3851_v48  ;;  %v3859_v43 = vmax.f32 %v3857_v21, %v3858_v25 }
 0x30b   : > { %2882 = vmatmul.mubr.bf16.gmra.mrb[56].mxu1 %v2400_v60  ;;  %v3866_v23 = vmax.f32 %v3864_v19, %v3865_v56  ;;  %v3873_v3 = vmax.f32 %v3871_v49, %v3872_v33  ;;  %v3825_v18 = vrot.slane %v3824_v45, 1  ;;  %v3832_v53 = vrot.slane %v3831_v14, 1 }
 0x30c   : > { %v3839_v12 = vrot.slane %v3838_v26, 1  ;;  %v3846_v46 = vrot.slane %v3845_v24, 1  ;;  %v3853_v54 = vrot.slane %v3852_v51, 1  ;;  %v3860_v2 = vrot.slane %v3859_v43, 1 }
 0x30d   : > { %v3867_v13 = vrot.slane %v3866_v23, 1  ;;  %v3874_v42 = vrot.slane %v3873_v3, 1  ;;  %v3826_v35 = vmax.f32 %v3824_v45, %v3825_v18  ;;  %v3833_v61 = vmax.f32 %v3831_v14, %v3832_v53 }
 0x30e   : > { %v7131_v10 = vpop.f32.mrb[48].mxu0  ;;  %v3840_v55 = vmax.f32 %v3838_v26, %v3839_v12  ;;  %v3847_v0 = vmax.f32 %v3845_v24, %v3846_v46  ;;  %v3854_v20 = vmax.f32 %v3852_v51, %v3853_v54  ;;  %v3861_v27 = vmax.f32 %v3859_v43, %v3860_v2 }
 0x30f   : > { %v7135_v22 = vpop.f32.mrb[49].mxu0  ;;  %v3868_v40 = vmax.f32 %v3866_v23, %v3867_v13  ;;  %v3875_v44 = vmax.f32 %v3873_v3, %v3874_v42  ;;  %v7154_v48 = vsel %vm1342_vm13, %v3826_v35, -inf  ;;  %v7157_v30 = vsel %vm1342_vm13, %v3833_v61, -inf }
 0x310   : > { %v7137_v9 = vpop.f32.mrb[50].mxu0  ;;  %v7163_v25 = vsel %vm1342_vm13, %v3847_v0, -inf  ;;  %v7169_v45 = vsel %vm1342_vm13, %v3854_v20, -inf  ;;  %v7172_v14 = vsel %vm1342_vm13, %v3861_v27, -inf }
 0x311   : > { %v7139_v38 = vpop.f32.mrb[51].mxu0  ;;  %v7175_v26 = vsel %vm1342_vm13, %v3868_v40, -inf  ;;  %v7178_v24 = vsel %vm1342_vm13, %v3875_v44, -inf }
 0x313   : > { %v5311_v32 = vpop.f32.mrb[0].mxu1 }
 0x314   : > { %v5312_v37 = vpop.f32.mrb[1].mxu1 }
 0x315   : > { %v5313_v28 = vadd.f32 %v5312_v37, %v5311_v32  ;;  %v5314_v15 = vpop.f32.mrb[2].mxu1 }
 0x316   : > { %v5315_v58 = vpop.f32.mrb[3].mxu1  ;;  %v7141_v31 = vpop.f32.mrb[52].mxu0 }
 0x317   : > { %v2772_v50 = vadd.f32 %v5313_v28, %v7066_v34  ;;  %v5316_v1 = vadd.f32 %v5315_v58, %v5314_v15  ;;  %v7144_v7 = vpop.f32.mrb[53].mxu0 }
 0x318   : > { %v7146_v21 = vpop.f32.mrb[54].mxu0 }
 0x319   : > { %v2933_v19 = vadd.f32 %v7074_v5, %v2772_v50  ;;  %v2775_v49 = vadd.f32 %v5316_v1, %v7066_v34  ;;  %v7150_v63 = vpop.f32.mrb[55].mxu0  ;;  %v7160_v5 = vsel %vm1342_vm13, %v3840_v55, -inf }
 0x31b   : > { %v3053_v36 = vmax.f32 %v2933_v19, 0.0  ;;  %v2936_v16 = vadd.f32 %v7082_v17, %v2775_v49  ;;  %v5317_v4 = vpop.f32.mrb[4].mxu1 }
 0x31c   : > { %v5318_v56 = vpop.f32.mrb[5].mxu1 }
 0x31d   : > { %3085 = vst.msk [vmem:[%s7087_s28 + $0x10] sm:$0xff] %vm1342_vm13, %v3053_v36  ;;  %v3181_v33 = vcombine.high %v3053_v36, %v3053_v36  ;;  %v3188_v17 = vrot.slane %v3053_v36, %v7080_v52  ;;  %v3054_v41 = vmax.f32 %v2936_v16, 0.0  ;;  %v5319_v59 = vadd.f32 %v5318_v56, %v5317_v4  ;;  %v5320_v60 = vpop.f32.mrb[6].mxu1 }
 0x31e   : > { %v5321_v51 = vpop.f32.mrb[7].mxu1 }
 0x31f   : > { %v3195_v43 = vrot.slane %v3181_v33, %v7080_v52  ;;  %v3196_v23 = vcombine.high %v3188_v17, %v3188_v17  ;;  %v3876_v3 = vsel %vm3819_vm1, %v3188_v17, -inf  ;;  %3086 = vst.msk [vmem:[%s7087_s28 + $0x18] sm:$0xff] %vm1342_vm13, %v3054_v41  ;;  %v3198_v32 = vcombine.high %v3054_v41, %v3054_v41 }
 0x320   : > { %v3877_v18 = vrot.slane %v3876_v3, 4  ;;  %v3205_v53 = vrot.slane %v3054_v41, %v7080_v52  ;;  %v7186_v12 = vadd.f32 %v5319_v59, %v7066_v34  ;;  %v7188_v46 = vadd.f32 %v5321_v51, %v5320_v60 }
 0x321   : > { %v3197_v37 = vcombine.high %v3195_v43, %v3195_v43  ;;  %v3883_v28 = vsel %vm3819_vm1, %v3196_v23, -inf  ;;  %v3890_v15 = vsel %vm3819_vm1, %v3195_v43, -inf  ;;  %v3212_v54 = vrot.slane %v3198_v32, %v7080_v52 }
 0x322   : > { %v3878_v2 = vmax.f32 %v3876_v3, %v3877_v18  ;;  %v3884_v13 = vrot.slane %v3883_v28, 4  ;;  %v3891_v42 = vrot.slane %v3890_v15, 4  ;;  %v3213_v58 = vcombine.high %v3205_v53, %v3205_v53 }
 0x323   : > { %v3897_v50 = vsel %vm3819_vm1, %v3197_v37, -inf  ;;  %v3214_v1 = vcombine.high %v3212_v54, %v3212_v54  ;;  %v3904_v35 = vsel %vm3819_vm1, %v3205_v53, -inf  ;;  %v3918_v61 = vsel %vm3819_vm1, %v3212_v54, -inf }
 0x324   : > { %v3879_v55 = vrot.slane %v3878_v2, 2  ;;  %v3885_v0 = vmax.f32 %v3883_v28, %v3884_v13  ;;  %v3892_v19 = vmax.f32 %v3890_v15, %v3891_v42  ;;  %v3898_v49 = vrot.slane %v3897_v50, 4 }
 0x325   : > { %v3905_v20 = vrot.slane %v3904_v35, 4  ;;  %v3911_v27 = vsel %vm3819_vm1, %v3213_v58, -inf  ;;  %v3919_v40 = vrot.slane %v3918_v61, 4  ;;  %v3925_v44 = vsel %vm3819_vm1, %v3214_v1, -inf }
 0x326   : > { %v3880_v36 = vmax.f32 %v3878_v2, %v3879_v55  ;;  %v3886_v16 = vrot.slane %v3885_v0, 2  ;;  %v3893_v4 = vrot.slane %v3892_v19, 2  ;;  %v3899_v56 = vmax.f32 %v3897_v50, %v3898_v49 }
 0x327   : > { %v3906_v33 = vmax.f32 %v3904_v35, %v3905_v20  ;;  %v3912_v17 = vrot.slane %v3911_v27, 4  ;;  %v3920_v41 = vmax.f32 %v3918_v61, %v3919_v40  ;;  %v3926_v59 = vrot.slane %v3925_v44, 4 }
 0x328   : > { %v3881_v60 = vrot.slane %v3880_v36, 1  ;;  %v3887_v51 = vmax.f32 %v3885_v0, %v3886_v16  ;;  %v3894_v43 = vmax.f32 %v3892_v19, %v3893_v4  ;;  %v3900_v23 = vrot.slane %v3899_v56, 2 }
 0x329   : > { %v3907_v3 = vrot.slane %v3906_v33, 2  ;;  %v3913_v32 = vmax.f32 %v3911_v27, %v3912_v17  ;;  %v3921_v18 = vrot.slane %v3920_v41, 2  ;;  %v3927_v53 = vmax.f32 %v3925_v44, %v3926_v59 }
 0x32a   : > { %v3882_v37 = vmax.f32 %v3880_v36, %v3881_v60  ;;  %v3888_v28 = vrot.slane %v3887_v51, 1  ;;  %v3895_v15 = vrot.slane %v3894_v43, 1  ;;  %v3901_v54 = vmax.f32 %v3899_v56, %v3900_v23 }
 0x32b   : > { %v3908_v2 = vmax.f32 %v3906_v33, %v3907_v3  ;;  %v3914_v13 = vrot.slane %v3913_v32, 2  ;;  %v3922_v42 = vmax.f32 %v3920_v41, %v3921_v18  ;;  %v3928_v58 = vrot.slane %v3927_v53, 2 }
 0x32c   : > { %v3889_v50 = vmax.f32 %v3887_v51, %v3888_v28  ;;  %v3896_v1 = vmax.f32 %v3894_v43, %v3895_v15  ;;  %v3902_v35 = vrot.slane %v3901_v54, 1  ;;  %v4717_v61 = vsel %vm1342_vm13, %v3882_v37, -inf }
 0x32d   : > { %v4718_v55 = vmax.f32 %v7154_v48, %v4717_v61  ;;  %v3909_v0 = vrot.slane %v3908_v2, 1  ;;  %v3915_v19 = vmax.f32 %v3913_v32, %v3914_v13  ;;  %v3923_v49 = vrot.slane %v3922_v42, 1 }
 0x32e   : > { %v3903_v20 = vmax.f32 %v3901_v54, %v3902_v35  ;;  %v4720_v27 = vsel %vm1342_vm13, %v3889_v50, -inf  ;;  %v4723_v40 = vsel %vm1342_vm13, %v3896_v1, -inf  ;;  %v3929_v44 = vmax.f32 %v3927_v53, %v3928_v58  ;;  %v7202_v36 = vpop.f32.mrb[56].mxu0 }
 0x32f   : > { %v4721_v16 = vmax.f32 %v7157_v30, %v4720_v27  ;;  %v4724_v4 = vmax.f32 %v7160_v5, %v4723_v40  ;;  %v3910_v56 = vmax.f32 %v3908_v2, %v3909_v0  ;;  %v3916_v33 = vrot.slane %v3915_v19, 1  ;;  %v7206_v48 = vpop.f32.mrb[57].mxu0 }
 0x330   : > { %v4726_v17 = vsel %vm1342_vm13, %v3903_v20, -inf  ;;  %v3924_v41 = vmax.f32 %v3922_v42, %v3923_v49  ;;  %v3930_v59 = vrot.slane %v3929_v44, 1  ;;  %v2941_v60 = vadd.f32 %v7101_v6, %v7186_v12  ;;  %v7211_v51 = vpop.f32.mrb[58].mxu0 }
 0x331   : > { %v4727_v43 = vmax.f32 %v7163_v25, %v4726_v17  ;;  %v4973_v30 = vsel %vm4972_vm2, %v4721_v16, %v4718_v55  ;;  %v3917_v23 = vmax.f32 %v3915_v19, %v3916_v33  ;;  %v4729_v5 = vsel %vm1342_vm13, %v3910_v56, -inf  ;;  %v7216_v3 = vpop.f32.mrb[59].mxu0 }
 0x332   : > { %v4975_v32 = vsel %vm4974_vm3, %v4724_v4, %v4973_v30  ;;  %v3931_v18 = vmax.f32 %v3929_v44, %v3930_v59  ;;  %v4730_v53 = vmax.f32 %v7169_v45, %v4729_v5  ;;  %v4735_v37 = vsel %vm1342_vm13, %v3924_v41, -inf }
 0x333   : > { %v4732_v6 = vsel %vm1342_vm13, %v3917_v23, -inf  ;;  %v4736_v25 = vmax.f32 %v7175_v26, %v4735_v37  ;;  %v4977_v12 = vsel %vm4976_vm4, %v4727_v43, %v4975_v32  ;;  %v3055_v28 = vmax.f32 %v2941_v60, 0.0  ;;  %v5323_v15 = vpop.f32.mrb[8].mxu1 }
 0x334   : > { %v4733_v54 = vmax.f32 %v7172_v14, %v4732_v6  ;;  %v4738_v2 = vsel %vm1342_vm13, %v3931_v18, -inf  ;;  %v4979_v13 = vsel %vm4978_vm5, %v4730_v53, %v4977_v12  ;;  %v2783_v45 = vadd.f32 %v7188_v46, %v7066_v34  ;;  %v5324_v42 = vpop.f32.mrb[9].mxu1 }
 0x335   : > { %v4739_v58 = vmax.f32 %v7178_v24, %v4738_v2  ;;  %3087 = vst.msk [vmem:[%s7087_s28 + $0x20] sm:$0xff] %vm1342_vm13, %v3055_v28  ;;  %v3215_v50 = vcombine.high %v3055_v28, %v3055_v28  ;;  %v3222_v26 = vrot.slane %v3055_v28, %v7080_v52  ;;  %v5325_v1 = vadd.f32 %v5324_v42, %v5323_v15  ;;  %v5326_v35 = vpop.f32.mrb[10].mxu1 }
 0x336   : > { %v4981_v61 = vsel %vm4980_vm6, %v4733_v54, %v4979_v13  ;;  %v2944_v14 = vadd.f32 %v7110_v47, %v2783_v45  ;;  %v5327_v55 = vpop.f32.mrb[11].mxu1 }
 0x337   : > { %v4983_v0 = vsel %vm4982_vm7, %v4736_v25, %v4981_v61  ;;  %v3229_v19 = vrot.slane %v3215_v50, %v7080_v52  ;;  %v3230_v46 = vcombine.high %v3222_v26, %v3222_v26  ;;  %v3932_v24 = vsel %vm3819_vm1, %v3222_v26, -inf }
 0x338   : > { %v4985_v49 = vsel %vm4984_vm8, %v4739_v58, %v4983_v0  ;;  %v3933_v20 = vrot.slane %v3932_v24, 4  ;;  %v3056_v27 = vmax.f32 %v2944_v14, 0.0  ;;  %v2788_v40 = vadd.f32 %v5325_v1, %v7066_v34 }
 0x339   : > { %5043 = vst.msk [vmem:[%s7241_s9] sm:$0xff] %vm1342_vm13, %v4985_v49  ;;  %v3231_v47 = vcombine.high %v3229_v19, %v3229_v19  ;;  %v3939_v44 = vsel %vm3819_vm1, %v3230_v46, -inf  ;;  %v3946_v16 = vsel %vm3819_vm1, %v3229_v19, -inf  ;;  %v5328_v4 = vadd.f32 %v5327_v55, %v5326_v35 }
 0x33a   : > { %v3934_v56 = vmax.f32 %v3932_v24, %v3933_v20  ;;  %v3940_v33 = vrot.slane %v3939_v44, 4  ;;  %v3947_v17 = vrot.slane %v3946_v16, 4  ;;  %3088 = vst.msk [vmem:[%s7087_s28 + $0x28] sm:$0xff] %vm1342_vm13, %v3056_v27  ;;  %v3232_v41 = vcombine.high %v3056_v27, %v3056_v27 }
 0x33b   : > { %v3953_v59 = vsel %vm3819_vm1, %v3231_v47, -inf  ;;  %v3239_v60 = vrot.slane %v3056_v27, %v7080_v52  ;;  %v2949_v43 = vadd.f32 %v7098_v29, %v2788_v40  ;;  %v2791_v30 = vadd.f32 %v5328_v4, %v7066_v34  ;;  %v7253_v23 = vpop.f32.mrb[12].mxu1 }
 0x33c   : > { %v3935_v5 = vrot.slane %v3934_v56, 2  ;;  %v3941_v32 = vmax.f32 %v3939_v44, %v3940_v33  ;;  %v3948_v18 = vmax.f32 %v3946_v16, %v3947_v17  ;;  %v3954_v53 = vrot.slane %v3953_v59, 4  ;;  %v7255_v37 = vpop.f32.mrb[13].mxu1 }
 0x33d   : > { %v3246_v6 = vrot.slane %v3232_v41, %v7080_v52  ;;  %v3247_v25 = vcombine.high %v3239_v60, %v3239_v60  ;;  %v3960_v12 = vsel %vm3819_vm1, %v3239_v60, -inf  ;;  %v3057_v28 = vmax.f32 %v2949_v43, 0.0  ;;  %v7259_v15 = vpop.f32.mrb[14].mxu1 }
 0x33e   : > { %v3936_v29 = vmax.f32 %v3934_v56, %v3935_v5  ;;  %v3942_v54 = vrot.slane %v3941_v32, 2  ;;  %v3949_v2 = vrot.slane %v3948_v18, 2  ;;  %v3955_v13 = vmax.f32 %v3953_v59, %v3954_v53  ;;  %v7261_v45 = vpop.f32.mrb[15].mxu1 }
 0x33f   : > { %v3248_v42 = vcombine.high %v3246_v6, %v3246_v6  ;;  %v3961_v58 = vrot.slane %v3960_v12, 4  ;;  %v3967_v50 = vsel %vm3819_vm1, %v3247_v25, -inf  ;;  %v3974_v26 = vsel %vm3819_vm1, %v3246_v6, -inf  ;;  %3089 = vst.msk [vmem:[%s7087_s28 + $0x30] sm:$0xff] %vm1342_vm13, %v3057_v28 }
 0x340   : > { %v3937_v1 = vrot.slane %v3936_v29, 1  ;;  %v3943_v35 = vmax.f32 %v3941_v32, %v3942_v54  ;;  %v3950_v61 = vmax.f32 %v3948_v18, %v3949_v2  ;;  %v3956_v14 = vrot.slane %v3955_v13, 2 }
 0x341   : > { %v3962_v55 = vmax.f32 %v3960_v12, %v3961_v58  ;;  %v3968_v0 = vrot.slane %v3967_v50, 4  ;;  %v3975_v19 = vrot.slane %v3974_v26, 4  ;;  %v3981_v46 = vsel %vm3819_vm1, %v3248_v42, -inf }
 0x342   : > { %v3938_v24 = vmax.f32 %v3936_v29, %v3937_v1  ;;  %v3944_v49 = vrot.slane %v3943_v35, 1  ;;  %v3951_v20 = vrot.slane %v3950_v61, 1  ;;  %v3957_v27 = vmax.f32 %v3955_v13, %v3956_v14 }
 0x343   : > { %v3963_v40 = vrot.slane %v3962_v55, 2  ;;  %v3969_v47 = vmax.f32 %v3967_v50, %v3968_v0  ;;  %v3976_v44 = vmax.f32 %v3974_v26, %v3975_v19  ;;  %v3982_v16 = vrot.slane %v3981_v46, 4 }
 0x344   : > { %v3945_v4 = vmax.f32 %v3943_v35, %v3944_v49  ;;  %v3952_v56 = vmax.f32 %v3950_v61, %v3951_v20  ;;  %v3958_v33 = vrot.slane %v3957_v27, 1  ;;  %v7269_v17 = vsel %vm1342_vm13, %v3938_v24, -inf }
 0x345   : > { %v3964_v41 = vmax.f32 %v3962_v55, %v3963_v40  ;;  %v3970_v59 = vrot.slane %v3969_v47, 2  ;;  %v3977_v60 = vrot.slane %v3976_v44, 2  ;;  %v3983_v43 = vmax.f32 %v3981_v46, %v3982_v16 }
 0x346   : > { %v3959_v5 = vmax.f32 %v3957_v27, %v3958_v33  ;;  %v7272_v32 = vsel %vm1342_vm13, %v3945_v4, -inf  ;;  %v7275_v18 = vsel %vm1342_vm13, %v3952_v56, -inf  ;;  %v3249_v53 = vcombine.high %v3057_v28, %v3057_v28 }
 0x347   : > { %v3965_v6 = vrot.slane %v3964_v41, 1  ;;  %v3971_v25 = vmax.f32 %v3969_v47, %v3970_v59  ;;  %v3978_v12 = vmax.f32 %v3976_v44, %v3977_v60  ;;  %v3984_v29 = vrot.slane %v3983_v43, 2 }
 0x348   : > { %v7278_v54 = vsel %vm1342_vm13, %v3959_v5, -inf  ;;  %v3256_v2 = vrot.slane %v3057_v28, %v7080_v52  ;;  %v3263_v13 = vrot.slane %v3249_v53, %v7080_v52  ;;  %v2952_v42 = vadd.f32 %v7107_v39, %v2791_v30 }
 0x349   : > { %v3966_v58 = vmax.f32 %v3964_v41, %v3965_v6  ;;  %v3972_v50 = vrot.slane %v3971_v25, 1  ;;  %v3979_v26 = vrot.slane %v3978_v12, 1  ;;  %v3985_v1 = vmax.f32 %v3983_v43, %v3984_v29 }
 0x34a   : > { %v3264_v35 = vcombine.high %v3256_v2, %v3256_v2  ;;  %v3265_v61 = vcombine.high %v3263_v13, %v3263_v13  ;;  %v3988_v14 = vsel %vm3819_vm1, %v3256_v2, -inf  ;;  %v4002_v55 = vsel %vm3819_vm1, %v3263_v13, -inf }
 0x34b   : > { %v3973_v0 = vmax.f32 %v3971_v25, %v3972_v50  ;;  %v3980_v19 = vmax.f32 %v3978_v12, %v3979_v26  ;;  %v3986_v46 = vrot.slane %v3985_v1, 1  ;;  %v7286_v24 = vsel %vm1342_vm13, %v3966_v58, -inf }
 0x34c   : > { %v3989_v28 = vrot.slane %v3988_v14, 4  ;;  %v3995_v49 = vsel %vm3819_vm1, %v3264_v35, -inf  ;;  %v4003_v39 = vrot.slane %v4002_v55, 4  ;;  %v4009_v30 = vsel %vm3819_vm1, %v3265_v61, -inf }
 0x34d   : > { %v3987_v20 = vmax.f32 %v3985_v1, %v3986_v46  ;;  %v7291_v27 = vsel %vm1342_vm13, %v3973_v0, -inf  ;;  %v7294_v40 = vsel %vm1342_vm13, %v3980_v19, -inf  ;;  %v3996_v47 = vrot.slane %v3995_v49, 4  ;;  %v7296_v44 = vpop.f32.mrb[60].mxu0 }
 0x34e   : > { %8185 = vst [vmem:[#allocation8_spill] sm:$0xff] %v7296_v44  ;;  %v3990_v16 = vmax.f32 %v3988_v14, %v3989_v28  ;;  %v4004_v4 = vmax.f32 %v4002_v55, %v4003_v39  ;;  %v4010_v56 = vrot.slane %v4009_v30, 4  ;;  %v3058_v33 = vmax.f32 %v2952_v42, 0.0  ;;  %v7298_v41 = vpop.f32.mrb[61].mxu0 }
 0x34f   : > { %v7301_v59 = vsel %vm1342_vm13, %v3987_v20, -inf  ;;  %v3997_v60 = vmax.f32 %v3995_v49, %v3996_v47  ;;  %v5331_v43 = vadd.f32 %v7255_v37, %v7253_v23  ;;  %v5334_v5 = vadd.f32 %v7261_v45, %v7259_v15  ;;  %v7307_v53 = vpop.f32.mrb[62].mxu0 }
 0x350   : > { %8186 = vst [vmem:[#allocation9_spill] sm:$0xff] %v7307_v53  ;;  %v3991_v6 = vrot.slane %v3990_v16, 2  ;;  %v4005_v25 = vrot.slane %v4004_v4, 2  ;;  %v4011_v12 = vmax.f32 %v4009_v30, %v4010_v56  ;;  %3090 = vst.msk [vmem:[%s7087_s28 + $0x38] sm:$0xff] %vm1342_vm13, %v3058_v33  ;;  %v3266_v29 = vcombine.high %v3058_v33, %v3058_v33  ;;  %v7311_v2 = vpop.f32.mrb[63].mxu0 }
 0x351   : > { %8187 = vst [vmem:[#allocation10_spill] sm:$0xff] %v7311_v2  ;;  %v3998_v13 = vrot.slane %v3997_v60, 2  ;;  %v3273_v42 = vrot.slane %v3058_v33, %v7080_v52  ;;  %v2796_v58 = vadd.f32 %v5331_v43, %v7066_v34  ;;  %v2799_v23 = vadd.f32 %v5334_v5, %v7066_v34 }
 0x352   : > { %v3992_v37 = vmax.f32 %v3990_v16, %v3991_v6  ;;  %v4006_v50 = vmax.f32 %v4004_v4, %v4005_v25  ;;  %v4012_v15 = vrot.slane %v4011_v12, 2  ;;  %v3280_v45 = vrot.slane %v3266_v29, %v7080_v52 }
 0x353   : > { %v3999_v26 = vmax.f32 %v3997_v60, %v3998_v13  ;;  %v3281_v1 = vcombine.high %v3273_v42, %v3273_v42  ;;  %v4016_v35 = vsel %vm3819_vm1, %v3273_v42, -inf  ;;  %v2957_v61 = vadd.f32 %v7119_v62, %v2796_v58  ;;  %v7319_v14 = vpop.f32.mrb[16].mxu1 }
 0x354   : > { %v3993_v55 = vrot.slane %v3992_v37, 1  ;;  %v4007_v0 = vrot.slane %v4006_v50, 1  ;;  %v4013_v19 = vmax.f32 %v4011_v12, %v4012_v15  ;;  %v3282_v46 = vcombine.high %v3280_v45, %v3280_v45  ;;  %v7321_v28 = vpop.f32.mrb[17].mxu1 }
 0x355   : > { %v4000_v34 = vrot.slane %v3999_v26, 1  ;;  %v4017_v49 = vrot.slane %v4016_v35, 4  ;;  %v4023_v39 = vsel %vm3819_vm1, %v3281_v1, -inf  ;;  %v4030_v30 = vsel %vm3819_vm1, %v3280_v45, -inf  ;;  %v7325_v20 = vpop.f32.mrb[18].mxu1 }
 0x356   : > { %v3994_v47 = vmax.f32 %v3992_v37, %v3993_v55  ;;  %v4008_v16 = vmax.f32 %v4006_v50, %v4007_v0  ;;  %v4014_v4 = vrot.slane %v4013_v19, 1  ;;  %v4024_v62 = vrot.slane %v4023_v39, 4  ;;  %v7327_v56 = vpop.f32.mrb[19].mxu1 }
 0x357   : > { %v4001_v33 = vmax.f32 %v3999_v26, %v4000_v34  ;;  %v4018_v60 = vmax.f32 %v4016_v35, %v4017_v49  ;;  %v4031_v43 = vrot.slane %v4030_v30, 4  ;;  %v4037_v5 = vsel %vm3819_vm1, %v3282_v46, -inf }
 0x358   : > { %v4015_v6 = vmax.f32 %v4013_v19, %v4014_v4  ;;  %v4741_v25 = vsel %vm1342_vm13, %v3994_v47, -inf  ;;  %v4747_v12 = vsel %vm1342_vm13, %v4008_v16, -inf  ;;  %v4025_v29 = vmax.f32 %v4023_v39, %v4024_v62 }
 0x359   : > { %v4742_v13 = vmax.f32 %v7269_v17, %v4741_v25  ;;  %v4744_v42 = vsel %vm1342_vm13, %v4001_v33, -inf  ;;  %v4748_v58 = vmax.f32 %v7275_v18, %v4747_v12  ;;  %v4019_v37 = vrot.slane %v4018_v60, 2 }
 0x35a   : > { %v4745_v50 = vmax.f32 %v7272_v32, %v4744_v42  ;;  %v4750_v15 = vsel %vm1342_vm13, %v4015_v6, -inf  ;;  %v4026_v45 = vrot.slane %v4025_v29, 2  ;;  %v4032_v26 = vmax.f32 %v4030_v30, %v4031_v43 }
 0x35b   : > { %v4751_v1 = vmax.f32 %v7278_v54, %v4750_v15  ;;  %v4020_v35 = vmax.f32 %v4018_v60, %v4019_v37  ;;  %v4038_v55 = vrot.slane %v4037_v5, 4  ;;  %v3059_v0 = vmax.f32 %v2957_v61, 0.0  ;;  %v7338_v19 = vpop.f32.mrb[20].mxu1 }
 0x35c   : > { %v4986_v17 = vsel %vm4972_vm2, %v4745_v50, %v4742_v13  ;;  %v4027_v46 = vmax.f32 %v4025_v29, %v4026_v45  ;;  %v4033_v34 = vrot.slane %v4032_v26, 2  ;;  %v2960_v18 = vadd.f32 %v7123_v57, %v2799_v23  ;;  %v7342_v49 = vpop.f32.mrb[21].mxu1 }
 0x35d   : > { %v4987_v32 = vsel %vm4974_vm3, %v4748_v58, %v4986_v17  ;;  %v4021_v39 = vrot.slane %v4020_v35, 1  ;;  %v4039_v47 = vmax.f32 %v4037_v5, %v4038_v55  ;;  %3091 = vst.msk [vmem:[%s7087_s28 + $0x40] sm:$0xff] %vm1342_vm13, %v3059_v0  ;;  %v3283_v54 = vcombine.high %v3059_v0, %v3059_v0  ;;  %v7347_v30 = vpop.f32.mrb[22].mxu1 }
 0x35e   : > { %v4028_v61 = vrot.slane %v4027_v46, 1  ;;  %v4034_v16 = vmax.f32 %v4032_v26, %v4033_v34  ;;  %v4988_v4 = vsel %vm4976_vm4, %v4751_v1, %v4987_v32  ;;  %v3290_v62 = vrot.slane %v3059_v0, %v7080_v52  ;;  %v7351_v33 = vpop.f32.mrb[23].mxu1 }
 0x35f   : > { %v4022_v57 = vmax.f32 %v4020_v35, %v4021_v39  ;;  %v4040_v23 = vrot.slane %v4039_v47, 2  ;;  %v3297_v60 = vrot.slane %v3283_v54, %v7080_v52  ;;  %v3060_v43 = vmax.f32 %v2960_v18, 0.0 }
 0x360   : > { %v4029_v5 = vmax.f32 %v4027_v46, %v4028_v61  ;;  %v4035_v6 = vrot.slane %v4034_v16, 1  ;;  %v3298_v25 = vcombine.high %v3290_v62, %v3290_v62  ;;  %v4044_v12 = vsel %vm3819_vm1, %v3290_v62, -inf }
 0x361   : > { %v4041_v29 = vmax.f32 %v4039_v47, %v4040_v23  ;;  %v4753_v13 = vsel %vm1342_vm13, %v4022_v57, -inf  ;;  %v3299_v42 = vcombine.high %v3297_v60, %v3297_v60  ;;  %v4045_v58 = vrot.slane %v4044_v12, 4  ;;  %3092 = vst.msk [vmem:[%s7087_s28 + $0x48] sm:$0xff] %vm1342_vm13, %v3060_v43 }
 0x362   : > { %v4036_v37 = vmax.f32 %v4034_v16, %v4035_v6  ;;  %v4754_v50 = vmax.f32 %v7286_v24, %v4753_v13  ;;  %v4756_v15 = vsel %vm1342_vm13, %v4029_v5, -inf  ;;  %v4051_v45 = vsel %vm3819_vm1, %v3298_v25, -inf }
 0x363   : > { %v4042_v26 = vrot.slane %v4041_v29, 1  ;;  %v4757_v1 = vmax.f32 %v7291_v27, %v4756_v15  ;;  %v4046_v35 = vmax.f32 %v4044_v12, %v4045_v58  ;;  %v4052_v55 = vrot.slane %v4051_v45, 4 }
 0x364   : > { %v4759_v0 = vsel %vm1342_vm13, %v4036_v37, -inf  ;;  %v4989_v17 = vsel %vm4978_vm5, %v4754_v50, %v4988_v4  ;;  %v4058_v46 = vsel %vm3819_vm1, %v3297_v60, -inf  ;;  %v4065_v34 = vsel %vm3819_vm1, %v3299_v42, -inf }
 0x365   : > { %v4043_v18 = vmax.f32 %v4041_v29, %v4042_v26  ;;  %v4760_v24 = vmax.f32 %v7294_v40, %v4759_v0  ;;  %v4990_v32 = vsel %vm4980_vm6, %v4757_v1, %v4989_v17  ;;  %v4047_v39 = vrot.slane %v4046_v35, 2 }
 0x366   : > { %v4053_v47 = vmax.f32 %v4051_v45, %v4052_v55  ;;  %v4059_v54 = vrot.slane %v4058_v46, 4  ;;  %v4066_v61 = vrot.slane %v4065_v34, 4  ;;  %v3300_v27 = vcombine.high %v3060_v43, %v3060_v43 }
 0x367   : > { %v4762_v16 = vsel %vm1342_vm13, %v4043_v18, -inf  ;;  %v4991_v62 = vsel %vm4982_vm7, %v4760_v24, %v4990_v32  ;;  %v4048_v4 = vmax.f32 %v4046_v35, %v4047_v39  ;;  %v3307_v57 = vrot.slane %v3060_v43, %v7080_v52 }
 0x368   : > { %v4763_v23 = vmax.f32 %v7301_v59, %v4762_v16  ;;  %v4054_v60 = vrot.slane %v4053_v47, 2  ;;  %v4060_v5 = vmax.f32 %v4058_v46, %v4059_v54  ;;  %v4067_v40 = vmax.f32 %v4065_v34, %v4066_v61 }
 0x369   : > { %v4049_v6 = vrot.slane %v4048_v4, 1  ;;  %v3314_v25 = vrot.slane %v3300_v27, %v7080_v52  ;;  %v3315_v12 = vcombine.high %v3307_v57, %v3307_v57  ;;  %v4072_v29 = vsel %vm3819_vm1, %v3307_v57, -inf }
 0x36a   : > { %v4992_v13 = vsel %vm4984_vm8, %v4763_v23, %v4991_v62  ;;  %v4055_v42 = vmax.f32 %v4053_v47, %v4054_v60  ;;  %v4061_v58 = vrot.slane %v4060_v5, 2  ;;  %v4068_v37 = vrot.slane %v4067_v40, 2 }
 0x36b   : > { %5044 = vst.msk [vmem:[%s7241_s9 + $0x8] sm:$0xff] %vm1342_vm13, %v4992_v13  ;;  %v4050_v50 = vmax.f32 %v4048_v4, %v4049_v6  ;;  %v3316_v43 = vcombine.high %v3314_v25, %v3314_v25  ;;  %v4073_v15 = vrot.slane %v4072_v29, 4  ;;  %v4079_v59 = vsel %vm3819_vm1, %v3315_v12, -inf }
 0x36c   : > { %v4056_v45 = vrot.slane %v4055_v42, 1  ;;  %v4062_v26 = vmax.f32 %v4060_v5, %v4061_v58  ;;  %v4069_v1 = vmax.f32 %v4067_v40, %v4068_v37  ;;  %v4080_v35 = vrot.slane %v4079_v59, 4  ;;  %v7391_v5 = vld [vmem:[%s8178_s4] ss:$0 sm:$0xff] }
 0x36d   : > { %v7379_v55 = vsel %vm1342_vm13, %v4050_v50, -inf  ;;  %v4074_v0 = vmax.f32 %v4072_v29, %v4073_v15  ;;  %v4086_v17 = vsel %vm3819_vm1, %v3314_v25, -inf  ;;  %v4093_v46 = vsel %vm3819_vm1, %v3316_v43, -inf }
 0x36e   : > { %v4057_v34 = vmax.f32 %v4055_v42, %v4056_v45  ;;  %v4063_v18 = vrot.slane %v4062_v26, 1  ;;  %v4070_v24 = vrot.slane %v4069_v1, 1  ;;  %v4081_v32 = vmax.f32 %v4079_v59, %v4080_v35 }
 0x36f   : > { %v4075_v39 = vrot.slane %v4074_v0, 2  ;;  %v4087_v47 = vrot.slane %v4086_v17, 4  ;;  %v4094_v54 = vrot.slane %v4093_v46, 4  ;;  %v5337_v61 = vadd.f32 %v7321_v28, %v7319_v14 }
 0x370   : > { %v4064_v27 = vmax.f32 %v4062_v26, %v4063_v18  ;;  %v4071_v16 = vmax.f32 %v4069_v1, %v4070_v24  ;;  %v7386_v62 = vsel %vm1342_vm13, %v4057_v34, -inf  ;;  %v4082_v4 = vrot.slane %v4081_v32, 2 }
 0x371   : > { %v4076_v57 = vmax.f32 %v4074_v0, %v4075_v39  ;;  %v4088_v23 = vmax.f32 %v4086_v17, %v4087_v47  ;;  %v4095_v60 = vmax.f32 %v4093_v46, %v4094_v54  ;;  %v2804_v40 = vadd.f32 %v7391_v5, %v5337_v61 }
 0x372   : > { %v7395_v6 = vsel %vm1342_vm13, %v4064_v27, -inf  ;;  %v7398_v14 = vsel %vm1342_vm13, %v4071_v16, -inf  ;;  %v4083_v28 = vmax.f32 %v4081_v32, %v4082_v4  ;;  %v5340_v25 = vadd.f32 %v7327_v56, %v7325_v20  ;;  %v7402_v12 = vpop.f32.mrb[24].mxu1 }
 0x373   : > { %v4077_v29 = vrot.slane %v4076_v57, 1  ;;  %v4089_v13 = vrot.slane %v4088_v23, 2  ;;  %v4096_v42 = vrot.slane %v4095_v60, 2  ;;  %v2965_v58 = vadd.f32 %v7117_v11, %v2804_v40  ;;  %v7405_v37 = vpop.f32.mrb[25].mxu1 }
 0x374   : > { %v4084_v50 = vrot.slane %v4083_v28, 1  ;;  %v2807_v43 = vadd.f32 %v7391_v5, %v5340_v25  ;;  %v5343_v15 = vadd.f32 %v7342_v49, %v7338_v19  ;;  %v5346_v59 = vadd.f32 %v7351_v33, %v7347_v30  ;;  %v7412_v20 = vpop.f32.mrb[26].mxu1 }
 0x375   : > { %v4078_v56 = vmax.f32 %v4076_v57, %v4077_v29  ;;  %v4090_v45 = vmax.f32 %v4088_v23, %v4089_v13  ;;  %v4097_v26 = vmax.f32 %v4095_v60, %v4096_v42  ;;  %v3061_v1 = vmax.f32 %v2965_v58, 0.0  ;;  %v7414_v35 = vpop.f32.mrb[27].mxu1 }
 0x376   : > { %v4085_v11 = vmax.f32 %v4083_v28, %v4084_v50  ;;  %v2968_v0 = vadd.f32 %v7121_v8, %v2807_v43  ;;  %v2812_v17 = vadd.f32 %v7391_v5, %v5343_v15  ;;  %v2815_v46 = vadd.f32 %v7391_v5, %v5346_v59 }
 0x377   : > { %v4091_v19 = vrot.slane %v4090_v45, 1  ;;  %v4098_v49 = vrot.slane %v4097_v26, 1  ;;  %v7420_v30 = vsel %vm1342_vm13, %v4078_v56, -inf  ;;  %3093 = vst.msk [vmem:[%s7087_s28 + $0x50] sm:$0xff] %vm1342_vm13, %v3061_v1  ;;  %v3317_v33 = vcombine.high %v3061_v1, %v3061_v1 }
 0x378   : > { %v7425_v34 = vsel %vm1342_vm13, %v4085_v11, -inf  ;;  %v3324_v18 = vrot.slane %v3061_v1, %v7080_v52  ;;  %v3062_v24 = vmax.f32 %v2968_v0, 0.0  ;;  %v7429_v8 = vadd.f32 %v7135_v22, %v2812_v17 }
 0x379   : > { %v4092_v32 = vmax.f32 %v4090_v45, %v4091_v19  ;;  %v4099_v39 = vmax.f32 %v4097_v26, %v4098_v49  ;;  %v3331_v47 = vrot.slane %v3317_v33, %v7080_v52  ;;  %v7433_v54 = vadd.f32 %v7139_v38, %v2815_v46 }
 0x37a   : > { %v3332_v61 = vcombine.high %v3324_v18, %v3324_v18  ;;  %v4100_v27 = vsel %vm3819_vm1, %v3324_v18, -inf  ;;  %3094 = vst.msk [vmem:[%s7087_s28 + $0x58] sm:$0xff] %vm1342_vm13, %v3062_v24  ;;  %v3334_v16 = vcombine.high %v3062_v24, %v3062_v24  ;;  %v3341_v4 = vrot.slane %v3062_v24, %v7080_v52  ;;  %v7439_v57 = vpop.f32.mrb[28].mxu1 }
 0x37b   : > { %v7442_v22 = vsel %vm1342_vm13, %v4092_v32, -inf  ;;  %v7445_v23 = vsel %vm1342_vm13, %v4099_v39, -inf  ;;  %v3333_v60 = vcombine.high %v3331_v47, %v3331_v47  ;;  %v4101_v40 = vrot.slane %v4100_v27, 4  ;;  %v7447_v38 = vpop.f32.mrb[29].mxu1 }
 0x37c   : > { %v4107_v28 = vsel %vm3819_vm1, %v3332_v61, -inf  ;;  %v4114_v25 = vsel %vm3819_vm1, %v3331_v47, -inf  ;;  %v3348_v29 = vrot.slane %v3334_v16, %v7080_v52  ;;  %v3349_v13 = vcombine.high %v3341_v4, %v3341_v4  ;;  %v7452_v42 = vpop.f32.mrb[30].mxu1 }
 0x37d   : > { %v4102_v58 = vmax.f32 %v4100_v27, %v4101_v40  ;;  %v4108_v50 = vrot.slane %v4107_v28, 4  ;;  %v4115_v43 = vrot.slane %v4114_v25, 4  ;;  %v4121_v15 = vsel %vm3819_vm1, %v3333_v60, -inf  ;;  %v7455_v59 = vpop.f32.mrb[31].mxu1 }
 0x37e   : > { %v4122_v56 = vrot.slane %v4121_v15, 4  ;;  %v3350_v45 = vcombine.high %v3348_v29, %v3348_v29  ;;  %v4128_v26 = vsel %vm3819_vm1, %v3341_v4, -inf  ;;  %v4135_v1 = vsel %vm3819_vm1, %v3349_v13, -inf }
 0x37f   : > { %v4103_v11 = vrot.slane %v4102_v58, 2  ;;  %v4109_v0 = vmax.f32 %v4107_v28, %v4108_v50  ;;  %v4116_v17 = vmax.f32 %v4114_v25, %v4115_v43  ;;  %v4129_v46 = vrot.slane %v4128_v26, 4 }
 0x380   : > { %v4123_v19 = vmax.f32 %v4121_v15, %v4122_v56  ;;  %v4136_v49 = vrot.slane %v4135_v1, 4  ;;  %v4142_v33 = vsel %vm3819_vm1, %v3348_v29, -inf  ;;  %v4149_v18 = vsel %vm3819_vm1, %v3350_v45, -inf }
 0x381   : > { %v4104_v24 = vmax.f32 %v4102_v58, %v4103_v11  ;;  %v4110_v32 = vrot.slane %v4109_v0, 2  ;;  %v4117_v39 = vrot.slane %v4116_v17, 2  ;;  %v4130_v47 = vmax.f32 %v4128_v26, %v4129_v46 }
 0x382   : > { %v4124_v61 = vrot.slane %v4123_v19, 2  ;;  %v4137_v27 = vmax.f32 %v4135_v1, %v4136_v49  ;;  %v4143_v16 = vrot.slane %v4142_v33, 4  ;;  %v4150_v4 = vrot.slane %v4149_v18, 4 }
 0x383   : > { %v4105_v60 = vrot.slane %v4104_v24, 1  ;;  %v4111_v40 = vmax.f32 %v4109_v0, %v4110_v32  ;;  %v4118_v13 = vmax.f32 %v4116_v17, %v4117_v39  ;;  %v4131_v28 = vrot.slane %v4130_v47, 2 }
 0x384   : > { %v4125_v25 = vmax.f32 %v4123_v19, %v4124_v61  ;;  %v4138_v50 = vrot.slane %v4137_v27, 2  ;;  %v4144_v43 = vmax.f32 %v4142_v33, %v4143_v16  ;;  %v4151_v15 = vmax.f32 %v4149_v18, %v4150_v4 }
 0x385   : > { %v4106_v56 = vmax.f32 %v4104_v24, %v4105_v60  ;;  %v4112_v29 = vrot.slane %v4111_v40, 1  ;;  %v4119_v53 = vrot.slane %v4118_v13, 1  ;;  %v4132_v45 = vmax.f32 %v4130_v47, %v4131_v28 }
 0x386   : > { %v4126_v58 = vrot.slane %v4125_v25, 1  ;;  %v4139_v11 = vmax.f32 %v4137_v27, %v4138_v50  ;;  %v4145_v44 = vrot.slane %v4144_v43, 2  ;;  %v4152_v26 = vrot.slane %v4151_v15, 2 }
 0x387   : > { %v4113_v46 = vmax.f32 %v4111_v40, %v4112_v29  ;;  %v4120_v1 = vmax.f32 %v4118_v13, %v4119_v53  ;;  %v4765_v49 = vsel %vm1342_vm13, %v4106_v56, -inf  ;;  %v4133_v2 = vrot.slane %v4132_v45, 1 }
 0x388   : > { %v4127_v0 = vmax.f32 %v4125_v25, %v4126_v58  ;;  %v4766_v17 = vmax.f32 %v7379_v55, %v4765_v49  ;;  %v4140_v19 = vrot.slane %v4139_v11, 1  ;;  %v4146_v32 = vmax.f32 %v4144_v43, %v4145_v44 }
 0x389   : > { %v4768_v33 = vsel %vm1342_vm13, %v4113_v46, -inf  ;;  %v4771_v18 = vsel %vm1342_vm13, %v4120_v1, -inf  ;;  %v4134_v24 = vmax.f32 %v4132_v45, %v4133_v2  ;;  %v4153_v39 = vmax.f32 %v4151_v15, %v4152_v26 }
 0x38a   : > { %v4769_v47 = vmax.f32 %v7386_v62, %v4768_v33  ;;  %v4772_v61 = vmax.f32 %v7395_v6, %v4771_v18  ;;  %v4774_v53 = vsel %vm1342_vm13, %v4127_v0, -inf  ;;  %v4141_v27 = vmax.f32 %v4139_v11, %v4140_v19 }
 0x38b   : > { %v4775_v16 = vmax.f32 %v7398_v14, %v4774_v53  ;;  %v4147_v4 = vrot.slane %v4146_v32, 1  ;;  %v4154_v55 = vrot.slane %v4153_v39, 1  ;;  %v4777_v44 = vsel %vm1342_vm13, %v4134_v24, -inf }
 0x38c   : > { %v4993_v60 = vsel %vm4972_vm2, %v4769_v47, %v4766_v17  ;;  %v4778_v40 = vmax.f32 %v7420_v30, %v4777_v44  ;;  %v4780_v2 = vsel %vm1342_vm13, %v4141_v27, -inf  ;;  %v3063_v62 = vmax.f32 %v7429_v8, 0.0 }
 0x38d   : > { %v4994_v6 = vsel %vm4974_vm3, %v4772_v61, %v4993_v60  ;;  %v4148_v13 = vmax.f32 %v4146_v32, %v4147_v4  ;;  %v4155_v28 = vmax.f32 %v4153_v39, %v4154_v55  ;;  %v4781_v25 = vmax.f32 %v7425_v34, %v4780_v2 }
 0x38e   : > { %v4995_v14 = vsel %vm4976_vm4, %v4775_v16, %v4994_v6  ;;  %3095 = vst.msk [vmem:[%s7087_s28 + $0x60] sm:$0xff] %vm1342_vm13, %v3063_v62  ;;  %v3351_v50 = vcombine.high %v3063_v62, %v3063_v62  ;;  %v3358_v43 = vrot.slane %v3063_v62, %v7080_v52  ;;  %v3064_v30 = vmax.f32 %v7433_v54, 0.0 }
 0x38f   : > { %v4783_v15 = vsel %vm1342_vm13, %v4148_v13, -inf  ;;  %v4786_v8 = vsel %vm1342_vm13, %v4155_v28, -inf  ;;  %v4996_v56 = vsel %vm4978_vm5, %v4778_v40, %v4995_v14  ;;  %v7486_v29 = vadd.f32 %v7405_v37, %v7402_v12 }
 0x390   : > { %v4784_v34 = vmax.f32 %v7442_v22, %v4783_v15  ;;  %v4787_v45 = vmax.f32 %v7445_v23, %v4786_v8  ;;  %v4997_v58 = vsel %vm4980_vm6, %v4781_v25, %v4996_v56  ;;  %v3365_v11 = vrot.slane %v3351_v50, %v7080_v52  ;;  %3096 = vst.msk [vmem:[%s7087_s28 + $0x68] sm:$0xff] %vm1342_vm13, %v3064_v30 }
 0x391   : > { %v3366_v54 = vcombine.high %v3358_v43, %v3358_v43  ;;  %v4156_v26 = vsel %vm3819_vm1, %v3358_v43, -inf  ;;  %v3368_v46 = vcombine.high %v3064_v30, %v3064_v30  ;;  %v3375_v1 = vrot.slane %v3064_v30, %v7080_v52 }
 0x392   : > { %v4998_v12 = vsel %vm4982_vm7, %v4784_v34, %v4997_v58  ;;  %v3367_v37 = vcombine.high %v3365_v11, %v3365_v11  ;;  %v4157_v49 = vrot.slane %v4156_v26, 4  ;;  %v4170_v22 = vsel %vm3819_vm1, %v3365_v11, -inf  ;;  %v7498_v23 = vpop.f32.mrb[32].mxu1 }
 0x393   : > { %v4999_v0 = vsel %vm4984_vm8, %v4787_v45, %v4998_v12  ;;  %v4163_v17 = vsel %vm3819_vm1, %v3366_v54, -inf  ;;  %v4171_v19 = vrot.slane %v4170_v22, 4  ;;  %v3382_v32 = vrot.slane %v3368_v46, %v7080_v52  ;;  %v7503_v33 = vpop.f32.mrb[33].mxu1 }
 0x394   : > { %5045 = vst.msk [vmem:[%s7241_s9 + $0x10] sm:$0xff] %vm1342_vm13, %v4999_v0  ;;  %v4158_v18 = vmax.f32 %v4156_v26, %v4157_v49  ;;  %v4164_v24 = vrot.slane %v4163_v17, 4  ;;  %v4177_v39 = vsel %vm3819_vm1, %v3367_v37, -inf  ;;  %v3383_v47 = vcombine.high %v3375_v1, %v3375_v1  ;;  %v7508_v61 = vpop.f32.mrb[34].mxu1 }
 0x395   : > { %v4172_v53 = vmax.f32 %v4170_v22, %v4171_v19  ;;  %v4178_v27 = vrot.slane %v4177_v39, 4  ;;  %v3384_v16 = vcombine.high %v3382_v32, %v3382_v32  ;;  %v4184_v4 = vsel %vm3819_vm1, %v3375_v1, -inf  ;;  %v7511_v55 = vpop.f32.mrb[35].mxu1 }
 0x396   : > { %v4159_v44 = vrot.slane %v4158_v18, 2  ;;  %v4165_v60 = vmax.f32 %v4163_v17, %v4164_v24  ;;  %v4185_v40 = vrot.slane %v4184_v4, 4  ;;  %v4191_v2 = vsel %vm3819_vm1, %v3383_v47, -inf }
 0x397   : > { %v4173_v62 = vrot.slane %v4172_v53, 2  ;;  %v4179_v6 = vmax.f32 %v4177_v39, %v4178_v27  ;;  %v4192_v13 = vrot.slane %v4191_v2, 4  ;;  %v4198_v28 = vsel %vm3819_vm1, %v3382_v32, -inf }
 0x398   : > { %v4160_v25 = vmax.f32 %v4158_v18, %v4159_v44  ;;  %v4166_v14 = vrot.slane %v4165_v60, 2  ;;  %v4186_v50 = vmax.f32 %v4184_v4, %v4185_v40  ;;  %v4199_v43 = vrot.slane %v4198_v28, 4 }
 0x399   : > { %v4174_v30 = vmax.f32 %v4172_v53, %v4173_v62  ;;  %v4180_v15 = vrot.slane %v4179_v6, 2  ;;  %v4193_v8 = vmax.f32 %v4191_v2, %v4192_v13  ;;  %v4205_v56 = vsel %vm3819_vm1, %v3384_v16, -inf }
 0x39a   : > { %v4161_v34 = vrot.slane %v4160_v25, 1  ;;  %v4167_v45 = vmax.f32 %v4165_v60, %v4166_v14  ;;  %v4187_v58 = vrot.slane %v4186_v50, 2  ;;  %v4200_v11 = vmax.f32 %v4198_v28, %v4199_v43  ;;  %v7516_v54 = vpop.f32.mrb[36].mxu1 }
 0x39b   : > { %v4175_v26 = vrot.slane %v4174_v30, 1  ;;  %v4181_v46 = vmax.f32 %v4179_v6, %v4180_v15  ;;  %v4194_v1 = vrot.slane %v4193_v8, 2  ;;  %v4206_v12 = vrot.slane %v4205_v56, 4  ;;  %v7518_v37 = vpop.f32.mrb[37].mxu1 }
 0x39c   : > { %v4162_v49 = vmax.f32 %v4160_v25, %v4161_v34  ;;  %v4168_v22 = vrot.slane %v4167_v45, 1  ;;  %v4188_v0 = vmax.f32 %v4186_v50, %v4187_v58  ;;  %v4201_v17 = vrot.slane %v4200_v11, 2  ;;  %v7520_v19 = vpop.f32.mrb[38].mxu1 }
 0x39d   : > { %v4176_v32 = vmax.f32 %v4174_v30, %v4175_v26  ;;  %v4182_v18 = vrot.slane %v4181_v46, 1  ;;  %v4195_v24 = vmax.f32 %v4193_v8, %v4194_v1  ;;  %v4207_v39 = vmax.f32 %v4205_v56, %v4206_v12  ;;  %v7522_v47 = vpop.f32.mrb[39].mxu1 }
 0x39e   : > { %v4169_v53 = vmax.f32 %v4167_v45, %v4168_v22  ;;  %v7525_v27 = vsel %vm1342_vm13, %v4162_v49, -inf  ;;  %v4189_v16 = vrot.slane %v4188_v0, 1  ;;  %v4202_v4 = vmax.f32 %v4200_v11, %v4201_v17 }
 0x39f   : > { %v4183_v44 = vmax.f32 %v4181_v46, %v4182_v18  ;;  %v7528_v60 = vsel %vm1342_vm13, %v4176_v32, -inf  ;;  %v4196_v40 = vrot.slane %v4195_v24, 1  ;;  %v4208_v2 = vrot.slane %v4207_v39, 2 }
 0x3a0   : > { %v7531_v62 = vsel %vm1342_vm13, %v4169_v53, -inf  ;;  %v4190_v6 = vmax.f32 %v4188_v0, %v4189_v16  ;;  %v4203_v13 = vrot.slane %v4202_v4, 1  ;;  %v2820_v28 = vadd.f32 %v7391_v5, %v7486_v29 }
 0x3a1   : > { %v7536_v25 = vsel %vm1342_vm13, %v4183_v44, -inf  ;;  %v4197_v14 = vmax.f32 %v4195_v24, %v4196_v40  ;;  %v4209_v50 = vmax.f32 %v4207_v39, %v4208_v2  ;;  %v5352_v43 = vadd.f32 %v7414_v35, %v7412_v20 }
 0x3a2   : > { %v4204_v30 = vmax.f32 %v4202_v4, %v4203_v13  ;;  %v7541_v15 = vsel %vm1342_vm13, %v4190_v6, -inf  ;;  %v2981_v8 = vadd.f32 %v7131_v10, %v2820_v28  ;;  %v5355_v56 = vadd.f32 %v7447_v38, %v7439_v57 }
 0x3a3   : > { %v4210_v34 = vrot.slane %v4209_v50, 1  ;;  %v7547_v29 = vsel %vm1342_vm13, %v4197_v14, -inf  ;;  %v2823_v45 = vadd.f32 %v7391_v5, %v5352_v43  ;;  %v5358_v58 = vadd.f32 %v7455_v59, %v7452_v42 }
 0x3a4   : > { %v7553_v20 = vsel %vm1342_vm13, %v4204_v30, -inf  ;;  %v3065_v35 = vmax.f32 %v2981_v8, 0.0  ;;  %v2828_v11 = vadd.f32 %v7391_v5, %v5355_v56  ;;  %v5361_v10 = vadd.f32 %v7503_v33, %v7498_v23 }
 0x3a5   : > { %v4211_v26 = vmax.f32 %v4209_v50, %v4210_v34  ;;  %v2984_v57 = vadd.f32 %v7137_v9, %v2823_v45  ;;  %v2831_v38 = vadd.f32 %v7391_v5, %v5358_v58  ;;  %v5364_v46 = vadd.f32 %v7511_v55, %v7508_v61 }
 0x3a6   : > { %3097 = vst.msk [vmem:[%s7087_s28 + $0x70] sm:$0xff] %vm1342_vm13, %v3065_v35  ;;  %v3385_v42 = vcombine.high %v3065_v35, %v3065_v35  ;;  %v3392_v59 = vrot.slane %v3065_v35, %v7080_v52  ;;  %v2989_v1 = vadd.f32 %v7144_v7, %v2828_v11  ;;  %v7567_v12 = vadd.f32 %v7391_v5, %v5361_v10 }
 0x3a7   : > { %v7570_v23 = vsel %vm1342_vm13, %v4211_v26, -inf  ;;  %v3066_v9 = vmax.f32 %v2984_v57, 0.0  ;;  %v2992_v33 = vadd.f32 %v7150_v63, %v2831_v38  ;;  %v7574_v49 = vadd.f32 %v7391_v5, %v5364_v46 }
 0x3a8   : > { %v3399_v61 = vrot.slane %v3385_v42, %v7080_v52  ;;  %v3400_v55 = vcombine.high %v3392_v59, %v3392_v59  ;;  %v4212_v22 = vsel %vm3819_vm1, %v3392_v59, -inf  ;;  %v7578_v7 = vmax.f32 %v2989_v1, 0.0 }
 0x3a9   : > { %v4213_v0 = vrot.slane %v4212_v22, 4  ;;  %3098 = vst.msk [vmem:[%s7087_s28 + $0x78] sm:$0xff] %vm1342_vm13, %v3066_v9  ;;  %v3402_v17 = vcombine.high %v3066_v9, %v3066_v9  ;;  %v3409_v32 = vrot.slane %v3066_v9, %v7080_v52  ;;  %v7583_v18 = vmax.f32 %v2992_v33, 0.0  ;;  %v7605_v33 = vpop.f32.mrb[64].mxu0 }
 0x3aa   : > { %v3401_v63 = vcombine.high %v3399_v61, %v3399_v61  ;;  %v4219_v24 = vsel %vm3819_vm1, %v3400_v55, -inf  ;;  %v4226_v39 = vsel %vm3819_vm1, %v3399_v61, -inf  ;;  %3099 = vst.msk [vmem:[%s7087_s28 + $0x80] sm:$0xff] %vm1342_vm13, %v7578_v7  ;;  %v3419_v53 = vcombine.high %v7578_v7, %v7578_v7 }
 0x3ab   : > { %v4214_v16 = vmax.f32 %v4212_v22, %v4213_v0  ;;  %v4220_v4 = vrot.slane %v4219_v24, 4  ;;  %v4227_v44 = vrot.slane %v4226_v39, 4  ;;  %v3416_v40 = vrot.slane %v3402_v17, %v7080_v52  ;;  %3100 = vst.msk [vmem:[%s7087_s28 + $0x88] sm:$0xff] %vm1342_vm13, %v7583_v18 }
 0x3ac   : > { %v4233_v2 = vsel %vm3819_vm1, %v3401_v63, -inf  ;;  %v3417_v6 = vcombine.high %v3409_v32, %v3409_v32  ;;  %v4240_v13 = vsel %vm3819_vm1, %v3409_v32, -inf  ;;  %v7600_v28 = vrot.slane %v7578_v7, %v7080_v52 }
 0x3ad   : > { %v4215_v14 = vrot.slane %v4214_v16, 2  ;;  %v4221_v50 = vmax.f32 %v4219_v24, %v4220_v4  ;;  %v4228_v43 = vmax.f32 %v4226_v39, %v4227_v44  ;;  %v4234_v30 = vrot.slane %v4233_v2, 4 }
 0x3ae   : > { %v3418_v8 = vcombine.high %v3416_v40, %v3416_v40  ;;  %v4241_v56 = vrot.slane %v4240_v13, 4  ;;  %v4247_v34 = vsel %vm3819_vm1, %v3417_v6, -inf  ;;  %v4254_v45 = vsel %vm3819_vm1, %v3416_v40, -inf }
 0x3af   : > { %v4216_v58 = vmax.f32 %v4214_v16, %v4215_v14  ;;  %v4222_v35 = vrot.slane %v4221_v50, 2  ;;  %v4229_v11 = vrot.slane %v4228_v43, 2  ;;  %v4235_v10 = vmax.f32 %v4233_v2, %v4234_v30 }
 0x3b0   : > { %v4242_v26 = vmax.f32 %v4240_v13, %v4241_v56  ;;  %v4248_v57 = vrot.slane %v4247_v34, 4  ;;  %v4255_v38 = vrot.slane %v4254_v45, 4  ;;  %v4261_v46 = vsel %vm3819_vm1, %v3418_v8, -inf }
 0x3b1   : > { %v4217_v42 = vrot.slane %v4216_v58, 1  ;;  %v4223_v59 = vmax.f32 %v4221_v50, %v4222_v35  ;;  %v4230_v1 = vmax.f32 %v4228_v43, %v4229_v11  ;;  %v4236_v9 = vrot.slane %v4235_v10, 2 }
 0x3b2   : > { %v4243_v61 = vrot.slane %v4242_v26, 2  ;;  %v4249_v55 = vmax.f32 %v4247_v34, %v4248_v57  ;;  %v4256_v22 = vmax.f32 %v4254_v45, %v4255_v38  ;;  %v4262_v0 = vrot.slane %v4261_v46, 4  ;;  %v7607_v17 = vpop.f32.mrb[40].mxu1 }
 0x3b3   : > { %v4218_v32 = vmax.f32 %v4216_v58, %v4217_v42  ;;  %v4224_v63 = vrot.slane %v4223_v59, 1  ;;  %v4231_v24 = vrot.slane %v4230_v1, 1  ;;  %v4237_v39 = vmax.f32 %v4235_v10, %v4236_v9  ;;  %v7609_v16 = vpop.f32.mrb[41].mxu1 }
 0x3b4   : > { %v4244_v4 = vmax.f32 %v4242_v26, %v4243_v61  ;;  %v4250_v44 = vrot.slane %v4249_v55, 2  ;;  %v4257_v40 = vrot.slane %v4256_v22, 2  ;;  %v4263_v2 = vmax.f32 %v4261_v46, %v4262_v0  ;;  %v7611_v6 = vpop.f32.mrb[42].mxu1 }
 0x3b5   : > { %v4225_v13 = vmax.f32 %v4223_v59, %v4224_v63  ;;  %v4232_v14 = vmax.f32 %v4230_v1, %v4231_v24  ;;  %v4238_v50 = vrot.slane %v4237_v39, 1  ;;  %v4789_v43 = vsel %vm1342_vm13, %v4218_v32, -inf  ;;  %v7614_v30 = vpop.f32.mrb[43].mxu1 }
 0x3b6   : > { %v4790_v8 = vmax.f32 %v7525_v27, %v4789_v43  ;;  %v4245_v56 = vrot.slane %v4244_v4, 1  ;;  %v4251_v34 = vmax.f32 %v4249_v55, %v4250_v44  ;;  %v4258_v45 = vmax.f32 %v4256_v22, %v4257_v40 }
 0x3b7   : > { %v4239_v58 = vmax.f32 %v4237_v39, %v4238_v50  ;;  %v4792_v35 = vsel %vm1342_vm13, %v4225_v13, -inf  ;;  %v4795_v11 = vsel %vm1342_vm13, %v4232_v14, -inf  ;;  %v4264_v10 = vrot.slane %v4263_v2, 2  ;;  %v7646_v14 = vpop.f32.mrb[65].mxu0 }
 0x3b8   : > { %v4793_v26 = vmax.f32 %v7531_v62, %v4792_v35  ;;  %v4796_v57 = vmax.f32 %v7528_v60, %v4795_v11  ;;  %v4246_v38 = vmax.f32 %v4244_v4, %v4245_v56  ;;  %v4252_v46 = vrot.slane %v4251_v34, 1  ;;  %v7655_v35 = vpop.f32.mrb[66].mxu0 }
 0x3b9   : > { %v4798_v42 = vsel %vm1342_vm13, %v4239_v58, -inf  ;;  %v4259_v59 = vrot.slane %v4258_v45, 1  ;;  %v4265_v1 = vmax.f32 %v4263_v2, %v4264_v10  ;;  %v3433_v27 = vrot.slane %v3419_v53, %v7080_v52 }
 0x3ba   : > { %v4799_v9 = vmax.f32 %v7536_v25, %v4798_v42  ;;  %v5000_v61 = vsel %vm4972_vm2, %v4793_v26, %v4790_v8  ;;  %v4253_v55 = vmax.f32 %v4251_v34, %v4252_v46  ;;  %v4801_v62 = vsel %vm1342_vm13, %v4246_v38, -inf  ;;  %v7629_v22 = vpop.f32.mrb[44].mxu1  ;;  %v7660_v26 = vpop.f32.mrb[67].mxu0 }
 0x3bb   : > { %v5001_v60 = vsel %vm4974_vm3, %v4796_v57, %v5000_v61  ;;  %v4260_v0 = vmax.f32 %v4258_v45, %v4259_v59  ;;  %v4266_v32 = vrot.slane %v4265_v1, 1  ;;  %v4802_v63 = vmax.f32 %v7541_v15, %v4801_v62  ;;  %v7633_v24 = vpop.f32.mrb[45].mxu1 }
 0x3bc   : > { %v4804_v7 = vsel %vm1342_vm13, %v4253_v55, -inf  ;;  %v5002_v53 = vsel %vm4976_vm4, %v4799_v9, %v5001_v60  ;;  %v3434_v25 = vcombine.high %v7600_v28, %v7600_v28  ;;  %v3435_v39 = vcombine.high %v3433_v27, %v3433_v27  ;;  %v7639_v4 = vpop.f32.mrb[46].mxu1 }
 0x3bd   : > { %v4267_v44 = vmax.f32 %v4265_v1, %v4266_v32  ;;  %v4805_v40 = vmax.f32 %v7547_v29, %v4804_v7  ;;  %v4807_v2 = vsel %vm1342_vm13, %v4260_v0, -inf  ;;  %v5003_v13 = vsel %vm4978_vm5, %v4802_v63, %v5002_v53  ;;  %v7644_v15 = vpop.f32.mrb[47].mxu1 }
 0x3be   : > { %v4808_v50 = vmax.f32 %v7553_v20, %v4807_v2  ;;  %v4268_v43 = vsel %vm3819_vm1, %v7600_v28, -inf  ;;  %v4275_v8 = vsel %vm3819_vm1, %v3434_v25, -inf  ;;  %v4282_v56 = vsel %vm3819_vm1, %v3433_v27, -inf }
 0x3bf   : > { %v4810_v34 = vsel %vm1342_vm13, %v4267_v44, -inf  ;;  %v5004_v29 = vsel %vm4980_vm6, %v4805_v40, %v5003_v13  ;;  %v4269_v45 = vrot.slane %v4268_v43, 4  ;;  %v4276_v58 = vrot.slane %v4275_v8, 4 }
 0x3c0   : > { %v4811_v11 = vmax.f32 %v7570_v23, %v4810_v34  ;;  %v5005_v20 = vsel %vm4982_vm7, %v4808_v50, %v5004_v29  ;;  %v4283_v10 = vrot.slane %v4282_v56, 4  ;;  %v4289_v28 = vsel %vm3819_vm1, %v3435_v39, -inf }
 0x3c1   : > { %v4270_v57 = vmax.f32 %v4268_v43, %v4269_v45  ;;  %v4277_v38 = vmax.f32 %v4275_v8, %v4276_v58  ;;  %v4290_v46 = vrot.slane %v4289_v28, 4  ;;  %v3436_v42 = vcombine.high %v7583_v18, %v7583_v18 }
 0x3c2   : > { %v5006_v59 = vsel %vm4984_vm8, %v4811_v11, %v5005_v20  ;;  %v4284_v1 = vmax.f32 %v4282_v56, %v4283_v10  ;;  %v3443_v27 = vrot.slane %v7583_v18, %v7080_v52  ;;  %v2997_v23 = vadd.f32 %v7141_v31, %v7567_v12 }
 0x3c3   : > { %5046 = vst.msk [vmem:[%s7241_s9 + $0x18] sm:$0xff] %vm1342_vm13, %v5006_v59  ;;  %v4271_v9 = vrot.slane %v4270_v57, 2  ;;  %v4278_v61 = vrot.slane %v4277_v38, 2  ;;  %v4291_v55 = vmax.f32 %v4289_v28, %v4290_v46  ;;  %v3450_v62 = vrot.slane %v3436_v42, %v7080_v52 }
 0x3c4   : > { %v4285_v60 = vrot.slane %v4284_v1, 2  ;;  %v3451_v0 = vcombine.high %v3443_v27, %v3443_v27  ;;  %v4296_v32 = vsel %vm3819_vm1, %v3443_v27, -inf  ;;  %v3069_v63 = vmax.f32 %v2997_v23, 0.0 }
 0x3c5   : > { %v4272_v7 = vmax.f32 %v4270_v57, %v4271_v9  ;;  %v4279_v53 = vmax.f32 %v4277_v38, %v4278_v61  ;;  %v4292_v25 = vrot.slane %v4291_v55, 2  ;;  %v3452_v18 = vcombine.high %v3450_v62, %v3450_v62 }
 0x3c6   : > { %v4286_v39 = vmax.f32 %v4284_v1, %v4285_v60  ;;  %v4297_v44 = vrot.slane %v4296_v32, 4  ;;  %v4303_v31 = vsel %vm3819_vm1, %v3451_v0, -inf  ;;  %v4310_v12 = vsel %vm3819_vm1, %v3450_v62, -inf  ;;  %3101 = vst.msk [vmem:[%s7087_s28 + $0x90] sm:$0xff] %vm1342_vm13, %v3069_v63 }
 0x3c7   : > { %v4273_v40 = vrot.slane %v4272_v7, 1  ;;  %v4280_v2 = vrot.slane %v4279_v53, 1  ;;  %v4293_v13 = vmax.f32 %v4291_v55, %v4292_v25  ;;  %v4304_v50 = vrot.slane %v4303_v31, 4 }
 0x3c8   : > { %v4287_v43 = vrot.slane %v4286_v39, 1  ;;  %v4298_v8 = vmax.f32 %v4296_v32, %v4297_v44  ;;  %v4311_v56 = vrot.slane %v4310_v12, 4  ;;  %v4317_v34 = vsel %vm3819_vm1, %v3452_v18, -inf }
 0x3c9   : > { %v4274_v29 = vmax.f32 %v4272_v7, %v4273_v40  ;;  %v4281_v45 = vmax.f32 %v4279_v53, %v4280_v2  ;;  %v4294_v58 = vrot.slane %v4293_v13, 1  ;;  %v4305_v11 = vmax.f32 %v4303_v31, %v4304_v50 }
 0x3ca   : > { %v4288_v20 = vmax.f32 %v4286_v39, %v4287_v43  ;;  %v4299_v10 = vrot.slane %v4298_v8, 2  ;;  %v4312_v28 = vmax.f32 %v4310_v12, %v4311_v56  ;;  %v4318_v57 = vrot.slane %v4317_v34, 4  ;;  %v7684_v1 = vpop.f32.mrb[48].mxu1 }
 0x3cb   : > { %v4295_v38 = vmax.f32 %v4293_v13, %v4294_v58  ;;  %v7679_v46 = vsel %vm1342_vm13, %v4274_v29, -inf  ;;  %v7682_v42 = vsel %vm1342_vm13, %v4281_v45, -inf  ;;  %v4306_v59 = vrot.slane %v4305_v11, 2  ;;  %v7689_v55 = vpop.f32.mrb[49].mxu1 }
 0x3cc   : > { %v7687_v27 = vsel %vm1342_vm13, %v4288_v20, -inf  ;;  %v4300_v23 = vmax.f32 %v4298_v8, %v4299_v10  ;;  %v4313_v9 = vrot.slane %v4312_v28, 2  ;;  %v4319_v61 = vmax.f32 %v4317_v34, %v4318_v57  ;;  %v7695_v7 = vpop.f32.mrb[50].mxu1 }
 0x3cd   : > { %v7692_v62 = vsel %vm1342_vm13, %v4295_v38, -inf  ;;  %v4307_v60 = vmax.f32 %v4305_v11, %v4306_v59  ;;  %v3453_v0 = vcombine.high %v3069_v63, %v3069_v63  ;;  %v3460_v32 = vrot.slane %v3069_v63, %v7080_v52  ;;  %v7699_v44 = vpop.f32.mrb[51].mxu1 }
 0x3ce   : > { %v4301_v53 = vrot.slane %v4300_v23, 1  ;;  %v4314_v25 = vmax.f32 %v4312_v28, %v4313_v9  ;;  %v4320_v18 = vrot.slane %v4319_v61, 2  ;;  %v3000_v39 = vadd.f32 %v7146_v21, %v7574_v49 }
 0x3cf   : > { %v4308_v31 = vrot.slane %v4307_v60, 1  ;;  %v3467_v12 = vrot.slane %v3453_v0, %v7080_v52  ;;  %v3468_v40 = vcombine.high %v3460_v32, %v3460_v32  ;;  %v4324_v2 = vsel %vm3819_vm1, %v3460_v32, -inf }
 0x3d0   : > { %v4302_v13 = vmax.f32 %v4300_v23, %v4301_v53  ;;  %v4315_v50 = vrot.slane %v4314_v25, 1  ;;  %v4321_v43 = vmax.f32 %v4319_v61, %v4320_v18  ;;  %v4325_v63 = vrot.slane %v4324_v2, 4 }
 0x3d1   : > { %v4309_v8 = vmax.f32 %v4307_v60, %v4308_v31  ;;  %v3469_v56 = vcombine.high %v3467_v12, %v3467_v12  ;;  %v4331_v34 = vsel %vm3819_vm1, %v3468_v40, -inf  ;;  %v4338_v29 = vsel %vm3819_vm1, %v3467_v12, -inf }
 0x3d2   : > { %v4316_v45 = vmax.f32 %v4314_v25, %v4315_v50  ;;  %v4322_v21 = vrot.slane %v4321_v43, 1  ;;  %v7706_v49 = vsel %vm1342_vm13, %v4302_v13, -inf  ;;  %v4326_v58 = vmax.f32 %v4324_v2, %v4325_v63  ;;  %v7712_v57 = vpop.f32.mrb[52].mxu1 }
 0x3d3   : > { %v7709_v11 = vsel %vm1342_vm13, %v4309_v8, -inf  ;;  %v4332_v20 = vrot.slane %v4331_v34, 4  ;;  %v4339_v10 = vrot.slane %v4338_v29, 4  ;;  %v4345_v28 = vsel %vm3819_vm1, %v3469_v56, -inf  ;;  %v7717_v61 = vpop.f32.mrb[53].mxu1 }
 0x3d4   : > { %v4323_v38 = vmax.f32 %v4321_v43, %v4322_v21  ;;  %v7715_v59 = vsel %vm1342_vm13, %v4316_v45, -inf  ;;  %v4327_v23 = vrot.slane %v4326_v58, 2  ;;  %v4346_v9 = vrot.slane %v4345_v28, 4  ;;  %v7721_v25 = vpop.f32.mrb[54].mxu1 }
 0x3d5   : > { %v4333_v60 = vmax.f32 %v4331_v34, %v4332_v20  ;;  %v4340_v0 = vmax.f32 %v4338_v29, %v4339_v10  ;;  %v3070_v32 = vmax.f32 %v3000_v39, 0.0  ;;  %v5367_v53 = vadd.f32 %v7518_v37, %v7516_v54  ;;  %v7728_v2 = vpop.f32.mrb[55].mxu1 }
 0x3d6   : > { %v7724_v18 = vsel %vm1342_vm13, %v4323_v38, -inf  ;;  %v4328_v31 = vmax.f32 %v4326_v58, %v4327_v23  ;;  %v4347_v12 = vmax.f32 %v4345_v28, %v4346_v9  ;;  %v5370_v40 = vadd.f32 %v7522_v47, %v7520_v19 }
 0x3d7   : > { %v4334_v13 = vrot.slane %v4333_v60, 2  ;;  %v4341_v50 = vrot.slane %v4340_v0, 2  ;;  %3102 = vst.msk [vmem:[%s7087_s28 + $0x98] sm:$0xff] %vm1342_vm13, %v3070_v32  ;;  %v3470_v39 = vcombine.high %v3070_v32, %v3070_v32  ;;  %v3477_v43 = vrot.slane %v3070_v32, %v7080_v52 }
 0x3d8   : > { %v4329_v54 = vrot.slane %v4328_v31, 1  ;;  %v4348_v37 = vrot.slane %v4347_v12, 2  ;;  %v2844_v63 = vadd.f32 %v7391_v5, %v5367_v53  ;;  %v2847_v8 = vadd.f32 %v7391_v5, %v5370_v40 }
 0x3d9   : > { %v4335_v56 = vmax.f32 %v4333_v60, %v4334_v13  ;;  %v4342_v34 = vmax.f32 %v4340_v0, %v4341_v50  ;;  %v3484_v29 = vrot.slane %v3470_v39, %v7080_v52  ;;  %v3485_v19 = vcombine.high %v3477_v43, %v3477_v43 }
 0x3da   : > { %v4330_v47 = vmax.f32 %v4328_v31, %v4329_v54  ;;  %v4349_v45 = vmax.f32 %v4347_v12, %v4348_v37  ;;  %v4352_v21 = vsel %vm3819_vm1, %v3477_v43, -inf  ;;  %v3005_v58 = vadd.f32 %v7206_v48, %v2844_v63 }
 0x3db   : > { %v4336_v20 = vrot.slane %v4335_v56, 1  ;;  %v4343_v10 = vrot.slane %v4342_v34, 1  ;;  %v3486_v28 = vcombine.high %v3484_v29, %v3484_v29  ;;  %v4353_v38 = vrot.slane %v4352_v21, 4 }
 0x3dc   : > { %v4350_v23 = vrot.slane %v4349_v45, 1  ;;  %v4813_v9 = vsel %vm1342_vm13, %v4330_v47, -inf  ;;  %v4359_v5 = vsel %vm3819_vm1, %v3485_v19, -inf  ;;  %v4366_v60 = vsel %vm3819_vm1, %v3484_v29, -inf }
 0x3dd   : > { %v4337_v0 = vmax.f32 %v4335_v56, %v4336_v20  ;;  %v4344_v32 = vmax.f32 %v4342_v34, %v4343_v10  ;;  %v4814_v53 = vmax.f32 %v7679_v46, %v4813_v9  ;;  %v4354_v31 = vmax.f32 %v4352_v21, %v4353_v38 }
 0x3de   : > { %v4351_v12 = vmax.f32 %v4349_v45, %v4350_v23  ;;  %v4360_v40 = vrot.slane %v4359_v5, 4  ;;  %v4367_v13 = vrot.slane %v4366_v60, 4  ;;  %v4373_v48 = vsel %vm3819_vm1, %v3486_v28, -inf }
 0x3df   : > { %v4816_v50 = vsel %vm1342_vm13, %v4337_v0, -inf  ;;  %v4819_v39 = vsel %vm1342_vm13, %v4344_v32, -inf  ;;  %v4355_v43 = vrot.slane %v4354_v31, 2  ;;  %v4374_v54 = vrot.slane %v4373_v48, 4 }
 0x3e0   : > { %v4817_v37 = vmax.f32 %v7682_v42, %v4816_v50  ;;  %v4820_v63 = vmax.f32 %v7687_v27, %v4819_v39  ;;  %v4822_v56 = vsel %vm1342_vm13, %v4351_v12, -inf  ;;  %v4361_v46 = vmax.f32 %v4359_v5, %v4360_v40 }
 0x3e1   : > { %v4823_v34 = vmax.f32 %v7692_v62, %v4822_v56  ;;  %v4356_v29 = vmax.f32 %v4354_v31, %v4355_v43  ;;  %v4368_v19 = vmax.f32 %v4366_v60, %v4367_v13  ;;  %v4375_v47 = vmax.f32 %v4373_v48, %v4374_v54  ;;  %v7756_v60 = vpop.f32.mrb[56].mxu1 }
 0x3e2   : > { %v5007_v45 = vsel %vm4972_vm2, %v4817_v37, %v4814_v53  ;;  %v4362_v21 = vrot.slane %v4361_v46, 2  ;;  %v3071_v20 = vmax.f32 %v3005_v58, 0.0  ;;  %v3008_v10 = vadd.f32 %v7216_v3, %v2847_v8  ;;  %v7758_v8 = vpop.f32.mrb[57].mxu1 }
 0x3e3   : > { %v5008_v28 = vsel %vm4974_vm3, %v4820_v63, %v5007_v45  ;;  %v4357_v42 = vrot.slane %v4356_v29, 1  ;;  %v4369_v38 = vrot.slane %v4368_v19, 2  ;;  %v4376_v27 = vrot.slane %v4375_v47, 2  ;;  %v7762_v13 = vpop.f32.mrb[58].mxu1 }
 0x3e4   : > { %v4363_v23 = vmax.f32 %v4361_v46, %v4362_v21  ;;  %v5009_v9 = vsel %vm4976_vm4, %v4823_v34, %v5008_v28  ;;  %3103 = vst.msk [vmem:[%s7087_s28 + $0xa0] sm:$0xff] %vm1342_vm13, %v3071_v20  ;;  %v3487_v62 = vcombine.high %v3071_v20, %v3071_v20  ;;  %v3494_v5 = vrot.slane %v3071_v20, %v7080_v52  ;;  %v7767_v54 = vpop.f32.mrb[59].mxu1 }
 0x3e5   : > { %v4358_v0 = vmax.f32 %v4356_v29, %v4357_v42  ;;  %v4370_v58 = vmax.f32 %v4368_v19, %v4369_v38  ;;  %v4377_v32 = vmax.f32 %v4375_v47, %v4376_v27  ;;  %v3072_v3 = vmax.f32 %v3008_v10, 0.0 }
 0x3e6   : > { %v4364_v53 = vrot.slane %v4363_v23, 1  ;;  %v3501_v31 = vrot.slane %v3487_v62, %v7080_v52  ;;  %v3502_v12 = vcombine.high %v3494_v5, %v3494_v5  ;;  %v4380_v40 = vsel %vm3819_vm1, %v3494_v5, -inf }
 0x3e7   : > { %v4371_v48 = vrot.slane %v4370_v58, 1  ;;  %v4378_v50 = vrot.slane %v4377_v32, 1  ;;  %v4825_v39 = vsel %vm1342_vm13, %v4358_v0, -inf  ;;  %v4381_v43 = vrot.slane %v4380_v40, 4  ;;  %3104 = vst.msk [vmem:[%s7087_s28 + $0xa8] sm:$0xff] %vm1342_vm13, %v3072_v3 }
 0x3e8   : > { %v4365_v37 = vmax.f32 %v4363_v23, %v4364_v53  ;;  %v4826_v63 = vmax.f32 %v7706_v49, %v4825_v39  ;;  %v3503_v56 = vcombine.high %v3501_v31, %v3501_v31  ;;  %v4387_v46 = vsel %vm3819_vm1, %v3502_v12, -inf }
 0x3e9   : > { %v4372_v34 = vmax.f32 %v4370_v58, %v4371_v48  ;;  %v4379_v29 = vmax.f32 %v4377_v32, %v4378_v50  ;;  %v4382_v19 = vmax.f32 %v4380_v40, %v4381_v43  ;;  %v4388_v47 = vrot.slane %v4387_v46, 4 }
 0x3ea   : > { %v4828_v45 = vsel %vm1342_vm13, %v4365_v37, -inf  ;;  %v5010_v21 = vsel %vm4978_vm5, %v4826_v63, %v5009_v9  ;;  %v4394_v20 = vsel %vm3819_vm1, %v3501_v31, -inf  ;;  %v4401_v10 = vsel %vm3819_vm1, %v3503_v56, -inf }
 0x3eb   : > { %v4829_v28 = vmax.f32 %v7709_v11, %v4828_v45  ;;  %v4831_v42 = vsel %vm1342_vm13, %v4372_v34, -inf  ;;  %v4834_v49 = vsel %vm1342_vm13, %v4379_v29, -inf  ;;  %v4383_v38 = vrot.slane %v4382_v19, 2 }
 0x3ec   : > { %v4832_v27 = vmax.f32 %v7715_v59, %v4831_v42  ;;  %v4835_v23 = vmax.f32 %v7724_v18, %v4834_v49  ;;  %v4389_v62 = vmax.f32 %v4387_v46, %v4388_v47  ;;  %v4395_v5 = vrot.slane %v4394_v20, 4 }
 0x3ed   : > { %v5011_v9 = vsel %vm4980_vm6, %v4829_v28, %v5010_v21  ;;  %v4384_v0 = vmax.f32 %v4382_v19, %v4383_v38  ;;  %v4402_v58 = vrot.slane %v4401_v10, 4  ;;  %v3504_v32 = vcombine.high %v3072_v3, %v3072_v3 }
 0x3ee   : > { %v5012_v53 = vsel %vm4982_vm7, %v4832_v27, %v5011_v9  ;;  %v4390_v11 = vrot.slane %v4389_v62, 2  ;;  %v4396_v31 = vmax.f32 %v4394_v20, %v4395_v5  ;;  %v3511_v12 = vrot.slane %v3072_v3, %v7080_v52 }
 0x3ef   : > { %v5013_v40 = vsel %vm4984_vm8, %v4835_v23, %v5012_v53  ;;  %v4385_v48 = vrot.slane %v4384_v0, 1  ;;  %v4403_v59 = vmax.f32 %v4401_v10, %v4402_v58  ;;  %v3518_v50 = vrot.slane %v3504_v32, %v7080_v52 }
 0x3f0   : > { %5047 = vst.msk [vmem:[%s7241_s9 + $0x20] sm:$0xff] %vm1342_vm13, %v5013_v40  ;;  %v4391_v18 = vmax.f32 %v4389_v62, %v4390_v11  ;;  %v4397_v39 = vrot.slane %v4396_v31, 2  ;;  %v3519_v43 = vcombine.high %v3511_v12, %v3511_v12  ;;  %v4408_v37 = vsel %vm3819_vm1, %v3511_v12, -inf }
 0x3f1   : > { %v4386_v63 = vmax.f32 %v4384_v0, %v4385_v48  ;;  %v4404_v56 = vrot.slane %v4403_v59, 2  ;;  %v3520_v46 = vcombine.high %v3518_v50, %v3518_v50  ;;  %v4409_v34 = vrot.slane %v4408_v37, 4 }
 0x3f2   : > { %v4392_v29 = vrot.slane %v4391_v18, 1  ;;  %v4398_v19 = vmax.f32 %v4396_v31, %v4397_v39  ;;  %v4415_v3 = vsel %vm3819_vm1, %v3519_v43, -inf  ;;  %v4422_v47 = vsel %vm3819_vm1, %v3518_v50, -inf }
 0x3f3   : > { %v4405_v45 = vmax.f32 %v4403_v59, %v4404_v56  ;;  %v7791_v21 = vsel %vm1342_vm13, %v4386_v63, -inf  ;;  %v4410_v20 = vmax.f32 %v4408_v37, %v4409_v34  ;;  %v4416_v10 = vrot.slane %v4415_v3, 4  ;;  %v7805_v59 = vld [vmem:[%s8178_s4] ss:$0 sm:$0xff] }
 0x3f4   : > { %v4393_v28 = vmax.f32 %v4391_v18, %v4392_v29  ;;  %v4399_v42 = vrot.slane %v4398_v19, 1  ;;  %v4423_v49 = vrot.slane %v4422_v47, 4  ;;  %v4429_v38 = vsel %vm3819_vm1, %v3520_v46, -inf }
 0x3f5   : > { %v4406_v27 = vrot.slane %v4405_v45, 1  ;;  %v4411_v23 = vrot.slane %v4410_v20, 2  ;;  %v4417_v62 = vmax.f32 %v4415_v3, %v4416_v10  ;;  %v4430_v5 = vrot.slane %v4429_v38, 4 }
 0x3f6   : > { %v4400_v9 = vmax.f32 %v4398_v19, %v4399_v42  ;;  %v7795_v0 = vsel %vm1342_vm13, %v4393_v28, -inf  ;;  %v4424_v58 = vmax.f32 %v4422_v47, %v4423_v49  ;;  %v5373_v32 = vadd.f32 %v7609_v16, %v7607_v17 }
 0x3f7   : > { %v4407_v53 = vmax.f32 %v4405_v45, %v4406_v27  ;;  %v4412_v11 = vmax.f32 %v4410_v20, %v4411_v23  ;;  %v4418_v31 = vrot.slane %v4417_v62, 2  ;;  %v4431_v12 = vmax.f32 %v4429_v38, %v4430_v5  ;;  %v8188_v38 = vld [vmem:[#allocation10_spill] sm:$0xff] }
 0x3f8   : > { %v7800_v40 = vsel %vm1342_vm13, %v4400_v9, -inf  ;;  %v4425_v48 = vrot.slane %v4424_v58, 2  ;;  %v2852_v50 = vadd.f32 %v7805_v59, %v5373_v32  ;;  %v5376_v18 = vadd.f32 %v7614_v30, %v7611_v6 }
 0x3f9   : > { %v7811_v17 = vsel %vm1342_vm13, %v4407_v53, -inf  ;;  %v4413_v16 = vrot.slane %v4412_v11, 1  ;;  %v4419_v39 = vmax.f32 %v4417_v62, %v4418_v31  ;;  %v4432_v43 = vrot.slane %v4431_v12, 2 }
 0x3fa   : > { %v4426_v37 = vmax.f32 %v4424_v58, %v4425_v48  ;;  %v3013_v63 = vadd.f32 %v7202_v36, %v2852_v50  ;;  %v2855_v56 = vadd.f32 %v7805_v59, %v5376_v18  ;;  %v5379_v46 = vadd.f32 %v7633_v24, %v7629_v22 }
 0x3fb   : > { %v4414_v34 = vmax.f32 %v4412_v11, %v4413_v16  ;;  %v4420_v29 = vrot.slane %v4419_v39, 1  ;;  %v4433_v19 = vmax.f32 %v4431_v12, %v4432_v43  ;;  %v5382_v6 = vadd.f32 %v7644_v15, %v7639_v4 }
 0x3fc   : > { %v4427_v30 = vrot.slane %v4426_v37, 1  ;;  %v3073_v3 = vmax.f32 %v3013_v63, 0.0  ;;  %v3016_v47 = vadd.f32 %v7211_v51, %v2855_v56  ;;  %v2860_v45 = vadd.f32 %v7805_v59, %v5379_v46 }
 0x3fd   : > { %v4421_v20 = vmax.f32 %v4419_v39, %v4420_v29  ;;  %v4434_v36 = vrot.slane %v4433_v19, 1  ;;  %v7822_v10 = vsel %vm1342_vm13, %v4414_v34, -inf  ;;  %v2863_v22 = vadd.f32 %v7805_v59, %v5382_v6 }
 0x3fe   : > { %v4428_v24 = vmax.f32 %v4426_v37, %v4427_v30  ;;  %3105 = vst.msk [vmem:[%s7087_s28 + $0xb0] sm:$0xff] %vm1342_vm13, %v3073_v3  ;;  %v3521_v28 = vcombine.high %v3073_v3, %v3073_v3  ;;  %v3528_v4 = vrot.slane %v3073_v3, %v7080_v52  ;;  %v3074_v15 = vmax.f32 %v3016_v47, 0.0 }
 0x3ff   : > { %v4435_v42 = vmax.f32 %v4433_v19, %v4434_v36  ;;  %v7829_v51 = vsel %vm1342_vm13, %v4421_v20, -inf  ;;  %v3021_v49 = vadd.f32 %v7298_v41, %v2860_v45  ;;  %v7833_v27 = vadd.f32 %v8188_v38, %v2863_v22 }
 0x400   : > { %v7836_v23 = vsel %vm1342_vm13, %v4428_v24, -inf  ;;  %v3535_v62 = vrot.slane %v3521_v28, %v7080_v52  ;;  %v3536_v5 = vcombine.high %v3528_v4, %v3528_v4  ;;  %v4436_v9 = vsel %vm3819_vm1, %v3528_v4, -inf  ;;  %3106 = vst.msk [vmem:[%s7087_s28 + $0xb8] sm:$0xff] %vm1342_vm13, %v3074_v15 }
 0x401   : > { %v7843_v58 = vsel %vm1342_vm13, %v4435_v42, -inf  ;;  %v4437_v32 = vrot.slane %v4436_v9, 4  ;;  %v3538_v53 = vcombine.high %v3074_v15, %v3074_v15  ;;  %v3545_v41 = vrot.slane %v3074_v15, %v7080_v52 }
 0x402   : > { %v3537_v11 = vcombine.high %v3535_v62, %v3535_v62  ;;  %v4443_v31 = vsel %vm3819_vm1, %v3536_v5, -inf  ;;  %v4450_v12 = vsel %vm3819_vm1, %v3535_v62, -inf  ;;  %v7848_v48 = vmax.f32 %v3021_v49, 0.0 }
 0x403   : > { %v4438_v50 = vmax.f32 %v4436_v9, %v4437_v32  ;;  %v4444_v18 = vrot.slane %v4443_v31, 4  ;;  %v4451_v16 = vrot.slane %v4450_v12, 4  ;;  %v3552_v39 = vrot.slane %v3538_v53, %v7080_v52 }
 0x404   : > { %v4457_v43 = vsel %vm3819_vm1, %v3537_v11, -inf  ;;  %v3553_v37 = vcombine.high %v3545_v41, %v3545_v41  ;;  %v4464_v63 = vsel %vm3819_vm1, %v3545_v41, -inf  ;;  %3107 = vst.msk [vmem:[%s7087_s28 + $0xc0] sm:$0xff] %vm1342_vm13, %v7848_v48  ;;  %v3555_v56 = vcombine.high %v7848_v48, %v7848_v48 }
 0x405   : > { %v4439_v46 = vrot.slane %v4438_v50, 2  ;;  %v4445_v34 = vmax.f32 %v4443_v31, %v4444_v18  ;;  %v4452_v29 = vmax.f32 %v4450_v12, %v4451_v16  ;;  %v4458_v19 = vrot.slane %v4457_v43, 4 }
 0x406   : > { %v3554_v6 = vcombine.high %v3552_v39, %v3552_v39  ;;  %v4465_v30 = vrot.slane %v4464_v63, 4  ;;  %v4471_v3 = vsel %vm3819_vm1, %v3553_v37, -inf  ;;  %v4478_v47 = vsel %vm3819_vm1, %v3552_v39, -inf }
 0x407   : > { %v4440_v45 = vmax.f32 %v4438_v50, %v4439_v46  ;;  %v4446_v20 = vrot.slane %v4445_v34, 2  ;;  %v4453_v36 = vrot.slane %v4452_v29, 2  ;;  %v4459_v22 = vmax.f32 %v4457_v43, %v4458_v19 }
 0x408   : > { %v4466_v24 = vmax.f32 %v4464_v63, %v4465_v30  ;;  %v4472_v28 = vrot.slane %v4471_v3, 4  ;;  %v4479_v4 = vrot.slane %v4478_v47, 4  ;;  %v4485_v15 = vsel %vm3819_vm1, %v3554_v6, -inf }
 0x409   : > { %v4441_v42 = vrot.slane %v4440_v45, 1  ;;  %v4447_v49 = vmax.f32 %v4445_v34, %v4446_v20  ;;  %v4454_v38 = vmax.f32 %v4452_v29, %v4453_v36  ;;  %v4460_v62 = vrot.slane %v4459_v22, 2 }
 0x40a   : > { %v4467_v5 = vrot.slane %v4466_v24, 2  ;;  %v4473_v9 = vmax.f32 %v4471_v3, %v4472_v28  ;;  %v4480_v32 = vmax.f32 %v4478_v47, %v4479_v4  ;;  %v4486_v53 = vrot.slane %v4485_v15, 4 }
 0x40b   : > { %v4442_v41 = vmax.f32 %v4440_v45, %v4441_v42  ;;  %v4448_v11 = vrot.slane %v4447_v49, 1  ;;  %v4455_v31 = vrot.slane %v4454_v38, 1  ;;  %v4461_v12 = vmax.f32 %v4459_v22, %v4460_v62 }
 0x40c   : > { %v4468_v50 = vmax.f32 %v4466_v24, %v4467_v5  ;;  %v4474_v18 = vrot.slane %v4473_v9, 2  ;;  %v4481_v16 = vrot.slane %v4480_v32, 2  ;;  %v4487_v39 = vmax.f32 %v4485_v15, %v4486_v53 }
 0x40d   : > { %v4449_v43 = vmax.f32 %v4447_v49, %v4448_v11  ;;  %v4456_v37 = vmax.f32 %v4454_v38, %v4455_v31  ;;  %v4462_v63 = vrot.slane %v4461_v12, 1  ;;  %v4837_v46 = vsel %vm1342_vm13, %v4442_v41, -inf }
 0x40e   : > { %v4838_v34 = vmax.f32 %v7791_v21, %v4837_v46  ;;  %v4469_v29 = vrot.slane %v4468_v50, 1  ;;  %v4475_v19 = vmax.f32 %v4473_v9, %v4474_v18  ;;  %v4482_v6 = vmax.f32 %v4480_v32, %v4481_v16 }
 0x40f   : > { %v4463_v30 = vmax.f32 %v4461_v12, %v4462_v63  ;;  %v4840_v3 = vsel %vm1342_vm13, %v4449_v43, -inf  ;;  %v4843_v47 = vsel %vm1342_vm13, %v4456_v37, -inf  ;;  %v4488_v45 = vrot.slane %v4487_v39, 2 }
 0x410   : > { %v4841_v20 = vmax.f32 %v7795_v0, %v4840_v3  ;;  %v4844_v36 = vmax.f32 %v7800_v40, %v4843_v47  ;;  %v4470_v22 = vmax.f32 %v4468_v50, %v4469_v29  ;;  %v4476_v24 = vrot.slane %v4475_v19, 1 }
 0x411   : > { %v4846_v28 = vsel %vm1342_vm13, %v4463_v30, -inf  ;;  %v4483_v4 = vrot.slane %v4482_v6, 1  ;;  %v4489_v15 = vmax.f32 %v4487_v39, %v4488_v45  ;;  %v3562_v21 = vrot.slane %v7848_v48, %v7080_v52 }
 0x412   : > { %v4847_v42 = vmax.f32 %v7811_v17, %v4846_v28  ;;  %v5014_v49 = vsel %vm4972_vm2, %v4841_v20, %v4838_v34  ;;  %v4477_v38 = vmax.f32 %v4475_v19, %v4476_v24  ;;  %v4849_v62 = vsel %vm1342_vm13, %v4470_v22, -inf }
 0x413   : > { %v5015_v0 = vsel %vm4974_vm3, %v4844_v36, %v5014_v49  ;;  %v4484_v5 = vmax.f32 %v4482_v6, %v4483_v4  ;;  %v4490_v40 = vrot.slane %v4489_v15, 1  ;;  %v4850_v9 = vmax.f32 %v7822_v10, %v4849_v62  ;;  %v8189_v49 = vld [vmem:[#allocation8_spill] sm:$0xff] }
 0x414   : > { %v4852_v32 = vsel %vm1342_vm13, %v4477_v38, -inf  ;;  %v5016_v53 = vsel %vm4976_vm4, %v4847_v42, %v5015_v0  ;;  %v3569_v17 = vrot.slane %v3555_v56, %v7080_v52  ;;  %v3570_v41 = vcombine.high %v3562_v21, %v3562_v21 }
 0x415   : > { %v4491_v11 = vmax.f32 %v4489_v15, %v4490_v40  ;;  %v4853_v31 = vmax.f32 %v7829_v51, %v4852_v32  ;;  %v4855_v12 = vsel %vm1342_vm13, %v4484_v5, -inf  ;;  %v5017_v50 = vsel %vm4978_vm5, %v4850_v9, %v5016_v53 }
 0x416   : > { %v4856_v18 = vmax.f32 %v7836_v23, %v4855_v12  ;;  %v3571_v10 = vcombine.high %v3569_v17, %v3569_v17  ;;  %v4492_v16 = vsel %vm3819_vm1, %v3562_v21, -inf  ;;  %v4499_v39 = vsel %vm3819_vm1, %v3570_v41, -inf }
 0x417   : > { %v4858_v43 = vsel %vm1342_vm13, %v4491_v11, -inf  ;;  %v5018_v48 = vsel %vm4980_vm6, %v4853_v31, %v5017_v50  ;;  %v4493_v56 = vrot.slane %v4492_v16, 4  ;;  %v4500_v37 = vrot.slane %v4499_v39, 4 }
 0x418   : > { %v4859_v51 = vmax.f32 %v7843_v58, %v4858_v43  ;;  %v5019_v63 = vsel %vm4982_vm7, %v4856_v18, %v5018_v48  ;;  %v4506_v46 = vsel %vm3819_vm1, %v3569_v17, -inf  ;;  %v4513_v23 = vsel %vm3819_vm1, %v3571_v10, -inf }
 0x419   : > { %v4494_v34 = vmax.f32 %v4492_v16, %v4493_v56  ;;  %v4501_v29 = vmax.f32 %v4499_v39, %v4500_v37  ;;  %v4507_v19 = vrot.slane %v4506_v46, 4  ;;  %v4514_v6 = vrot.slane %v4513_v23, 4 }
 0x41a   : > { %v5020_v30 = vsel %vm4984_vm8, %v4859_v51, %v5019_v63  ;;  %v3076_v3 = vmax.f32 %v7833_v27, 0.0  ;;  %v5385_v47 = vadd.f32 %v7689_v55, %v7684_v1  ;;  %v5388_v58 = vadd.f32 %v7699_v44, %v7695_v7 }
 0x41b   : > { %5048 = vst.msk [vmem:[%s7241_s9 + $0x28] sm:$0xff] %vm1342_vm13, %v5020_v30  ;;  %v4495_v45 = vrot.slane %v4494_v34, 2  ;;  %v4502_v20 = vrot.slane %v4501_v29, 2  ;;  %v4508_v36 = vmax.f32 %v4506_v46, %v4507_v19  ;;  %v4515_v22 = vmax.f32 %v4513_v23, %v4514_v6  ;;  %v8190_v19 = vld [vmem:[#allocation9_spill] sm:$0xff] }
 0x41c   : > { %3108 = vst.msk [vmem:[%s7087_s28 + $0xc8] sm:$0xff] %vm1342_vm13, %v3076_v3  ;;  %v3572_v24 = vcombine.high %v3076_v3, %v3076_v3  ;;  %v3579_v28 = vrot.slane %v3076_v3, %v7080_v52  ;;  %v2868_v4 = vadd.f32 %v7805_v59, %v5385_v47  ;;  %v2871_v27 = vadd.f32 %v7805_v59, %v5388_v58 }
 0x41d   : > { %v4496_v15 = vmax.f32 %v4494_v34, %v4495_v45  ;;  %v4503_v1 = vmax.f32 %v4501_v29, %v4502_v20  ;;  %v4509_v55 = vrot.slane %v4508_v36, 2  ;;  %v4516_v21 = vrot.slane %v4515_v22, 2 }
 0x41e   : > { %v3586_v7 = vrot.slane %v3572_v24, %v7080_v52  ;;  %v3587_v44 = vcombine.high %v3579_v28, %v3579_v28  ;;  %v4520_v42 = vsel %vm3819_vm1, %v3579_v28, -inf  ;;  %v3029_v38 = vadd.f32 %v8189_v49, %v2868_v4 }
 0x41f   : > { %v4497_v62 = vrot.slane %v4496_v15, 1  ;;  %v4504_v0 = vrot.slane %v4503_v1, 1  ;;  %v4510_v5 = vmax.f32 %v4508_v36, %v4509_v55  ;;  %v4517_v40 = vmax.f32 %v4515_v22, %v4516_v21 }
 0x420   : > { %v3588_v9 = vcombine.high %v3586_v7, %v3586_v7  ;;  %v4521_v32 = vrot.slane %v4520_v42, 4  ;;  %v4527_v53 = vsel %vm3819_vm1, %v3587_v44, -inf  ;;  %v4534_v17 = vsel %vm3819_vm1, %v3586_v7, -inf }
 0x421   : > { %v4498_v41 = vmax.f32 %v4496_v15, %v4497_v62  ;;  %v4505_v11 = vmax.f32 %v4503_v1, %v4504_v0  ;;  %v4511_v31 = vrot.slane %v4510_v5, 1  ;;  %v4518_v12 = vrot.slane %v4517_v40, 1 }
 0x422   : > { %v4522_v50 = vmax.f32 %v4520_v42, %v4521_v32  ;;  %v4528_v18 = vrot.slane %v4527_v53, 4  ;;  %v4535_v10 = vrot.slane %v4534_v17, 4  ;;  %v4541_v16 = vsel %vm3819_vm1, %v3588_v9, -inf }
 0x423   : > { %v4512_v39 = vmax.f32 %v4510_v5, %v4511_v31  ;;  %v4519_v43 = vmax.f32 %v4517_v40, %v4518_v12  ;;  %v7913_v48 = vsel %vm1342_vm13, %v4498_v41, -inf  ;;  %v7916_v56 = vsel %vm1342_vm13, %v4505_v11, -inf }
 0x424   : > { %v4523_v37 = vrot.slane %v4522_v50, 2  ;;  %v4529_v51 = vmax.f32 %v4527_v53, %v4528_v18  ;;  %v4536_v63 = vmax.f32 %v4534_v17, %v4535_v10  ;;  %v4542_v46 = vrot.slane %v4541_v16, 4 }
 0x425   : > { %v7919_v23 = vsel %vm1342_vm13, %v4512_v39, -inf  ;;  %v7922_v34 = vsel %vm1342_vm13, %v4519_v43, -inf  ;;  %v3077_v29 = vmax.f32 %v3029_v38, 0.0  ;;  %v3032_v6 = vadd.f32 %v8190_v19, %v2871_v27 }
 0x426   : > { %v4524_v30 = vmax.f32 %v4522_v50, %v4523_v37  ;;  %v4530_v3 = vrot.slane %v4529_v51, 2  ;;  %v4537_v47 = vrot.slane %v4536_v63, 2  ;;  %v4543_v58 = vmax.f32 %v4541_v16, %v4542_v46 }
 0x427   : > { %3109 = vst.msk [vmem:[%s7087_s28 + $0xd0] sm:$0xff] %vm1342_vm13, %v3077_v29  ;;  %v3589_v45 = vcombine.high %v3077_v29, %v3077_v29  ;;  %v3596_v20 = vrot.slane %v3077_v29, %v7080_v52  ;;  %v3078_v36 = vmax.f32 %v3032_v6, 0.0  ;;  %v7930_v22 = vadd.f32 %v7717_v61, %v7712_v57 }
 0x428   : > { %v4525_v24 = vrot.slane %v4524_v30, 1  ;;  %v4531_v28 = vmax.f32 %v4529_v51, %v4530_v3  ;;  %v4538_v4 = vmax.f32 %v4536_v63, %v4537_v47  ;;  %v4544_v15 = vrot.slane %v4543_v58, 2 }
 0x429   : > { %v3603_v27 = vrot.slane %v3589_v45, %v7080_v52  ;;  %v3604_v1 = vcombine.high %v3596_v20, %v3596_v20  ;;  %v4548_v55 = vsel %vm3819_vm1, %v3596_v20, -inf  ;;  %3110 = vst.msk [vmem:[%s7087_s28 + $0xd8] sm:$0xff] %vm1342_vm13, %v3078_v36  ;;  %v3606_v21 = vcombine.high %v3078_v36, %v3078_v36 }
 0x42a   : > { %v4526_v7 = vmax.f32 %v4524_v30, %v4525_v24  ;;  %v4532_v44 = vrot.slane %v4531_v28, 1  ;;  %v4539_v42 = vrot.slane %v4538_v4, 1  ;;  %v4545_v49 = vmax.f32 %v4543_v58, %v4544_v15 }
 0x42b   : > { %v3605_v38 = vcombine.high %v3603_v27, %v3603_v27  ;;  %v4549_v62 = vrot.slane %v4548_v55, 4  ;;  %v4555_v57 = vsel %vm3819_vm1, %v3604_v1, -inf  ;;  %v4562_v61 = vsel %vm3819_vm1, %v3603_v27, -inf }
 0x42c   : > { %v4533_v0 = vmax.f32 %v4531_v28, %v4532_v44  ;;  %v4540_v5 = vmax.f32 %v4538_v4, %v4539_v42  ;;  %v4546_v40 = vrot.slane %v4545_v49, 1  ;;  %v7939_v9 = vsel %vm1342_vm13, %v4526_v7, -inf }
 0x42d   : > { %v4550_v32 = vmax.f32 %v4548_v55, %v4549_v62  ;;  %v4556_v53 = vrot.slane %v4555_v57, 4  ;;  %v4563_v17 = vrot.slane %v4562_v61, 4  ;;  %v4569_v41 = vsel %vm3819_vm1, %v3605_v38, -inf }
 0x42e   : > { %v4547_v11 = vmax.f32 %v4545_v49, %v4546_v40  ;;  %v7943_v31 = vsel %vm1342_vm13, %v4533_v0, -inf  ;;  %v7946_v12 = vsel %vm1342_vm13, %v4540_v5, -inf  ;;  %v4570_v50 = vrot.slane %v4569_v41, 4 }
 0x42f   : > { %v4551_v18 = vrot.slane %v4550_v32, 2  ;;  %v4557_v10 = vmax.f32 %v4555_v57, %v4556_v53  ;;  %v4564_v16 = vmax.f32 %v4562_v61, %v4563_v17  ;;  %v3613_v39 = vrot.slane %v3078_v36, %v7080_v52 }
 0x430   : > { %v7950_v43 = vsel %vm1342_vm13, %v4547_v11, -inf  ;;  %v4571_v37 = vmax.f32 %v4569_v41, %v4570_v50  ;;  %v3620_v51 = vrot.slane %v3606_v21, %v7080_v52  ;;  %v5394_v63 = vadd.f32 %v7728_v2, %v7721_v25 }
 0x431   : > { %v4552_v46 = vmax.f32 %v4550_v32, %v4551_v18  ;;  %v4558_v29 = vrot.slane %v4557_v10, 2  ;;  %v4565_v19 = vrot.slane %v4564_v16, 2  ;;  %v3621_v6 = vcombine.high %v3613_v39, %v3613_v39 }
 0x432   : > { %v4572_v30 = vrot.slane %v4571_v37, 2  ;;  %v3622_v3 = vcombine.high %v3620_v51, %v3620_v51  ;;  %v4576_v47 = vsel %vm3819_vm1, %v3613_v39, -inf  ;;  %v4590_v58 = vsel %vm3819_vm1, %v3620_v51, -inf }
 0x433   : > { %v4553_v45 = vrot.slane %v4552_v46, 1  ;;  %v4559_v20 = vmax.f32 %v4557_v10, %v4558_v29  ;;  %v4566_v36 = vmax.f32 %v4564_v16, %v4565_v19  ;;  %v4577_v24 = vrot.slane %v4576_v47, 4 }
 0x434   : > { %v4573_v28 = vmax.f32 %v4571_v37, %v4572_v30  ;;  %v4583_v4 = vsel %vm3819_vm1, %v3621_v6, -inf  ;;  %v4591_v15 = vrot.slane %v4590_v58, 4  ;;  %v4597_v25 = vsel %vm3819_vm1, %v3622_v3, -inf }
 0x435   : > { %v4554_v2 = vmax.f32 %v4552_v46, %v4553_v45  ;;  %v4560_v27 = vrot.slane %v4559_v20, 1  ;;  %v4567_v1 = vrot.slane %v4566_v36, 1  ;;  %v4578_v55 = vmax.f32 %v4576_v47, %v4577_v24 }
 0x436   : > { %v4574_v21 = vrot.slane %v4573_v28, 1  ;;  %v4584_v7 = vrot.slane %v4583_v4, 4  ;;  %v4592_v44 = vmax.f32 %v4590_v58, %v4591_v15  ;;  %v4598_v42 = vrot.slane %v4597_v25, 4 }
 0x437   : > { %v4561_v49 = vmax.f32 %v4559_v20, %v4560_v27  ;;  %v4568_v38 = vmax.f32 %v4566_v36, %v4567_v1  ;;  %v4861_v62 = vsel %vm1342_vm13, %v4554_v2, -inf  ;;  %v4579_v57 = vrot.slane %v4578_v55, 2 }
 0x438   : > { %v4575_v61 = vmax.f32 %v4573_v28, %v4574_v21  ;;  %v4862_v0 = vmax.f32 %v7913_v48, %v4861_v62  ;;  %v4585_v5 = vmax.f32 %v4583_v4, %v4584_v7  ;;  %v4593_v40 = vrot.slane %v4592_v44, 2 }
 0x439   : > { %v4864_v32 = vsel %vm1342_vm13, %v4561_v49, -inf  ;;  %v4867_v53 = vsel %vm1342_vm13, %v4568_v38, -inf  ;;  %v4580_v17 = vmax.f32 %v4578_v55, %v4579_v57  ;;  %v4599_v41 = vmax.f32 %v4597_v25, %v4598_v42 }
 0x43a   : > { %v4865_v11 = vmax.f32 %v7916_v56, %v4864_v32  ;;  %v4868_v50 = vmax.f32 %v7919_v23, %v4867_v53  ;;  %v4870_v18 = vsel %vm1342_vm13, %v4575_v61, -inf  ;;  %v4586_v10 = vrot.slane %v4585_v5, 2 }
 0x43b   : > { %v4871_v16 = vmax.f32 %v7922_v34, %v4870_v18  ;;  %v4581_v39 = vrot.slane %v4580_v17, 1  ;;  %v4594_v37 = vmax.f32 %v4592_v44, %v4593_v40  ;;  %v4600_v48 = vrot.slane %v4599_v41, 2 }
 0x43c   : > { %v5021_v51 = vsel %vm4972_vm2, %v4865_v11, %v4862_v0  ;;  %v4587_v46 = vmax.f32 %v4585_v5, %v4586_v10  ;;  %v2876_v29 = vadd.f32 %v7805_v59, %v7930_v22  ;;  %v2879_v19 = vadd.f32 %v7805_v59, %v5394_v63 }
 0x43d   : > { %v5022_v56 = vsel %vm4974_vm3, %v4868_v50, %v5021_v51  ;;  %v4582_v6 = vmax.f32 %v4580_v17, %v4581_v39  ;;  %v4595_v23 = vrot.slane %v4594_v37, 1  ;;  %v4601_v30 = vmax.f32 %v4599_v41, %v4600_v48 }
 0x43e   : > { %v4588_v3 = vrot.slane %v4587_v46, 1  ;;  %v5023_v47 = vsel %vm4976_vm4, %v4871_v16, %v5022_v56  ;;  %v3037_v34 = vadd.f32 %v7646_v14, %v2876_v29  ;;  %v3040_v58 = vadd.f32 %v7660_v26, %v2879_v19 }
 0x43f   : > { %v4596_v45 = vmax.f32 %v4594_v37, %v4595_v23  ;;  %v4602_v20 = vrot.slane %v4601_v30, 1  ;;  %v4873_v22 = vsel %vm1342_vm13, %v4582_v6, -inf  ;;  %v5397_v63 = vadd.f32 %v7758_v8, %v7756_v60 }
 0x440   : > { %v4589_v36 = vmax.f32 %v4587_v46, %v4588_v3  ;;  %v4874_v24 = vmax.f32 %v7939_v9, %v4873_v22  ;;  %v3079_v28 = vmax.f32 %v3037_v34, 0.0  ;;  %v3080_v4 = vmax.f32 %v3040_v58, 0.0 }
 0x441   : > { %v4603_v15 = vmax.f32 %v4601_v30, %v4602_v20  ;;  %v4879_v25 = vsel %vm1342_vm13, %v4596_v45, -inf  ;;  %v2884_v14 = vadd.f32 %v7805_v59, %v5397_v63  ;;  %v7983_v26 = vadd.f32 %v7767_v54, %v7762_v13 }
 0x442   : > { %v4876_v2 = vsel %vm1342_vm13, %v4589_v36, -inf  ;;  %v4880_v27 = vmax.f32 %v7946_v12, %v4879_v25  ;;  %v5024_v60 = vsel %vm4978_vm5, %v4874_v24, %v5023_v47  ;;  %3111 = vst.msk [vmem:[%s7087_s28 + $0xe0] sm:$0xff] %vm1342_vm13, %v3079_v28  ;;  %v3623_v8 = vcombine.high %v3079_v28, %v3079_v28  ;;  %3112 = vst.msk [vmem:[%s7087_s28 + $0xe8] sm:$0xff] %vm1342_vm13, %v3080_v4 }
 0x443   : > { %v4877_v9 = vmax.f32 %v7943_v31, %v4876_v2  ;;  %v4882_v1 = vsel %vm1342_vm13, %v4603_v15, -inf  ;;  %v3630_v55 = vrot.slane %v3079_v28, %v7080_v52  ;;  %v3640_v21 = vcombine.high %v3080_v4, %v3080_v4 }
 0x444   : > { %v4883_v13 = vmax.f32 %v7950_v43, %v4882_v1  ;;  %v3637_v54 = vrot.slane %v3623_v8, %v7080_v52  ;;  %v3647_v12 = vrot.slane %v3080_v4, %v7080_v52  ;;  %v3045_v7 = vadd.f32 %v7605_v33, %v2884_v14 }
 0x445   : > { %v5025_v44 = vsel %vm4980_vm6, %v4877_v9, %v5024_v60  ;;  %v3638_v42 = vcombine.high %v3630_v55, %v3630_v55  ;;  %v4604_v49 = vsel %vm3819_vm1, %v3630_v55, -inf  ;;  %v3654_v31 = vrot.slane %v3640_v21, %v7080_v52 }
 0x446   : > { %v5026_v38 = vsel %vm4982_vm7, %v4880_v27, %v5025_v44  ;;  %v3639_v62 = vcombine.high %v3637_v54, %v3637_v54  ;;  %v4605_v57 = vrot.slane %v4604_v49, 4  ;;  %v4618_v43 = vsel %vm3819_vm1, %v3637_v54, -inf }
 0x447   : > { %v5027_v61 = vsel %vm4984_vm8, %v4883_v13, %v5026_v38  ;;  %v4611_v0 = vsel %vm3819_vm1, %v3638_v42, -inf  ;;  %v4619_v5 = vrot.slane %v4618_v43, 4  ;;  %v3655_v40 = vcombine.high %v3647_v12, %v3647_v12 }
 0x448   : > { %5049 = vst.msk [vmem:[%s7241_s9 + $0x30] sm:$0xff] %vm1342_vm13, %v5027_v61  ;;  %v4606_v33 = vmax.f32 %v4604_v49, %v4605_v57  ;;  %v4612_v32 = vrot.slane %v4611_v0, 4  ;;  %v4625_v53 = vsel %vm3819_vm1, %v3639_v62, -inf  ;;  %v3656_v17 = vcombine.high %v3654_v31, %v3654_v31 }
 0x449   : > { %v4620_v41 = vmax.f32 %v4618_v43, %v4619_v5  ;;  %v4626_v11 = vrot.slane %v4625_v53, 4  ;;  %v4632_v50 = vsel %vm3819_vm1, %v3647_v12, -inf  ;;  %v4639_v18 = vsel %vm3819_vm1, %v3655_v40, -inf }
 0x44a   : > { %v4607_v10 = vrot.slane %v4606_v33, 2  ;;  %v4613_v16 = vmax.f32 %v4611_v0, %v4612_v32  ;;  %v4633_v39 = vrot.slane %v4632_v50, 4  ;;  %v4640_v37 = vrot.slane %v4639_v18, 4 }
 0x44b   : > { %v4621_v48 = vrot.slane %v4620_v41, 2  ;;  %v4627_v51 = vmax.f32 %v4625_v53, %v4626_v11  ;;  %v4646_v46 = vsel %vm3819_vm1, %v3654_v31, -inf  ;;  %v4653_v29 = vsel %vm3819_vm1, %v3656_v17, -inf }
 0x44c   : > { %v4608_v19 = vmax.f32 %v4606_v33, %v4607_v10  ;;  %v4614_v56 = vrot.slane %v4613_v16, 2  ;;  %v4634_v6 = vmax.f32 %v4632_v50, %v4633_v39  ;;  %v4641_v23 = vmax.f32 %v4639_v18, %v4640_v37 }
 0x44d   : > { %v4622_v30 = vmax.f32 %v4620_v41, %v4621_v48  ;;  %v4628_v3 = vrot.slane %v4627_v51, 2  ;;  %v4647_v47 = vrot.slane %v4646_v46, 4  ;;  %v4654_v34 = vrot.slane %v4653_v29, 4 }
 0x44e   : > { %v4609_v58 = vrot.slane %v4608_v19, 1  ;;  %v4615_v45 = vmax.f32 %v4613_v16, %v4614_v56  ;;  %v4635_v20 = vrot.slane %v4634_v6, 2  ;;  %v4642_v22 = vrot.slane %v4641_v23, 2 }
 0x44f   : > { %v4623_v63 = vrot.slane %v4622_v30, 1  ;;  %v4629_v36 = vmax.f32 %v4627_v51, %v4628_v3  ;;  %v4648_v24 = vmax.f32 %v4646_v46, %v4647_v47  ;;  %v4655_v28 = vmax.f32 %v4653_v29, %v4654_v34 }
 0x450   : > { %v4616_v4 = vrot.slane %v4615_v45, 1  ;;  %v4636_v15 = vmax.f32 %v4634_v6, %v4635_v20  ;;  %v4610_v25 = vmax.f32 %v4608_v19, %v4609_v58  ;;  %v4643_v14 = vmax.f32 %v4641_v23, %v4642_v22 }
 0x451   : > { %v4624_v2 = vmax.f32 %v4622_v30, %v4623_v63  ;;  %v4630_v27 = vrot.slane %v4629_v36, 1  ;;  %v4649_v60 = vrot.slane %v4648_v24, 2  ;;  %v4656_v8 = vrot.slane %v4655_v28, 2 }
 0x452   : > { %v3081_v9 = vmax.f32 %v3045_v7, 0.0  ;;  %v4617_v1 = vmax.f32 %v4615_v45, %v4616_v4  ;;  %v4637_v55 = vrot.slane %v4636_v15, 1  ;;  %v2887_v21 = vadd.f32 %v7805_v59, %v7983_v26 }
 0x453   : > { %v8016_v13 = vsel %vm1342_vm13, %v4610_v25, -inf  ;;  %v4644_v54 = vrot.slane %v4643_v14, 1  ;;  %v4631_v42 = vmax.f32 %v4629_v36, %v4630_v27  ;;  %v8024_v49 = vsel %vm1342_vm13, %v4624_v2, -inf }
 0x454   : > { %3113 = vst.msk [vmem:[%s7087_s28 + $0xf0] sm:$0xff] %vm1342_vm13, %v3081_v9  ;;  %v3657_v12 = vcombine.high %v3081_v9, %v3081_v9  ;;  %v3664_v44 = vrot.slane %v3081_v9, %v7080_v52  ;;  %v8026_v7 = vmax.f32 %v4648_v24, %v4649_v60  ;;  %v3048_v31 = vadd.f32 %v7655_v35, %v2887_v21 }
 0x455   : > { %v8029_v59 = vmax.f32 %v4655_v28, %v4656_v8  ;;  %v8034_v57 = vsel %vm1342_vm13, %v4617_v1, -inf  ;;  %v8036_v43 = vmax.f32 %v4636_v15, %v4637_v55  ;;  %v8045_v35 = vmax.f32 %v4643_v14, %v4644_v54 }
 0x456   : > { %v3671_v26 = vrot.slane %v3657_v12, %v7080_v52  ;;  %v3672_v38 = vcombine.high %v3664_v44, %v3664_v44  ;;  %v4660_v62 = vsel %vm3819_vm1, %v3664_v44, -inf  ;;  %v3082_v0 = vmax.f32 %v3048_v31, 0.0 }
 0x457   : > { %v4661_v61 = vrot.slane %v4660_v62, 4  ;;  %v8052_v11 = vsel %vm1342_vm13, %v4631_v42, -inf  ;;  %v4651_v50 = vrot.slane %v8026_v7, 1 }
 0x458   : > { %v3673_v5 = vcombine.high %v3671_v26, %v3671_v26  ;;  %v4667_v40 = vsel %vm3819_vm1, %v3672_v38, -inf  ;;  %v4674_v33 = vsel %vm3819_vm1, %v3671_v26, -inf  ;;  %3114 = vst.msk [vmem:[%s7087_s28 + $0xf8] sm:$0xff] %vm1342_vm13, %v3082_v0  ;;  %v3674_v41 = vcombine.high %v3082_v0, %v3082_v0  ;;  %s5613_s28 = scalar_lea.vmem %s5612_s12, 8192 }
 0x459   : > { %v4662_v32 = vmax.f32 %v4660_v62, %v4661_v61  ;;  %v4668_v53 = vrot.slane %v4667_v40, 4  ;;  %v4675_v17 = vrot.slane %v4674_v33, 4  ;;  %v3681_v10 = vrot.slane %v3082_v0, %v7080_v52  ;;  %p5615_p1 = scmp.lt.s32.totalorder %s5613_s28, %s5607_s29 }
 0x45a   : > { %v4681_v18 = vsel %vm3819_vm1, %v3673_v5, -inf }
 0x45b   : > { %p5616_p2 = por %p5615_p1, %p5614_p0 }
 0x45d   : > { %p5617_p3 = pnand %p5616_p2, %p5610_p13 }
 0x45f   : > { %5620 = shalt.err (!%p5617_p3)
}
 0x460   : > { %s5621_s15 = scalar_lea.hbm %s8041_s20, 4096  ;;  %s5625_s19 = scalar_lea.hbm %s8180_s6, 8192 }
 0x461   : > { %p5622_p4 = scmp.ne.s32.totalorder %s8041_s20, %s5621_s15  ;;  %p5626_p9 = scmp.lt.u32.totalorder %s8041_s20, %s8180_s6 }
 0x462   : > { %p5627_p10 = scmp.lt.u32.totalorder %s5625_s19, %s5621_s15  ;;  %p5629_p12 = scmp.lt.u32.totalorder %s5621_s15, %s8041_s20 }
 0x463   : > { %p5623_p7 = pnand %p5622_p4, %p5791_p5 }
 0x464   : > { %p5628_p11 = por %p5627_p10, %p5626_p9 }
 0x465   : > { %p5624_p8 = pneg %p5623_p7 }
 0x466   : > { %p5630_p13 = por %p5629_p12, %p5628_p11 }
 0x468   : > { %p5631_p0 = pnand %p5630_p13, %p5624_p8 }
 0x46a   : > { %5634 = shalt.err (!%p5631_p0)
}
 0x46b   : > { %s5716_s29 = smov 128   ;;  %v4663_v16 = vrot.slane %v4662_v32, 2  ;;  %v4669_v39 = vmax.f32 %v4667_v40, %v4668_v53  ;;  %v4676_v37 = vmax.f32 %v4674_v33, %v4675_v17  ;;  %v4682_v48 = vrot.slane %v4681_v18, 4  ;;  %s5717_s16 = smov [#allocation2]  }
 0x46c   : > { %5511 = dma.vmem_to_hbm [thread:$0]  (%p5791_p5), %s8043_s18, 4096, %s8041_s20, %s5057_s26, %s5716_s29, %s5716_s29, %s5704_s14   ;;  %v4658_v51 = vrot.slane %v8029_v59, 1  ;;  %v3688_v46 = vrot.slane %v3674_v41, %v7080_v52  ;;  %v3689_v29 = vcombine.high %v3681_v10, %v3681_v10  ;;  %v4688_v19 = vsel %vm3819_vm1, %v3681_v10, -inf }
 0x46d   : > { %v4664_v56 = vmax.f32 %v4662_v32, %v4663_v16  ;;  %v4670_v6 = vrot.slane %v4669_v39, 2  ;;  %v4677_v23 = vrot.slane %v4676_v37, 2  ;;  %v4683_v30 = vmax.f32 %v4681_v18, %v4682_v48  ;;  %s5268_s18 = sshll.u32 %s5774_s25, 10  ;;  %s5070_s20 = sshll.u32 %s7241_s9, 4  ;;  %s8125_s20 = int_to_ptr.vmem [resolvable:$true] %s5070_s20 }
 0x46e   : > { %v3690_v3 = vcombine.high %v3688_v46, %v3688_v46  ;;  %v4689_v47 = vrot.slane %v4688_v19, 4  ;;  %v4695_v34 = vsel %vm3819_vm1, %v3689_v29, -inf  ;;  %v4702_v58 = vsel %vm3819_vm1, %v3688_v46, -inf  ;;  %s8123_s28 = scalar_lea.hbm %s8179_s5, %s5268_s18  ;;  %s5052_s25 = scalar_lea.sflag [#allocation3], %s7061_s10 }
 0x46f   : > { %v4665_v45 = vrot.slane %v4664_v56, 1  ;;  %v4671_v20 = vmax.f32 %v4669_v39, %v4670_v6  ;;  %v4678_v22 = vmax.f32 %v4676_v37, %v4677_v23  ;;  %v4684_v63 = vrot.slane %v4683_v30, 2  ;;  %s5635_s15 = scalar_lea.vmem %s8125_s20, 1024  ;;  %s5639_s17 = sshll.u32 %s5717_s16, 4  ;;  %s5640_s17 = int_to_ptr.vmem [resolvable:$false] %s5639_s17 }
 0x470   : > { %v4690_v36 = vmax.f32 %v4688_v19, %v4689_v47  ;;  %v4696_v24 = vrot.slane %v4695_v34, 4  ;;  %v4703_v52 = vrot.slane %v4702_v58, 4  ;;  %v4709_v28 = vsel %vm3819_vm1, %v3690_v3, -inf  ;;  %p5636_p1 = scmp.ne.s32.totalorder %s8125_s20, %s5635_s15  ;;  %s5641_s19 = scalar_lea.vmem %s5640_s17, 2048 }
 0x471   : > { %v4666_v4 = vmax.f32 %v4664_v56, %v4665_v45  ;;  %v4672_v15 = vrot.slane %v4671_v20, 1  ;;  %v4679_v25 = vrot.slane %v4678_v22, 1  ;;  %v4685_v14 = vmax.f32 %v4683_v30, %v4684_v63  ;;  %p5642_p4 = scmp.lt.s32.totalorder %s8125_s20, %s5640_s17  ;;  %p5643_p7 = scmp.lt.s32.totalorder %s5641_s19, %s5635_s15 }
 0x472   : > { %v4691_v2 = vrot.slane %v4690_v36, 2  ;;  %v4697_v27 = vmax.f32 %v4695_v34, %v4696_v24  ;;  %v4704_v60 = vmax.f32 %v4702_v58, %v4703_v52  ;;  %v4710_v8 = vrot.slane %v4709_v28, 4  ;;  %p5637_p2 = pnand %p5636_p1, %p5791_p5 }
 0x473   : > { %v4673_v9 = vmax.f32 %v4671_v20, %v4672_v15  ;;  %v4680_v1 = vmax.f32 %v4678_v22, %v4679_v25  ;;  %v4686_v55 = vrot.slane %v4685_v14, 1  ;;  %v4885_v21 = vsel %vm1342_vm13, %v4666_v4, -inf  ;;  %p5644_p8 = por %p5643_p7, %p5642_p4 }
 0x474   : > { %v4886_v54 = vmax.f32 %v8016_v13, %v4885_v21  ;;  %v4692_v12 = vmax.f32 %v4690_v36, %v4691_v2  ;;  %v4698_v44 = vrot.slane %v4697_v27, 2  ;;  %v4705_v42 = vrot.slane %v4704_v60, 2  ;;  %p5638_p3 = pneg %p5637_p2 }
 0x475   : > { %v4687_v31 = vmax.f32 %v4685_v14, %v4686_v55  ;;  %v4888_v26 = vsel %vm1342_vm13, %v4673_v9, -inf  ;;  %v4891_v38 = vsel %vm1342_vm13, %v4680_v1, -inf  ;;  %v4711_v62 = vmax.f32 %v4709_v28, %v4710_v8 }
 0x476   : > { %v4889_v61 = vmax.f32 %v8034_v57, %v4888_v26  ;;  %v4892_v0 = vmax.f32 %v8024_v49, %v4891_v38  ;;  %v4693_v5 = vrot.slane %v4692_v12, 1  ;;  %v4699_v40 = vmax.f32 %v4697_v27, %v4698_v44  ;;  %p5645_p9 = pnand %p5644_p8, %p5638_p3 }
 0x477   : > { %v4652_v33 = vmax.f32 %v8026_v7, %v4651_v50  ;;  %v4894_v13 = vsel %vm1342_vm13, %v4687_v31, -inf  ;;  %v4706_v32 = vmax.f32 %v4704_v60, %v4705_v42  ;;  %v4712_v53 = vrot.slane %v4711_v62, 2 }
 0x478   : > { %v4895_v17 = vmax.f32 %v8052_v11, %v4894_v13  ;;  %v5028_v41 = vsel %vm4972_vm2, %v4889_v61, %v4886_v54  ;;  %v4694_v18 = vmax.f32 %v4692_v12, %v4693_v5  ;;  %v4700_v10 = vrot.slane %v4699_v40, 1 }
 0x479   : > { %v5029_v57 = vsel %vm4974_vm3, %v4892_v0, %v5028_v41  ;;  %v4707_v16 = vrot.slane %v4706_v32, 1  ;;  %v4713_v49 = vmax.f32 %v4711_v62, %v4712_v53  ;;  %v4896_v39 = vsel %vm1342_vm13, %v8036_v43, -inf }
 0x47a   : > { %v4701_v37 = vmax.f32 %v4699_v40, %v4700_v10  ;;  %v4897_v7 = vsel %vm1342_vm13, %v4694_v18, -inf  ;;  %v5030_v50 = vsel %vm4976_vm4, %v4895_v17, %v5029_v57  ;;  %v4659_v11 = vmax.f32 %v8029_v59, %v4658_v51 }
 0x47b   : > { %v4708_v48 = vmax.f32 %v4706_v32, %v4707_v16  ;;  %v4714_v46 = vrot.slane %v4713_v49, 1  ;;  %v4898_v29 = vmax.f32 %v4896_v39, %v4897_v7  ;;  %v4899_v19 = vsel %vm1342_vm13, %v8045_v35, -inf }
 0x47c   : > { %v4902_v56 = vsel %vm1342_vm13, %v4652_v33, -inf  ;;  %v4900_v6 = vsel %vm1342_vm13, %v4701_v37, -inf  ;;  %v4905_v51 = vsel %vm1342_vm13, %v4659_v11, -inf }
 0x47d   : > { %v4715_v43 = vmax.f32 %v4713_v49, %v4714_v46  ;;  %v4901_v23 = vmax.f32 %v4899_v19, %v4900_v6  ;;  %v4903_v30 = vsel %vm1342_vm13, %v4708_v48, -inf  ;;  %v5031_v3 = vsel %vm4978_vm5, %v4898_v29, %v5030_v50 }
 0x47e   : > { %v4904_v59 = vmax.f32 %v4902_v56, %v4903_v30 }
 0x47f   : > { %v4906_v35 = vsel %vm1342_vm13, %v4715_v43, -inf  ;;  %v5032_v47 = vsel %vm4980_vm6, %v4901_v23, %v5031_v3 }
 0x480   : > { %v4907_v34 = vmax.f32 %v4905_v51, %v4906_v35  ;;  %v5033_v58 = vsel %vm4982_vm7, %v4904_v59, %v5032_v47 }
 0x482   : > { %v5034_v45 = vsel %vm4984_vm8, %v4907_v34, %v5033_v58 }
 0x483   : > { %5050 = vst.msk [vmem:[%s7241_s9 + $0x38] sm:$0xff] %vm1342_vm13, %v5034_v45 }
 0x484   : > { %5648 = shalt.err (!%p5645_p9)
}
 0x485   : > { %s5649_s9 = scalar_lea.hbm %s8123_s28, 1024  ;;  %s5653_s18 = scalar_lea.hbm %s8179_s5, 2048 }
 0x486   : > { %p5650_p10 = scmp.ne.s32.totalorder %s8123_s28, %s5649_s9  ;;  %p5654_p13 = scmp.lt.u32.totalorder %s8123_s28, %s8179_s5 }
 0x487   : > { %p5655_p0 = scmp.lt.u32.totalorder %s5653_s18, %s5649_s9  ;;  %p5657_p2 = scmp.lt.u32.totalorder %s5649_s9, %s8123_s28 }
 0x488   : > { %p5651_p11 = pnand %p5650_p10, %p5791_p5 }
 0x489   : > { %p5656_p1 = por %p5655_p0, %p5654_p13 }
 0x48a   : > { %p5652_p12 = pneg %p5651_p11 }
 0x48b   : > { %p5658_p3 = por %p5657_p2, %p5656_p1 }
 0x48d   : > { %p5659_p4 = pnand %p5658_p3, %p5652_p12 }
 0x48f   : > { %5662 = shalt.err (!%p5659_p4)
}
 0x490   : > { %5510 = dma.vmem_to_hbm [thread:$0]  (%p5791_p5), %s8125_s20, 1024, %s8123_s28, %s5052_s25, %s5716_s29, %s5716_s29, %s5704_s14  }
 0x491 PF: > { %p5521_p7 = scmp.ge.s32.totalorder %s5701_s24, 2  ;;  %s5101_s15 = sand.u32 1, %s5689_s21  }
 0x492   : > { %s5102_s16 = scalar_lea.sflag [#allocation3], %s5101_s15 }
 0x493   : > { %p5515_p8 = pnand %p5521_p7, %p5795_p6 }
 0x495   : > { %5680 = dma.done.wait (!%p5515_p8), %s5102_s16, 1024  }
 0x496   : > { %5682 = vsyncadd (!%p5515_p8), %s5102_s16, 4294966272  ;;  %s5111_s7 = scalar_lea.sflag [#allocation5], %s5101_s15 }
 0x497   : > { %5684 = dma.done.wait (!%p5515_p8), %s5111_s7, 4096  }
 0x498   : > { %5686 = vsyncadd (!%p5515_p8), %s5111_s7, 4294963200  ;;  %p20_p5 = scmp.ge.s32.totalorder %s5778_s27, 4   ;;  %s8191_s21 = smov %s5693_s22 }
 0x499   : > { %s8192_s22 = smov %s5697_s23  ;;  %s8193_s23 = smov %s5789_s30 }
 0x49a   : > { %s8194_s24 = smov %s5778_s27  ;;  %22 = sbr.rel (!%p20_p5) target bundleno = 5 (0x5), region = 92 }
 0x4a1   :  { %5116 = vsyncpa [#allocation3], 1 }
 0x4a2   :  { %5118 = vsyncpa [#allocation3 + $0x1], 1 }
 0x4a3   :  { %5119 = vsyncpa [#allocation5], 1 }
 0x4a4   :  { %5121 = vsyncpa [#allocation5 + $0x1], 1 }

</bundles_post_ra>
